<compile_context>
chip_gen: v6e
topology: v6e:2x2x1
jax: 0.10.0
libtpu: 0.0.40
codegen_flags: <defaults>
</compile_context>

<pallas_src>
import functools
import math

import jax
import jax.numpy as jnp
import numpy as np
from jax.experimental import pallas as pl
from jax.experimental.pallas import tpu as pltpu


# ----------------------------------------------------------------------------
# Model configuration (small synthetic sizes)
# ----------------------------------------------------------------------------
B = 2          # batch
C_IN = 3       # raw video channels
T = 4          # frames
H = W = 16     # spatial
PATCH = 2      # AE spatial patch (stride-2 "conv")
C_LAT = 4      # latent channels
VOCAB = 128    # text vocab
E_TXT = 32     # text embedding dim
D_TXT = 32     # text-encoder hidden dim
D_MODEL = 64   # predictor hidden dim
D_HID = 4 * D_MODEL
N_PROMPT = 1   # prompts per sample
L_PROMPT = 8   # prompt length
NUM_DIFF_STEPS = 1000
WEIGHT_DTYPE = jnp.float32
MATMUL_DTYPE = jnp.bfloat16

K_AE = C_IN * PATCH * PATCH                 # 12 patch features
S_TOK = T * (H // PATCH) * (W // PATCH)     # 256 tokens per batch element
BS_TOK = B * S_TOK                          # 512 lanes (batch folded into lanes)


# ----------------------------------------------------------------------------
# Fused Pallas kernel: AE encode -> q_sample -> predictor
# ----------------------------------------------------------------------------
def _fused_sora_kernel(
        x_ref,                                # (K_AE,   B*S) patchified video
        noise_ref,                            # (C_LAT,  B*S) gaussian noise
        sa_ref, sb_ref,                       # (1,      B*S) q-sample scalars per token
        cond_ref,                             # (D_MODEL,B*S) timestep+text conditioning
        ae_w_ref, ae_b_ref,                   # (C_LAT,K_AE) bf16, (C_LAT,1) f32
        pin_w_ref, pin_b_ref,                 # (D_MODEL,C_LAT) bf16, (D_MODEL,1) f32
        m1_w_ref, m1_b_ref,                   # (D_HID,D_MODEL) bf16, (D_HID,1) f32
        m2_w_ref, m2_b_ref,                   # (D_MODEL,D_HID) bf16, (D_MODEL,1) f32
        pout_w_ref, pout_b_ref,               # (C_LAT,D_MODEL) bf16, (C_LAT,1) f32
        lat_ref, noised_ref, out_ref):        # each (C_LAT, B*S), lane-dense
    """Single VMEM-resident pass over the whole (batch-folded) token slab.

    Layout: features on sublanes, all B*S tokens on the lane axis, so every
    matmul is a plain (F_out, F_in) @ (F_in, B*S) MXU push with 512 lanes, and
    every store is an unmasked lane-dense vst.  Weights are pre-transposed bf16;
    activations are cast to bf16 only at the MXU boundary (f32 accumulate).
    """
    x = x_ref[...].astype(MATMUL_DTYPE)

    # ---- AE encode (patch-conv as matmul, channel-major output) ----
    lat = jnp.dot(ae_w_ref[...], x,
                  preferred_element_type=jnp.float32) + ae_b_ref[...]   # (C_LAT, BS)
    lat_ref[...] = lat.astype(lat_ref.dtype)

    # ---- diffusion q_sample: sqrt(acp[t])*x0 + sqrt(1-acp[t])*noise ----
    noised = sa_ref[...] * lat + sb_ref[...] * noise_ref[...]           # (C_LAT, BS)
    noised_ref[...] = noised.astype(noised_ref.dtype)

    # ---- predictor: token projection + (timestep + pooled-text) conditioning ----
    hdn = jnp.dot(pin_w_ref[...], noised.astype(MATMUL_DTYPE),
                  preferred_element_type=jnp.float32)                   # (D_MODEL, BS)
    hdn = hdn + pin_b_ref[...] + cond_ref[...]

    # ---- residual MLP block (VMEM-resident, no HBM roundtrip) ----
    h = jnp.dot(m1_w_ref[...], hdn.astype(MATMUL_DTYPE),
                preferred_element_type=jnp.float32) + m1_b_ref[...]     # (D_HID, BS)
    # TODO(synk): torch.nn.GELU defaults to exact erf; tanh approximation kept
    # in-kernel for guaranteed Mosaic lowering (EUP path either way).
    h = jax.nn.gelu(h)
    h = jnp.dot(m2_w_ref[...], h.astype(MATMUL_DTYPE),
                preferred_element_type=jnp.float32) + m2_b_ref[...]     # (D_MODEL, BS)
    hdn = hdn + h

    # ---- output projection (lane-dense (C_LAT, BS) store) ----
    out = jnp.dot(pout_w_ref[...], hdn.astype(MATMUL_DTYPE),
                  preferred_element_type=jnp.float32) + pout_b_ref[...]
    out_ref[...] = out.astype(out_ref.dtype)


def fused_ae_qsample_predictor(params, x_cm, noise_cm, cond_tok, sa_row, sb_row):
    """x_cm (K_AE, B*S), noise_cm (C_LAT, B*S), cond_tok (D_MODEL, B*S),
    sa_row/sb_row (1, B*S).  Returns (latents, noised_latents, model_output),
    each (C_LAT, B*S).  Single pallas_call, grid=(1,)."""
    k_ae, bs = x_cm.shape
    full = lambda shape: pl.BlockSpec(shape, lambda i: (0, 0))
    out_struct = jax.ShapeDtypeStruct((C_LAT, bs), WEIGHT_DTYPE)
    lane_out = full((C_LAT, bs))

    # Advisory cost so XLA overlaps the custom call with surrounding glue.
    flops = 2 * bs * (C_LAT * k_ae + D_MODEL * C_LAT + D_HID * D_MODEL
                      + D_MODEL * D_HID + C_LAT * D_MODEL)
    transcendentals = bs * D_HID                                   # gelu
    bytes_acc = (
        4 * (x_cm.size + noise_cm.size + cond_tok.size + sa_row.size + sb_row.size)
        + 2 * (C_LAT * k_ae + D_MODEL * C_LAT + D_HID * D_MODEL
               + D_MODEL * D_HID + C_LAT * D_MODEL)                # bf16 weights
        + 4 * (C_LAT + D_MODEL + D_HID + D_MODEL + C_LAT)          # f32 biases
        + 4 * 3 * C_LAT * bs)                                      # outputs
    cost = pl.CostEstimate(flops=flops, transcendentals=transcendentals,
                           bytes_accessed=bytes_acc)

    return pl.pallas_call(
        _fused_sora_kernel,
        out_shape=(out_struct, out_struct, out_struct),
        grid=(1,),
        in_specs=[
            full((k_ae, bs)),                  # patchified video
            full((C_LAT, bs)),                 # noise
            full((1, bs)), full((1, bs)),      # sa, sb per-token rows
            full((D_MODEL, bs)),               # conditioning slab
            full((C_LAT, k_ae)), full((C_LAT, 1)),
            full((D_MODEL, C_LAT)), full((D_MODEL, 1)),
            full((D_HID, D_MODEL)), full((D_HID, 1)),
            full((D_MODEL, D_HID)), full((D_MODEL, 1)),
            full((C_LAT, D_MODEL)), full((C_LAT, 1)),
        ],
        out_specs=(lane_out, lane_out, lane_out),
        compiler_params=pltpu.CompilerParams(
            dimension_semantics=("arbitrary",),
            # Tiny footprint here (<1 MiB); set explicitly so the same kernel
            # stays inside v7x's 64 MiB physical VMEM when scaled up.
            vmem_limit_bytes=32 * 1024 * 1024),
        cost_estimate=cost,
    )(x_cm, noise_cm, sa_row, sb_row, cond_tok,
      params["ae_w_t"], params["ae_b"],
      params["p_in_w_t"], params["p_in_b"],
      params["p_m1_w_t"], params["p_m1_b"],
      params["p_m2_w_t"], params["p_m2_b"],
      params["p_out_w_t"], params["p_out_b"])


# ----------------------------------------------------------------------------
# Parameters (matmul weights pre-transposed and stored in bf16)
# ----------------------------------------------------------------------------
def init_params(key):
    def nrm(k, shape, dtype=WEIGHT_DTYPE, scale=0.02):
        return (scale * jax.random.normal(k, shape)).astype(dtype)

    ks = jax.random.split(key, 16)
    z = lambda shape: jnp.zeros(shape, WEIGHT_DTYPE)
    params = {
        # AE patch-conv encoder, transposed: (C_LAT, C_IN*p*p), bf16 for the MXU
        "ae_w_t": nrm(ks[0], (C_LAT, K_AE), MATMUL_DTYPE),
        "ae_b": z((C_LAT, 1)),
        # text encoder: embedding + 2-layer MLP (tiny, runs in plain XLA)
        "txt_embed": nrm(ks[1], (VOCAB, E_TXT)),
        "txt_w1": nrm(ks[2], (E_TXT, 2 * D_TXT)),
        "txt_b1": z((1, 2 * D_TXT)),
        "txt_w2": nrm(ks[3], (2 * D_TXT, D_TXT)),
        "txt_b2": z((1, D_TXT)),
        # predictor conditioning (tiny B=2 math, plain XLA)
        "p_t1_w": nrm(ks[4], (D_MODEL, D_MODEL)),
        "p_t1_b": z((D_MODEL,)),
        "p_t2_w": nrm(ks[5], (D_MODEL, D_MODEL)),
        "p_t2_b": z((D_MODEL,)),
        "p_ctx_w": nrm(ks[6], (D_TXT, D_MODEL)),
        "p_ctx_b": z((D_MODEL,)),
        # predictor main path, transposed bf16 for (F_out,F_in)@(F_in,B*S) matmuls
        "p_in_w_t": nrm(ks[7], (D_MODEL, C_LAT), MATMUL_DTYPE),
        "p_in_b": z((D_MODEL, 1)),
        "p_m1_w_t": nrm(ks[8], (D_HID, D_MODEL), MATMUL_DTYPE),
        "p_m1_b": z((D_HID, 1)),
        "p_m2_w_t": nrm(ks[9], (D_MODEL, D_HID), MATMUL_DTYPE),
        "p_m2_b": z((D_MODEL, 1)),
        "p_out_w_t": nrm(ks[10], (C_LAT, D_MODEL), MATMUL_DTYPE),
        "p_out_b": z((C_LAT, 1)),
    }
    # diffusion (DDPM linear beta schedule)
    betas = np.linspace(1e-4, 0.02, NUM_DIFF_STEPS, dtype=np.float64)
    acp = np.cumprod(1.0 - betas)
    params["sqrt_acp"] = jnp.asarray(np.sqrt(acp), WEIGHT_DTYPE)
    params["sqrt_1macp"] = jnp.asarray(np.sqrt(1.0 - acp), WEIGHT_DTYPE)
    return params


# ----------------------------------------------------------------------------
# SoRAModel.forward equivalent
# ----------------------------------------------------------------------------
@functools.partial(jax.jit, static_argnames=())
def sora_forward(params, video, video_mask, prompt_ids, prompt_mask, rng_key):
    b, c, t, h, w = video.shape
    p = PATCH
    h2, w2 = h // p, w // p
    s = t * h2 * w2
    bs = b * s

    # ---- 1) text encode (frozen): tiny (16, 32) math -> plain XLA ----
    bb, n, l = prompt_ids.shape
    ids_flat = prompt_ids.reshape(-1, l)
    mask_flat = prompt_mask.reshape(-1, l)
    emb = jnp.take(params["txt_embed"], ids_flat.reshape(-1), axis=0)   # (B*N*L, E)
    htxt = jax.nn.gelu(emb @ params["txt_w1"] + params["txt_b1"], approximate=False)
    htxt = htxt @ params["txt_w2"] + params["txt_b2"]
    rowmask = mask_flat.reshape(-1, 1).astype(WEIGHT_DTYPE)
    prompt = (htxt * rowmask).reshape(bb, n, l, D_TXT)
    prompt_mask_r = mask_flat.reshape(bb, 1, l)
    # TODO(synk): text_encoder_2 / pooled_projections path omitted (config optional).

    # ---- 2) diffusion timesteps + conditioning (tiny B=2 math, plain XLA) ----
    k_t, k_n = jax.random.split(rng_key)
    timesteps = jax.random.randint(k_t, (b,), 0, NUM_DIFF_STEPS)
    half = D_MODEL // 2
    freqs = jnp.exp(-math.log(10000.0) * jnp.arange(half, dtype=jnp.float32) / half)
    ang = timesteps.astype(jnp.float32)[:, None] * freqs[None, :]
    temb = jnp.concatenate([jnp.cos(ang), jnp.sin(ang)], axis=-1)        # (B, D)
    temb = jax.nn.gelu(temb @ params["p_t1_w"] + params["p_t1_b"], approximate=False)
    temb = temb @ params["p_t2_w"] + params["p_t2_b"]
    m4 = prompt_mask_r.astype(prompt.dtype)[..., None]                   # (B,1,L,1)
    pooled = (prompt * m4).sum(axis=(1, 2)) / jnp.maximum(m4.sum(axis=(1, 2)), 1.0)
    ctx = pooled @ params["p_ctx_w"] + params["p_ctx_b"]
    cond = (temb + ctx).astype(WEIGHT_DTYPE)                             # (B, D_MODEL)

    # Batch folded into lanes (lane index = b*S + token): pre-broadcast the
    # per-batch q-sample scalars and conditioning to per-token rows/slabs.
    cond_tok = jnp.broadcast_to(cond[:, None, :], (b, s, D_MODEL))
    cond_tok = cond_tok.reshape(bs, D_MODEL).T                           # (D_MODEL, B*S)
    sa_row = jnp.repeat(params["sqrt_acp"][timesteps], s)[None, :]       # (1, B*S)
    sb_row = jnp.repeat(params["sqrt_1macp"][timesteps], s)[None, :]     # (1, B*S)

    # ---- 3) patchify video into the feature-major, batch-folded layout ----
    # TODO(synk): at real SoRA shapes move this reorder into the kernel's DMA
    # path (memory_space=pl.ANY + in-VMEM reorder) to avoid the HBM round-trip.
    x = video.reshape(b, c, t, h2, p, w2, p)
    x = jnp.transpose(x, (1, 4, 6, 0, 2, 3, 5))            # (c, ph, pw, b, t, h2, w2)
    x_cm = x.reshape(K_AE, bs).astype(WEIGHT_DTYPE)        # (K_AE, B*S)

    # TODO(synk): at real SoRA shapes generate noise in-kernel with
    # pltpu.prng_seed + pltpu.stateful_normal to skip this HBM read.
    noise_cm = jax.random.normal(k_n, (C_LAT, bs), dtype=WEIGHT_DTYPE)

    # ---- 4) fused AE-encode + q_sample + predictor (single Pallas launch) ----
    # TODO(synk): video_mask (inpainting mask) is not consumed by this synthetic q_sample.
    lat_cm, noised_cm, out_cm = fused_ae_qsample_predictor(
        params, x_cm, noise_cm, cond_tok, sa_row, sb_row)

    def unfold(a):  # (C_LAT, B*S) -> (B, C_LAT, T, H/2, W/2)
        return jnp.transpose(a.reshape(C_LAT, b, t, h2, w2), (1, 0, 2, 3, 4))

    latents = unfold(lat_cm)
    noised_latents = unfold(noised_cm)
    model_output = unfold(out_cm)
    noise = unfold(noise_cm)

    return model_output, latents, noised_latents, timesteps, noise, video_mask


# ----------------------------------------------------------------------------
if __name__ == "__main__":
    root = jax.random.PRNGKey(0)
    k_param, k_video, k_ids, k_diff = jax.random.split(root, 4)

    params = init_params(k_param)

    video = jax.random.normal(k_video, (B, C_IN, T, H, W), dtype=jnp.float32)
    video_mask = jnp.ones((B, T, H // PATCH, W // PATCH), dtype=jnp.float32)
    prompt_ids = jax.random.randint(k_ids, (B, N_PROMPT, L_PROMPT), 0, VOCAB)
    prompt_mask = jnp.ones((B, N_PROMPT, L_PROMPT), dtype=jnp.int32)

    outs = sora_forward(params, video, video_mask, prompt_ids, prompt_mask, k_diff)
    outs = jax.block_until_ready(outs)

    model_output, latents, noised_latents, timesteps, noise, vmask = outs
    assert model_output.shape == (B, C_LAT, T, H // PATCH, W // PATCH)
    assert latents.shape == noised_latents.shape == noise.shape == model_output.shape
    assert timesteps.shape == (B,)
    assert bool(jnp.all(jnp.isfinite(model_output)))
    assert bool(jnp.all(jnp.isfinite(noised_latents)))
    print("KERNEL_OK")
</pallas_src>

<mosaic_0001>
module attributes {stable_mosaic.version = 11 : i64} {
  func.func @_fused_sora_kernel(%arg0: i32, %arg1: memref<12x512xf32, #tpu.memory_space<vmem>>, %arg2: memref<4x512xf32, #tpu.memory_space<vmem>>, %arg3: memref<1x512xf32, #tpu.memory_space<vmem>>, %arg4: memref<1x512xf32, #tpu.memory_space<vmem>>, %arg5: memref<64x512xf32, #tpu.memory_space<vmem>>, %arg6: memref<4x12xbf16, #tpu.memory_space<vmem>>, %arg7: memref<4x1xf32, #tpu.memory_space<vmem>>, %arg8: memref<64x4xbf16, #tpu.memory_space<vmem>>, %arg9: memref<64x1xf32, #tpu.memory_space<vmem>>, %arg10: memref<256x64xbf16, #tpu.memory_space<vmem>>, %arg11: memref<256x1xf32, #tpu.memory_space<vmem>>, %arg12: memref<64x256xbf16, #tpu.memory_space<vmem>>, %arg13: memref<64x1xf32, #tpu.memory_space<vmem>>, %arg14: memref<4x64xbf16, #tpu.memory_space<vmem>>, %arg15: memref<4x1xf32, #tpu.memory_space<vmem>>, %arg16: memref<4x512xf32, #tpu.memory_space<vmem>>, %arg17: memref<4x512xf32, #tpu.memory_space<vmem>>, %arg18: memref<4x512xf32, #tpu.memory_space<vmem>>) attributes {dimension_semantics = [#tpu.dimension_semantics<arbitrary>], iteration_bounds = array<i64: 1>, scalar_prefetch = 0 : i64, scratch_operands = 0 : i64, tpu.core_type = #tpu.core_type<tc>, window_params = [{pipeline_mode = #tpu.pipeline_mode<synchronous>, transform_indices = @transform_0, window_bounds = array<i64: 12, 512>}, {pipeline_mode = #tpu.pipeline_mode<synchronous>, transform_indices = @transform_1, window_bounds = array<i64: 4, 512>}, {pipeline_mode = #tpu.pipeline_mode<synchronous>, transform_indices = @transform_2, window_bounds = array<i64: 1, 512>}, {pipeline_mode = #tpu.pipeline_mode<synchronous>, transform_indices = @transform_3, window_bounds = array<i64: 1, 512>}, {pipeline_mode = #tpu.pipeline_mode<synchronous>, transform_indices = @transform_4, window_bounds = array<i64: 64, 512>}, {pipeline_mode = #tpu.pipeline_mode<synchronous>, transform_indices = @transform_5, window_bounds = array<i64: 4, 12>}, {pipeline_mode = #tpu.pipeline_mode<synchronous>, transform_indices = @transform_6, window_bounds = array<i64: 4, 1>}, {pipeline_mode = #tpu.pipeline_mode<synchronous>, transform_indices = @transform_7, window_bounds = array<i64: 64, 4>}, {pipeline_mode = #tpu.pipeline_mode<synchronous>, transform_indices = @transform_8, window_bounds = array<i64: 64, 1>}, {pipeline_mode = #tpu.pipeline_mode<synchronous>, transform_indices = @transform_9, window_bounds = array<i64: 256, 64>}, {pipeline_mode = #tpu.pipeline_mode<synchronous>, transform_indices = @transform_10, window_bounds = array<i64: 256, 1>}, {pipeline_mode = #tpu.pipeline_mode<synchronous>, transform_indices = @transform_11, window_bounds = array<i64: 64, 256>}, {pipeline_mode = #tpu.pipeline_mode<synchronous>, transform_indices = @transform_12, window_bounds = array<i64: 64, 1>}, {pipeline_mode = #tpu.pipeline_mode<synchronous>, transform_indices = @transform_13, window_bounds = array<i64: 4, 64>}, {pipeline_mode = #tpu.pipeline_mode<synchronous>, transform_indices = @transform_14, window_bounds = array<i64: 4, 1>}, {pipeline_mode = #tpu.pipeline_mode<synchronous>, transform_indices = @transform_15, window_bounds = array<i64: 4, 512>}, {pipeline_mode = #tpu.pipeline_mode<synchronous>, transform_indices = @transform_16, window_bounds = array<i64: 4, 512>}, {pipeline_mode = #tpu.pipeline_mode<synchronous>, transform_indices = @transform_17, window_bounds = array<i64: 4, 512>}]} {
    %c0 = arith.constant 0 : index
    %c0_0 = arith.constant 0 : index
    %0 = vector.load %arg1[%c0, %c0_0] : memref<12x512xf32, #tpu.memory_space<vmem>>, vector<12x512xf32>
    %1 = arith.truncf %0 : vector<12x512xf32> to vector<12x512xbf16>
    %c0_1 = arith.constant 0 : index
    %c0_2 = arith.constant 0 : index
    %2 = vector.load %arg6[%c0_1, %c0_2] : memref<4x12xbf16, #tpu.memory_space<vmem>>, vector<4x12xbf16>
    %cst = arith.constant dense<0.000000e+00> : vector<4x512xf32>
    %3 = tpu.matmul %2, %1, %cst {dimension_numbers = #tpu.dot_dimension_numbers<[1], [0], [0], [1], [0, 0, 1, 1], [], []>} : vector<4x12xbf16>, vector<12x512xbf16>, vector<4x512xf32> -> vector<4x512xf32>
    %c0_3 = arith.constant 0 : index
    %c0_4 = arith.constant 0 : index
    %4 = vector.load %arg7[%c0_3, %c0_4] : memref<4x1xf32, #tpu.memory_space<vmem>>, vector<4x1xf32>
    %5 = vector.broadcast %4 : vector<4x1xf32> to vector<4x512xf32>
    %6 = arith.addf %3, %5 : vector<4x512xf32>
    %c0_5 = arith.constant 0 : index
    %c0_6 = arith.constant 0 : index
    %7 = vector.load %arg16[%c0_5, %c0_6] : memref<4x512xf32, #tpu.memory_space<vmem>>, vector<4x512xf32>
    tpu.vector_store %arg16[%c0_5, %c0_6], %6 {strides = array<i32>} : memref<4x512xf32, #tpu.memory_space<vmem>>, vector<4x512xf32>,
    %c0_7 = arith.constant 0 : index
    %c0_8 = arith.constant 0 : index
    %8 = vector.load %arg3[%c0_7, %c0_8] : memref<1x512xf32, #tpu.memory_space<vmem>>, vector<1x512xf32>
    %9 = vector.broadcast %8 : vector<1x512xf32> to vector<4x512xf32>
    %10 = arith.mulf %9, %6 : vector<4x512xf32>
    %c0_9 = arith.constant 0 : index
    %c0_10 = arith.constant 0 : index
    %11 = vector.load %arg4[%c0_9, %c0_10] : memref<1x512xf32, #tpu.memory_space<vmem>>, vector<1x512xf32>
    %c0_11 = arith.constant 0 : index
    %c0_12 = arith.constant 0 : index
    %12 = vector.load %arg2[%c0_11, %c0_12] : memref<4x512xf32, #tpu.memory_space<vmem>>, vector<4x512xf32>
    %13 = vector.broadcast %11 : vector<1x512xf32> to vector<4x512xf32>
    %14 = arith.mulf %13, %12 : vector<4x512xf32>
    %15 = arith.addf %10, %14 : vector<4x512xf32>
    %c0_13 = arith.constant 0 : index
    %c0_14 = arith.constant 0 : index
    %16 = vector.load %arg17[%c0_13, %c0_14] : memref<4x512xf32, #tpu.memory_space<vmem>>, vector<4x512xf32>
    tpu.vector_store %arg17[%c0_13, %c0_14], %15 {strides = array<i32>} : memref<4x512xf32, #tpu.memory_space<vmem>>, vector<4x512xf32>,
    %c0_15 = arith.constant 0 : index
    %c0_16 = arith.constant 0 : index
    %17 = vector.load %arg8[%c0_15, %c0_16] : memref<64x4xbf16, #tpu.memory_space<vmem>>, vector<64x4xbf16>
    %18 = arith.truncf %15 : vector<4x512xf32> to vector<4x512xbf16>
    %cst_17 = arith.constant dense<0.000000e+00> : vector<64x512xf32>
    %19 = tpu.matmul %17, %18, %cst_17 {dimension_numbers = #tpu.dot_dimension_numbers<[1], [0], [0], [1], [0, 0, 1, 1], [], []>} : vector<64x4xbf16>, vector<4x512xbf16>, vector<64x512xf32> -> vector<64x512xf32>
    %c0_18 = arith.constant 0 : index
    %c0_19 = arith.constant 0 : index
    %20 = vector.load %arg9[%c0_18, %c0_19] : memref<64x1xf32, #tpu.memory_space<vmem>>, vector<64x1xf32>
    %21 = vector.broadcast %20 : vector<64x1xf32> to vector<64x512xf32>
    %22 = arith.addf %19, %21 : vector<64x512xf32>
    %c0_20 = arith.constant 0 : index
    %c0_21 = arith.constant 0 : index
    %23 = vector.load %arg5[%c0_20, %c0_21] : memref<64x512xf32, #tpu.memory_space<vmem>>, vector<64x512xf32>
    %24 = arith.addf %22, %23 : vector<64x512xf32>
    %c0_22 = arith.constant 0 : index
    %c0_23 = arith.constant 0 : index
    %25 = vector.load %arg10[%c0_22, %c0_23] : memref<256x64xbf16, #tpu.memory_space<vmem>>, vector<256x64xbf16>
    %26 = arith.truncf %24 : vector<64x512xf32> to vector<64x512xbf16>
    %cst_24 = arith.constant dense<0.000000e+00> : vector<256x512xf32>
    %27 = tpu.matmul %25, %26, %cst_24 {dimension_numbers = #tpu.dot_dimension_numbers<[1], [0], [0], [1], [0, 0, 1, 1], [], []>} : vector<256x64xbf16>, vector<64x512xbf16>, vector<256x512xf32> -> vector<256x512xf32>
    %c0_25 = arith.constant 0 : index
    %c0_26 = arith.constant 0 : index
    %28 = vector.load %arg11[%c0_25, %c0_26] : memref<256x1xf32, #tpu.memory_space<vmem>>, vector<256x1xf32>
    %29 = vector.broadcast %28 : vector<256x1xf32> to vector<256x512xf32>
    %30 = arith.addf %27, %29 : vector<256x512xf32>
    %31 = arith.mulf %30, %30 : vector<256x512xf32>
    %32 = arith.mulf %30, %31 : vector<256x512xf32>
    %cst_27 = arith.constant 4.471500e-02 : f32
    %33 = vector.broadcast %cst_27 : f32 to vector<256x512xf32>
    %34 = arith.mulf %33, %32 : vector<256x512xf32>
    %35 = arith.addf %30, %34 : vector<256x512xf32>
    %cst_28 = arith.constant 0.797884583 : f32
    %36 = vector.broadcast %cst_28 : f32 to vector<256x512xf32>
    %37 = arith.mulf %36, %35 : vector<256x512xf32>
    %38 = math.tanh %37 : vector<256x512xf32>
    %cst_29 = arith.constant 1.000000e+00 : f32
    %39 = vector.broadcast %cst_29 : f32 to vector<256x512xf32>
    %40 = arith.addf %39, %38 : vector<256x512xf32>
    %cst_30 = arith.constant 5.000000e-01 : f32
    %41 = vector.broadcast %cst_30 : f32 to vector<256x512xf32>
    %42 = arith.mulf %41, %40 : vector<256x512xf32>
    %43 = arith.mulf %30, %42 : vector<256x512xf32>
    %c0_31 = arith.constant 0 : index
    %c0_32 = arith.constant 0 : index
    %44 = vector.load %arg12[%c0_31, %c0_32] : memref<64x256xbf16, #tpu.memory_space<vmem>>, vector<64x256xbf16>
    %45 = arith.truncf %43 : vector<256x512xf32> to vector<256x512xbf16>
    %cst_33 = arith.constant dense<0.000000e+00> : vector<64x512xf32>
    %46 = tpu.matmul %44, %45, %cst_33 {dimension_numbers = #tpu.dot_dimension_numbers<[1], [0], [0], [1], [0, 0, 1, 1], [], []>} : vector<64x256xbf16>, vector<256x512xbf16>, vector<64x512xf32> -> vector<64x512xf32>
    %c0_34 = arith.constant 0 : index
    %c0_35 = arith.constant 0 : index
    %47 = vector.load %arg13[%c0_34, %c0_35] : memref<64x1xf32, #tpu.memory_space<vmem>>, vector<64x1xf32>
    %48 = vector.broadcast %47 : vector<64x1xf32> to vector<64x512xf32>
    %49 = arith.addf %46, %48 : vector<64x512xf32>
    %50 = arith.addf %24, %49 : vector<64x512xf32>
    %c0_36 = arith.constant 0 : index
    %c0_37 = arith.constant 0 : index
    %51 = vector.load %arg14[%c0_36, %c0_37] : memref<4x64xbf16, #tpu.memory_space<vmem>>, vector<4x64xbf16>
    %52 = arith.truncf %50 : vector<64x512xf32> to vector<64x512xbf16>
    %cst_38 = arith.constant dense<0.000000e+00> : vector<4x512xf32>
    %53 = tpu.matmul %51, %52, %cst_38 {dimension_numbers = #tpu.dot_dimension_numbers<[1], [0], [0], [1], [0, 0, 1, 1], [], []>} : vector<4x64xbf16>, vector<64x512xbf16>, vector<4x512xf32> -> vector<4x512xf32>
    %c0_39 = arith.constant 0 : index
    %c0_40 = arith.constant 0 : index
    %54 = vector.load %arg15[%c0_39, %c0_40] : memref<4x1xf32, #tpu.memory_space<vmem>>, vector<4x1xf32>
    %55 = vector.broadcast %54 : vector<4x1xf32> to vector<4x512xf32>
    %56 = arith.addf %53, %55 : vector<4x512xf32>
    %c0_41 = arith.constant 0 : index
    %c0_42 = arith.constant 0 : index
    %57 = vector.load %arg18[%c0_41, %c0_42] : memref<4x512xf32, #tpu.memory_space<vmem>>, vector<4x512xf32>
    tpu.vector_store %arg18[%c0_41, %c0_42], %56 {strides = array<i32>} : memref<4x512xf32, #tpu.memory_space<vmem>>, vector<4x512xf32>,
    return
  }
  func.func @transform_0(%arg0: i32) -> (i32, i32) {
    %c0_i32 = arith.constant 0 : i32
    %c0_i32_0 = arith.constant 0 : i32
    %c0_i32_1 = arith.constant 0 : i32
    return %c0_i32, %c0_i32_0 : i32, i32
  }
  func.func @transform_1(%arg0: i32) -> (i32, i32) {
    %c0_i32 = arith.constant 0 : i32
    %c0_i32_0 = arith.constant 0 : i32
    %c0_i32_1 = arith.constant 0 : i32
    return %c0_i32, %c0_i32_0 : i32, i32
  }
  func.func @transform_2(%arg0: i32) -> (i32, i32) {
    %c0_i32 = arith.constant 0 : i32
    %c0_i32_0 = arith.constant 0 : i32
    %c0_i32_1 = arith.constant 0 : i32
    return %c0_i32, %c0_i32_0 : i32, i32
  }
  func.func @transform_3(%arg0: i32) -> (i32, i32) {
    %c0_i32 = arith.constant 0 : i32
    %c0_i32_0 = arith.constant 0 : i32
    %c0_i32_1 = arith.constant 0 : i32
    return %c0_i32, %c0_i32_0 : i32, i32
  }
  func.func @transform_4(%arg0: i32) -> (i32, i32) {
    %c0_i32 = arith.constant 0 : i32
    %c0_i32_0 = arith.constant 0 : i32
    %c0_i32_1 = arith.constant 0 : i32
    return %c0_i32, %c0_i32_0 : i32, i32
  }
  func.func @transform_5(%arg0: i32) -> (i32, i32) {
    %c0_i32 = arith.constant 0 : i32
    %c0_i32_0 = arith.constant 0 : i32
    %c0_i32_1 = arith.constant 0 : i32
    return %c0_i32, %c0_i32_0 : i32, i32
  }
  func.func @transform_6(%arg0: i32) -> (i32, i32) {
    %c0_i32 = arith.constant 0 : i32
    %c0_i32_0 = arith.constant 0 : i32
    %c0_i32_1 = arith.constant 0 : i32
    return %c0_i32, %c0_i32_0 : i32, i32
  }
  func.func @transform_7(%arg0: i32) -> (i32, i32) {
    %c0_i32 = arith.constant 0 : i32
    %c0_i32_0 = arith.constant 0 : i32
    %c0_i32_1 = arith.constant 0 : i32
    return %c0_i32, %c0_i32_0 : i32, i32
  }
  func.func @transform_8(%arg0: i32) -> (i32, i32) {
    %c0_i32 = arith.constant 0 : i32
    %c0_i32_0 = arith.constant 0 : i32
    %c0_i32_1 = arith.constant 0 : i32
    return %c0_i32, %c0_i32_0 : i32, i32
  }
  func.func @transform_9(%arg0: i32) -> (i32, i32) {
    %c0_i32 = arith.constant 0 : i32
    %c0_i32_0 = arith.constant 0 : i32
    %c0_i32_1 = arith.constant 0 : i32
    return %c0_i32, %c0_i32_0 : i32, i32
  }
  func.func @transform_10(%arg0: i32) -> (i32, i32) {
    %c0_i32 = arith.constant 0 : i32
    %c0_i32_0 = arith.constant 0 : i32
    %c0_i32_1 = arith.constant 0 : i32
    return %c0_i32, %c0_i32_0 : i32, i32
  }
  func.func @transform_11(%arg0: i32) -> (i32, i32) {
    %c0_i32 = arith.constant 0 : i32
    %c0_i32_0 = arith.constant 0 : i32
    %c0_i32_1 = arith.constant 0 : i32
    return %c0_i32, %c0_i32_0 : i32, i32
  }
  func.func @transform_12(%arg0: i32) -> (i32, i32) {
    %c0_i32 = arith.constant 0 : i32
    %c0_i32_0 = arith.constant 0 : i32
    %c0_i32_1 = arith.constant 0 : i32
    return %c0_i32, %c0_i32_0 : i32, i32
  }
  func.func @transform_13(%arg0: i32) -> (i32, i32) {
    %c0_i32 = arith.constant 0 : i32
    %c0_i32_0 = arith.constant 0 : i32
    %c0_i32_1 = arith.constant 0 : i32
    return %c0_i32, %c0_i32_0 : i32, i32
  }
  func.func @transform_14(%arg0: i32) -> (i32, i32) {
    %c0_i32 = arith.constant 0 : i32
    %c0_i32_0 = arith.constant 0 : i32
    %c0_i32_1 = arith.constant 0 : i32
    return %c0_i32, %c0_i32_0 : i32, i32
  }
  func.func @transform_15(%arg0: i32) -> (i32, i32) {
    %c0_i32 = arith.constant 0 : i32
    %c0_i32_0 = arith.constant 0 : i32
    %c0_i32_1 = arith.constant 0 : i32
    return %c0_i32, %c0_i32_0 : i32, i32
  }
  func.func @transform_16(%arg0: i32) -> (i32, i32) {
    %c0_i32 = arith.constant 0 : i32
    %c0_i32_0 = arith.constant 0 : i32
    %c0_i32_1 = arith.constant 0 : i32
    return %c0_i32, %c0_i32_0 : i32, i32
  }
  func.func @transform_17(%arg0: i32) -> (i32, i32) {
    %c0_i32 = arith.constant 0 : i32
    %c0_i32_0 = arith.constant 0 : i32
    %c0_i32_1 = arith.constant 0 : i32
    return %c0_i32, %c0_i32_0 : i32, i32
  }
}

</mosaic_0001>

<bundles_post_ra>
// kernel: sora_forward.1
= control target key start
LH: loop header
LB: loop body
LE: loop exit
PB: predicated region body
PF: predicated region fallthrough
CT: control target
= control target key end

     0   :  { %v5655_v0 = vmov 0   ;;  %vm77_vm0 = vcmask 1045504   ;;  %vm73_vm1 = vcmask 97280   ;;  %vm349_vm2 = vcmask 1041408   ;;  %s5636_s6 = inlined_call_operand.vmem [shape: f32[4,1], index: 6, kind: input, shape index: {}]   ;;  %s5637_s0 = inlined_call_operand.vmem [shape: f32[12,512], index: 0, kind: input, shape index: {}]   ;;  %s5638_s8 = inlined_call_operand.vmem [shape: f32[64,1], index: 8, kind: input, shape index: {}]   ;;  %s5639_s5 = inlined_call_operand.vmem [shape: bf16[4,12], index: 5, kind: input, shape index: {}]   ;;  %s5640_s10 = inlined_call_operand.vmem [shape: f32[256,1], index: 10, kind: input, shape index: {}]   ;;  %s5641_s12 = inlined_call_operand.vmem [shape: f32[64,1], index: 12, kind: input, shape index: {}]   ;;  %s5642_s7 = inlined_call_operand.vmem [shape: bf16[64,4], index: 7, kind: input, shape index: {}]   ;;  %s5643_s14 = inlined_call_operand.vmem [shape: f32[4,1], index: 14, kind: input, shape index: {}]   ;;  %s5644_s3 = inlined_call_operand.vmem [shape: f32[1,512], index: 3, kind: input, shape index: {}]   ;;  %s5645_s1 = inlined_call_operand.vmem [shape: f32[4,512], index: 1, kind: input, shape index: {}]   ;;  %s5646_s2 = inlined_call_operand.vmem [shape: f32[1,512], index: 2, kind: input, shape index: {}]   ;;  %s5647_s15 = inlined_call_operand.vmem [shape: f32[4,512], index: 15, kind: output, shape index: {0}]   ;;  %s5648_s16 = inlined_call_operand.vmem [shape: f32[4,512], index: 16, kind: output, shape index: {1}]   ;;  %s5649_s9 = inlined_call_operand.vmem [shape: bf16[256,64], index: 9, kind: input, shape index: {}]   ;;  %s5650_s4 = inlined_call_operand.vmem [shape: f32[64,512], index: 4, kind: input, shape index: {}]   ;;  %s5651_s11 = inlined_call_operand.vmem [shape: bf16[64,256], index: 11, kind: input, shape index: {}]   ;;  %s5652_s13 = inlined_call_operand.vmem [shape: bf16[4,64], index: 13, kind: input, shape index: {}]   ;;  %s5653_s17 = inlined_call_operand.vmem [shape: f32[4,512], index: 17, kind: output, shape index: {2}]  }
   0x1   :  { %5759 = sst [smem:[#allocation164_spill]] %s5636_s6  ;;  %3024 = vset.pattern.permute.xlu0 %v5655_v0  ;;  %122 = vmatprep.mubr.bf16.mxu0 %v5655_v0  ;;  %v274_v14 = vld [vmem:[%s5638_s8 + $0x30] sm:$0xff]  ;;  %v66_v17 = vld [vmem:[%s5639_s5] sm:$0x3]  ;;  %v273_v18 = vld [vmem:[%s5638_s8 + $0x28] sm:$0xff]  ;;  %vm336_vm3 = vcmask 31744  }
   0x2   :  { %5760 = sst [smem:[#allocation165_spill]] %s5637_s0  ;;  %163 = vmatprep.mubr.bf16.mxu1 %v5655_v0  ;;  %3025 = vset.pattern.permute.xlu1 %v5655_v0  ;;  %v271_v19 = vld [vmem:[%s5638_s8 + $0x18] sm:$0xff]  ;;  %v269_v20 = vld [vmem:[%s5638_s8 + $0x8] sm:$0xff]  ;;  %v272_v41 = vld [vmem:[%s5638_s8 + $0x20] sm:$0xff]  ;;  %vm892_vm4 = vcmask 523264  }
   0x3   :  { %s5761_s26 = sld [smem:[#allocation164_spill]]  ;;  %v635_v21 = vld [vmem:[%s5640_s10 + $0x78] sm:$0xff]  ;;  %v633_v22 = vld [vmem:[%s5640_s10 + $0x68] sm:$0xff]  ;;  %v270_v43 = vld [vmem:[%s5638_s8 + $0x10] sm:$0xff] }
   0x4   :  { %s5762_s29 = sld [smem:[#allocation165_spill]]  ;;  %v631_v23 = vld [vmem:[%s5640_s10 + $0x58] sm:$0xff]  ;;  %v629_v24 = vld [vmem:[%s5640_s10 + $0x48] sm:$0xff]  ;;  %v268_v44 = vld [vmem:[%s5638_s8] sm:$0xff] }
   0x5   :  { %v627_v25 = vld [vmem:[%s5640_s10 + $0x38] sm:$0xff]  ;;  %v625_v26 = vld [vmem:[%s5640_s10 + $0x28] sm:$0xff]  ;;  %v634_v45 = vld [vmem:[%s5640_s10 + $0x70] sm:$0xff] }
   0x6   :  { %v623_v27 = vld [vmem:[%s5640_s10 + $0x18] sm:$0xff]  ;;  %v621_v28 = vld [vmem:[%s5640_s10 + $0x8] sm:$0xff]  ;;  %v632_v46 = vld [vmem:[%s5640_s10 + $0x60] sm:$0xff] }
   0x7   :  { %v651_v29 = vld [vmem:[%s5640_s10 + $0xf8] sm:$0xff]  ;;  %v649_v30 = vld [vmem:[%s5640_s10 + $0xe8] sm:$0xff]  ;;  %v630_v47 = vld [vmem:[%s5640_s10 + $0x50] sm:$0xff] }
   0x8   :  { %v647_v31 = vld [vmem:[%s5640_s10 + $0xd8] sm:$0xff]  ;;  %v645_v32 = vld [vmem:[%s5640_s10 + $0xc8] sm:$0xff]  ;;  %v628_v48 = vld [vmem:[%s5640_s10 + $0x40] sm:$0xff] }
   0x9   :  { %v67_v1 = vld [vmem:[%s5761_s26] sm:$0xf]  ;;  %v643_v33 = vld [vmem:[%s5640_s10 + $0xb8] sm:$0xff]  ;;  %v641_v34 = vld [vmem:[%s5640_s10 + $0xa8] sm:$0xff] }
   0xa   :  { %v55_v2 = vld [vmem:[%s5762_s29 + $0x8] sm:$0xff]  ;;  %70 = vperm.xlu0 %3024, %v67_v1   ;;  %v57_v5 = vld [vmem:[%s5762_s29 + $0x18] sm:$0xff]  ;;  %v54_v7 = vld [vmem:[%s5762_s29] sm:$0xff] }
   0xb   :  { %v59_v3 = vld [vmem:[%s5762_s29 + $0x28] sm:$0xf]  ;;  %v61_v6 = vld [vmem:[%s5762_s29 + $0x38] sm:$0xf]  ;;  %v58_v9 = vld [vmem:[%s5762_s29 + $0x20] sm:$0xf] }
   0xc   :  { %v63_v4 = vpack.c.bf16 %v59_v3, %v55_v2  ;;  %v65_v8 = vpack.c.bf16 %v61_v6, %v57_v5  ;;  %v56_v10 = vld [vmem:[%s5762_s29 + $0x10] sm:$0xff]  ;;  %v62_v12 = vpack.c.bf16 %v58_v9, %v54_v7  ;;  %v639_v35 = vld [vmem:[%s5640_s10 + $0x98] sm:$0xff]  ;;  %v637_v36 = vld [vmem:[%s5640_s10 + $0x88] sm:$0xff]  ;;  %v184_v3 = vlaneseq }
   0xd   :  { %v60_v11 = vld [vmem:[%s5762_s29 + $0x30] sm:$0xf]  ;;  %v2558_v37 = vld [vmem:[%s5641_s12 + $0x38] sm:$0xff]  ;;  %v2556_v38 = vld [vmem:[%s5641_s12 + $0x28] sm:$0xff] }
   0xe   :  { %2947 = vmatprep.subr.msk.bf16.mxu0 %vm77_vm0, %v63_v4  ;;  %v64_v13 = vpack.c.bf16 %v60_v11, %v56_v10  ;;  %2949 = vmatprep.subr.msk.bf16.mxu1 %vm77_vm0, %v65_v8  ;;  %v79_v15 = vsel %vm77_vm0, %v62_v12, 0  ;;  %v275_v39 = vld [vmem:[%s5638_s8 + $0x38] sm:$0xff]  ;;  %v2552_v42 = vld [vmem:[%s5641_s12 + $0x8] sm:$0xff]  ;;  %v626_v49 = vld [vmem:[%s5640_s10 + $0x30] sm:$0xff]  ;;  %v185_v4 = vshrl.u32 %v184_v3, 7 }
   0xf   :  { %308 = vperm.xlu0 %3024, %v274_v14   ;;  %105 = vmatpush1.bf16.msra.mxu0 %v79_v15  ;;  %v2554_v40 = vld [vmem:[%s5641_s12 + $0x18] sm:$0xff]  ;;  %v624_v50 = vld [vmem:[%s5640_s10 + $0x20] sm:$0xff]  ;;  %v622_v51 = vld [vmem:[%s5640_s10 + $0x10] sm:$0xff] }
  0x10   :  { %v85_v16 = vsel %vm77_vm0, %v64_v13, 0  ;;  %313 = vperm.xlu1 %3025, %v275_v39   ;;  %v620_v52 = vld [vmem:[%s5640_s10] sm:$0xff]  ;;  %v650_v53 = vld [vmem:[%s5640_s10 + $0xf0] sm:$0xff]  ;;  %v186_v5 = vsub.s32 0, %v185_v4  ;;  %v194_v7 = vsub.s32 2, %v185_v4  ;;  %v190_v8 = vsub.s32 1, %v185_v4 }
  0x11   :  { %146 = vmatpush1.bf16.msra.mxu1 %v85_v16  ;;  %v648_v54 = vld [vmem:[%s5640_s10 + $0xe0] sm:$0xff]  ;;  %v646_v55 = vld [vmem:[%s5640_s10 + $0xd0] sm:$0xff]  ;;  %v198_v12 = vsub.s32 3, %v185_v4  ;;  %v210_v13 = vld [vmem:[%s5645_s1 + $0x8] sm:$0xff] }
  0x12   :  { %2948 = vmatmul.mubr.msk.bf16.vlgmr.msra.gmra.mxu0 %vm73_vm1, %v66_v17  ;;  %v644_v56 = vld [vmem:[%s5640_s10 + $0xc0] sm:$0xff]  ;;  %v642_v57 = vld [vmem:[%s5640_s10 + $0xb0] sm:$0xff] }
  0x13   :  { %303 = vperm.xlu0 %3024, %v273_v18   ;;  %394 = vmatprep.mubr.bf16.mxu0 %v5655_v0  ;;  %v640_v58 = vld [vmem:[%s5640_s10 + $0xa0] sm:$0xff]  ;;  %v638_v59 = vld [vmem:[%s5640_s10 + $0x90] sm:$0xff] }
  0x14   :  { %2950 = vmatmul.mubr.msk.bf16.vlgmr.msra.gmra.mxu1 %vm73_vm1, %v66_v17  ;;  %298 = vperm.xlu1 %3025, %v272_v41   ;;  %v636_v60 = vld [vmem:[%s5640_s10 + $0x80] sm:$0xff]  ;;  %v2557_v61 = vld [vmem:[%s5641_s12 + $0x30] sm:$0xff] }
  0x15   :  { %467 = vmatprep.mubr.bf16.mxu1 %v5655_v0  ;;  %v2555_v62 = vld [vmem:[%s5641_s12 + $0x20] sm:$0xff]  ;;  %v2553_v63 = vld [vmem:[%s5641_s12 + $0x10] sm:$0xff] }
  0x16   :  { %v2551_v1 = vld [vmem:[%s5641_s12] sm:$0xff] }
  0x17   :  { %293 = vperm.xlu0 %3024, %v271_v19   ;;  %v2834_v2 = vld [vmem:[%s5643_s14] sm:$0xf] }
  0x18   :  { %288 = vperm.xlu1 %3025, %v270_v43   ;;  %v208_v6 = vld [vmem:[%s5644_s3] sm:$0xf] }
  0x19   :  { %v209_v9 = vld [vmem:[%s5645_s1] sm:$0xff]  ;;  %v215_v11 = vrot.slane %v208_v6, %v186_v5  ;;  %v223_v14 = vrot.slane %v208_v6, %v194_v7  ;;  %v219_v15 = vrot.slane %v208_v6, %v190_v8 }
  0x1a   :  { %v182_v10 = vld [vmem:[%s5646_s2] sm:$0xf]  ;;  %v234_v16 = vcombine.high %v209_v9, %v209_v9 }
  0x1b   :  { %283 = vperm.xlu0 %3024, %v269_v20   ;;  %v187_v18 = vrot.slane %v182_v10, %v186_v5  ;;  %v195_v19 = vrot.slane %v182_v10, %v194_v7 }
  0x1c   :  { %278 = vperm.xlu1 %3025, %v268_v44  }
  0x1f   :  { %729 = vperm.xlu0 %3024, %v635_v21   ;;  %v238_v21 = vmul.f32 %v215_v11, %v209_v9 }
  0x20   :  { %724 = vperm.xlu1 %3025, %v634_v45  }
  0x23   :  { %719 = vperm.xlu0 %3024, %v633_v22  }
  0x24   :  { %714 = vperm.xlu1 %3025, %v632_v46  }
  0x27   :  { %709 = vperm.xlu0 %3024, %v631_v23   ;;  %v227_v23 = vrot.slane %v208_v6, %v198_v12 }
  0x28   :  { %704 = vperm.xlu1 %3025, %v630_v47  }
  0x2b   :  { %699 = vperm.xlu0 %3024, %v629_v24   ;;  %v235_v24 = vcombine.high %v210_v13, %v210_v13 }
  0x2c   :  { %694 = vperm.xlu1 %3025, %v628_v48  }
  0x2f   :  { %689 = vperm.xlu0 %3024, %v627_v25  }
  0x30   :  { %684 = vperm.xlu1 %3025, %v626_v49  }
  0x33   :  { %679 = vperm.xlu0 %3024, %v625_v26  }
  0x34   :  { %674 = vperm.xlu1 %3025, %v624_v50  }
  0x37   :  { %669 = vperm.xlu0 %3024, %v623_v27   ;;  %v240_v27 = vmul.f32 %v223_v14, %v210_v13 }
  0x38   :  { %664 = vperm.xlu1 %3025, %v622_v51  }
  0x3b   :  { %659 = vperm.xlu0 %3024, %v621_v28   ;;  %v191_v28 = vrot.slane %v182_v10, %v190_v8 }
  0x3c   :  { %654 = vperm.xlu1 %3025, %v620_v52  }
  0x3f   :  { %809 = vperm.xlu0 %3024, %v651_v29  }
  0x40   :  { %804 = vperm.xlu1 %3025, %v650_v53  }
  0x43   :  { %799 = vperm.xlu0 %3024, %v649_v30   ;;  %v239_v30 = vmul.f32 %v234_v16, %v219_v15 }
  0x44   :  { %794 = vperm.xlu1 %3025, %v648_v54  }
  0x47   :  { %789 = vperm.xlu0 %3024, %v647_v31  }
  0x48   :  { %784 = vperm.xlu1 %3025, %v646_v55  }
  0x4b   :  { %779 = vperm.xlu0 %3024, %v645_v32   ;;  %v199_v32 = vrot.slane %v182_v10, %v198_v12 }
  0x4c   :  { %774 = vperm.xlu1 %3025, %v644_v56  }
  0x4f   :  { %769 = vperm.xlu0 %3024, %v643_v33  }
  0x50   :  { %764 = vperm.xlu1 %3025, %v642_v57   ;;  %v3028_v57 = vld [vmem:[%s5642_s7] sm:$0xff]  }
  0x53   :  { %759 = vperm.xlu0 %3024, %v641_v34  }
  0x54   :  { %754 = vperm.xlu1 %3025, %v640_v58  }
  0x57   :  { %749 = vperm.xlu0 %3024, %v639_v35  }
  0x58   :  { %744 = vperm.xlu1 %3025, %v638_v59   ;;  %v3029_v59 = vld [vmem:[%s5642_s7 + $0x8] sm:$0xff]  }
  0x5b   :  { %739 = vperm.xlu0 %3024, %v637_v36  }
  0x5c   :  { %734 = vperm.xlu1 %3025, %v636_v60   ;;  %v3030_v60 = vld [vmem:[%s5642_s7 + $0x10] sm:$0xff]  }
  0x5f   :  { %2596 = vperm.xlu0 %3024, %v2558_v37   ;;  %v241_v37 = vmul.f32 %v235_v24, %v227_v23 }
  0x60   :  { %2591 = vperm.xlu1 %3025, %v2557_v61   ;;  %v3031_v61 = vld [vmem:[%s5642_s7 + $0x18] sm:$0xff]  }
  0x63   :  { %2586 = vperm.xlu0 %3024, %v2556_v38  }
  0x64   :  { %2581 = vperm.xlu1 %3025, %v2555_v62  }
  0x67   :  { %2576 = vperm.xlu0 %3024, %v2554_v40  }
  0x68   :  { %2571 = vperm.xlu1 %3025, %v2553_v63  }
  0x6b   :  { %2566 = vperm.xlu0 %3024, %v2552_v42  }
  0x6c   :  { %2561 = vperm.xlu1 %3025, %v2551_v1  }
  0x70   :  { %2837 = vperm.xlu1 %3025, %v2834_v2  }
  0x85   :  { %v71_v17 = vpop.permute.xlu0 %70 }
  0x8a   :  { %v3652_v5 = vpop.permute.xlu0 %308 }
  0x8b   :  { %v3654_v7 = vpop.permute.xlu1 %313 }
  0x8e   :  { %v304_v13 = vpop.permute.xlu0 %303 }
  0x8f   :  { %v3658_v15 = vpop.permute.xlu1 %298 }
  0x93   :  { %v3662_v23 = vpop.permute.xlu1 %288 }
  0xd2   :  { %v124_v20 = vpop.f32.mrf.mxu0 }
  0xd3   :  { %v125_v25 = vadd.f32 %v124_v20, %v71_v17 }
  0xd4   :  { %v165_v22 = vpop.f32.mrf.mxu1  ;;  %v126_v29 = vpop.f32.mrf.mxu0 }
  0xd5   :  { %v166_v26 = vadd.f32 %v165_v22, %v71_v17  ;;  %v204_v33 = vmul.f32 %v187_v18, %v125_v25  ;;  %v127_v35 = vadd.f32 %v126_v29, %v71_v17 }
  0xd6   :  { %v167_v31 = vpop.f32.mrf.mxu1  ;;  %v128_v38 = vpop.f32.mrf.mxu0 }
  0xd7   :  { %v206_v34 = vmul.f32 %v195_v19, %v166_v26  ;;  %v168_v36 = vadd.f32 %v167_v31, %v71_v17  ;;  %v242_v40 = vadd.f32 %v238_v21, %v204_v33  ;;  %v176_v42 = vcombine.low %v125_v25, %v127_v35  ;;  %v294_v21 = vpop.permute.xlu0 %293  ;;  %v3666_v31 = vpop.permute.xlu1 %278 }
  0xd8   :  { %v169_v39 = vpop.f32.mrf.mxu1  ;;  %v205_v43 = vmul.f32 %v191_v28, %v127_v35  ;;  %v129_v46 = vpop.f32.mrf.mxu0 }
  0xd9   :  { %v244_v41 = vadd.f32 %v240_v27, %v206_v34  ;;  %v177_v44 = vcombine.low %v166_v26, %v168_v36  ;;  %v207_v45 = vmul.f32 %v199_v32, %v168_v36  ;;  %180 = vst [vmem:[%s5647_s15] sm:$0xff] %v176_v42  ;;  %v264_v49 = vpack.c.bf16 %v242_v40, %v242_v40 }
  0xda   :  { %v170_v47 = vpop.f32.mrf.mxu1  ;;  %v243_v48 = vadd.f32 %v239_v30, %v205_v43 }
  0xdb   :  { %181 = vst [vmem:[%s5647_s15 + $0x8] sm:$0xff] %v177_v44  ;;  %v245_v50 = vadd.f32 %v241_v37, %v207_v45  ;;  %v266_v51 = vpack.c.bf16 %v244_v41, %v244_v41  ;;  %v351_v56 = vsel %vm349_vm2, %v264_v49, 0  ;;  %v3664_v29 = vpop.permute.xlu0 %283 }
  0xdc   :  { %v250_v52 = vcombine.low %v242_v40, %v243_v48  ;;  %v265_v53 = vpack.c.bf16 %v243_v48, %v243_v48 }
  0xdd   :  { %v251_v54 = vcombine.low %v244_v41, %v245_v50  ;;  %v267_v55 = vpack.c.bf16 %v245_v50, %v245_v50  ;;  %v357_v58 = vsel %vm349_vm2, %v266_v51, 0  ;;  %v529_v50 = vld [vmem:[%s5650_s4 + $0xa8] sm:$0xff]  ;;  %v531_v51 = vld [vmem:[%s5650_s4 + $0xb8] sm:$0xff] }
  0xde   :  { %254 = vst [vmem:[%s5648_s16] sm:$0xff] %v250_v52  ;;  %2955 = vmatprep.subr.msk.bf16.mxu0 %vm349_vm2, %v265_v53 }
  0xdf   :  { %255 = vst [vmem:[%s5648_s16 + $0x8] sm:$0xff] %v251_v54  ;;  %2960 = vmatprep.subr.msk.bf16.mxu1 %vm349_vm2, %v267_v55  ;;  %377 = vmatpush1.bf16.msra.mxu0 %v351_v56  ;;  %v536_v54 = vld [vmem:[%s5650_s4 + $0xe0] sm:$0xff] }
  0xe0   :  { %450 = vmatpush1.bf16.msra.mxu1 %v357_v58  ;;  %v533_v58 = vld [vmem:[%s5650_s4 + $0xc8] sm:$0xff] }
  0xe2   :  { %2956 = vmatmul.mubr.msk.bf16.vlgmr.msra.gmra.mxu0 %vm336_vm3, %v3028_v57 }
  0xe3   :  { %2961 = vmatmul.mubr.msk.bf16.vlgmr.msra.gmra.mxu1 %vm336_vm3, %v3028_v57  ;;  %404 = vmatprep.mubr.bf16.mxu0 %v5655_v0 }
  0xe4   :  { %477 = vmatprep.mubr.bf16.mxu1 %v5655_v0 }
  0xea   :  { %2957 = vmatmul.mubr.msk.bf16.gmra.mxu0 %vm336_vm3, %v3029_v59 }
  0xeb   :  { %2962 = vmatmul.mubr.msk.bf16.gmra.mxu1 %vm336_vm3, %v3029_v59  ;;  %414 = vmatprep.mubr.bf16.mxu0 %v5655_v0 }
  0xec   :  { %487 = vmatprep.mubr.bf16.mxu1 %v5655_v0 }
  0xf2   :  { %2958 = vmatmul.mubr.msk.bf16.gmra.mxu0 %vm336_vm3, %v3030_v60 }
  0xf3   :  { %2963 = vmatmul.mubr.msk.bf16.gmra.mxu1 %vm336_vm3, %v3030_v60  ;;  %424 = vmatprep.mubr.bf16.mxu0 %v5655_v0 }
  0xf4   :  { %497 = vmatprep.mubr.bf16.mxu1 %v5655_v0 }
  0xfa   :  { %2959 = vmatmul.mubr.msk.bf16.gmra.mxu0 %vm336_vm3, %v3031_v61 }
  0xfb   :  { %2964 = vmatmul.mubr.msk.bf16.gmra.mxu1 %vm336_vm3, %v3031_v61  ;;  %973 = vmatprep.mubr.bf16.mxu0 %v5655_v0  ;;  %v538_v61 = vld [vmem:[%s5650_s4 + $0xf0] sm:$0xff] }
  0xfc   :  { %1166 = vmatprep.mubr.bf16.mxu1 %v5655_v0 }
 0x1a2   :  { %v3646_v62 = vpop.f32.mrf.mxu0 }
 0x1a3   :  { %v3648_v63 = vpop.f32.mrf.mxu1 }
 0x1a4   :  { %v398_v1 = vpop.f32.mrf.mxu0 }
 0x1a5   :  { %v471_v2 = vpop.f32.mrf.mxu1  ;;  %v3669_v33 = vadd.f32 %v398_v1, %v3666_v31 }
 0x1a6   :  { %v400_v3 = vpop.f32.mrf.mxu0  ;;  %v3672_v34 = vadd.f32 %v471_v2, %v3666_v31  ;;  %v537_v2 = vld [vmem:[%s5650_s4 + $0xe8] sm:$0xff] }
 0x1a7   :  { %v3650_v4 = vpop.f32.mrf.mxu1  ;;  %v3675_v35 = vadd.f32 %v400_v3, %v3664_v29 }
 0x1a8   :  { %v402_v6 = vpop.f32.mrf.mxu0 }
 0x1a9   :  { %v475_v8 = vpop.f32.mrf.mxu1  ;;  %v3678_v36 = vadd.f32 %v402_v6, %v3664_v29 }
 0x1aa   :  { %v406_v9 = vpop.f32.mrf.mxu0  ;;  %v3681_v38 = vadd.f32 %v475_v8, %v3664_v29  ;;  %v532_v8 = vld [vmem:[%s5650_s4 + $0xc0] sm:$0xff] }
 0x1ab   :  { %v3656_v10 = vpop.f32.mrf.mxu1  ;;  %v3684_v39 = vadd.f32 %v406_v9, %v3662_v23 }
 0x1ac   :  { %v408_v11 = vpop.f32.mrf.mxu0 }
 0x1ad   :  { %v481_v12 = vpop.f32.mrf.mxu1  ;;  %v3687_v40 = vadd.f32 %v408_v11, %v3662_v23  ;;  %v535_v11 = vld [vmem:[%s5650_s4 + $0xd8] sm:$0xff] }
 0x1ae   :  { %v410_v14 = vpop.f32.mrf.mxu0  ;;  %v3690_v41 = vadd.f32 %v481_v12, %v3662_v23 }
 0x1af   :  { %v483_v16 = vpop.f32.mrf.mxu1  ;;  %v3692_v43 = vadd.f32 %v410_v14, %v294_v21 }
 0x1b0   :  { %v412_v17 = vpop.f32.mrf.mxu0  ;;  %v3694_v44 = vadd.f32 %v483_v16, %v294_v21  ;;  %v539_v16 = vld [vmem:[%s5650_s4 + $0xf8] sm:$0xff] }
 0x1b1   :  { %v485_v18 = vpop.f32.mrf.mxu1  ;;  %v413_v45 = vadd.f32 %v412_v17, %v294_v21  ;;  %v525_v17 = vld [vmem:[%s5650_s4 + $0x88] sm:$0xff] }
 0x1b2   :  { %v416_v19 = vpop.f32.mrf.mxu0  ;;  %v3696_v46 = vadd.f32 %v485_v18, %v294_v21 }
 0x1b3   :  { %v3660_v20 = vpop.f32.mrf.mxu1  ;;  %v3699_v48 = vadd.f32 %v416_v19, %v3658_v15 }
 0x1b4   :  { %v418_v22 = vpop.f32.mrf.mxu0 }
 0x1b5   :  { %v491_v24 = vpop.f32.mrf.mxu1  ;;  %v419_v3 = vadd.f32 %v418_v22, %v3658_v15 }
 0x1b6   :  { %v420_v25 = vpop.f32.mrf.mxu0  ;;  %v492_v6 = vadd.f32 %v491_v24, %v3658_v15  ;;  %v527_v24 = vld [vmem:[%s5650_s4 + $0x98] sm:$0xff] }
 0x1b7   :  { %v493_v26 = vpop.f32.mrf.mxu1  ;;  %v421_v18 = vadd.f32 %v420_v25, %v304_v13 }
 0x1b8   :  { %v422_v27 = vpop.f32.mrf.mxu0  ;;  %v494_v19 = vadd.f32 %v493_v26, %v304_v13 }
 0x1b9   :  { %v495_v28 = vpop.f32.mrf.mxu1  ;;  %v423_v49 = vadd.f32 %v422_v27, %v304_v13  ;;  %v528_v27 = vld [vmem:[%s5650_s4 + $0xa0] sm:$0xff] }
 0x1ba   :  { %v426_v30 = vpop.f32.mrf.mxu0  ;;  %v496_v56 = vadd.f32 %v495_v28, %v304_v13 }
 0x1bb   :  { %v499_v32 = vpop.f32.mrf.mxu1  ;;  %v427_v57 = vadd.f32 %v426_v30, %v3652_v5  ;;  %v3752_v28 = vadd.f32 %v529_v50, %v423_v49  ;;  %v530_v30 = vld [vmem:[%s5650_s4 + $0xb0] sm:$0xff]  ;;  %v523_v49 = vld [vmem:[%s5650_s4 + $0x78] sm:$0xff]  ;;  %v524_v50 = vld [vmem:[%s5650_s4 + $0x80] sm:$0xff] }
 0x1bc   :  { %v428_v37 = vpop.f32.mrf.mxu0  ;;  %v500_v9 = vadd.f32 %v499_v32, %v3652_v5  ;;  %v3766_v32 = vadd.f32 %v531_v51, %v496_v56  ;;  %v526_v56 = vld [vmem:[%s5650_s4 + $0x90] sm:$0xff] }
 0x1bd   :  { %v501_v42 = vpop.f32.mrf.mxu1  ;;  %v429_v52 = vadd.f32 %v428_v37, %v3652_v5  ;;  %5764 = vst [vmem:[#allocation3_spill] sm:$0xff] %v3752_v28  ;;  %v3768_v37 = vadd.f32 %v532_v8, %v427_v57  ;;  %v3794_v57 = vadd.f32 %v527_v24, %v492_v6  ;;  %v513_v6 = vld [vmem:[%s5650_s4 + $0x28] sm:$0xff]  ;;  %v522_v8 = vld [vmem:[%s5650_s4 + $0x70] sm:$0xff]  ;;  %v397_v24 = vadd.f32 %v3646_v62, %v3666_v31 }
 0x1be   :  { %v430_v47 = vpop.f32.mrf.mxu0  ;;  %v502_v59 = vadd.f32 %v501_v42, %v3652_v5  ;;  %v534_v5 = vld [vmem:[%s5650_s4 + $0xd0] sm:$0xff]  ;;  %5768 = vst [vmem:[#allocation7_spill] sm:$0xff] %v3766_v32  ;;  %v470_v62 = vadd.f32 %v3648_v63, %v3666_v31 }
 0x1bf   :  { %v431_v53 = vadd.f32 %v430_v47, %v3654_v7  ;;  %v503_v55 = vpop.f32.mrf.mxu1  ;;  %v3754_v25 = vadd.f32 %v533_v58, %v429_v52  ;;  %5769 = vst [vmem:[#allocation8_spill] sm:$0xff] %v3768_v37  ;;  %v490_v52 = vadd.f32 %v3660_v20, %v3658_v15  ;;  %v3784_v51 = vadd.f32 %v534_v5, %v500_v9  ;;  %v511_v5 = vld [vmem:[%s5650_s4 + $0x18] sm:$0xff] }
 0x1c0   :  { %v504_v60 = vadd.f32 %v503_v55, %v3654_v7  ;;  %v432_v1 = vpop.f32.mrf.mxu0  ;;  %v3770_v42 = vadd.f32 %v535_v11, %v502_v59  ;;  %v517_v55 = vld [vmem:[%s5650_s4 + $0x48] sm:$0xff]  ;;  %5774 = vst [vmem:[#allocation13_spill] sm:$0xff] %v3794_v57  ;;  %v3796_v58 = vadd.f32 %v528_v27, %v421_v18  ;;  %v519_v59 = vld [vmem:[%s5650_s4 + $0x58] sm:$0xff]  ;;  %v3826_v9 = vadd.f32 %v524_v50, %v3699_v48  ;;  %v514_v27 = vld [vmem:[%s5650_s4 + $0x30] sm:$0xff] }
 0x1c1   :  { %v433_v12 = vadd.f32 %v432_v1, %v3654_v7  ;;  %v505_v14 = vpop.f32.mrf.mxu1  ;;  %v3743_v21 = vadd.f32 %v536_v54, %v431_v53  ;;  %5765 = vst [vmem:[#allocation4_spill] sm:$0xff] %v3754_v25  ;;  %v3782_v53 = vadd.f32 %v525_v17, %v419_v3  ;;  %5773 = vst [vmem:[#allocation12_spill] sm:$0xff] %v3784_v51  ;;  %v509_v17 = vld [vmem:[%s5650_s4 + $0x8] sm:$0xff] }
 0x1c2   :  { %v506_v22 = vadd.f32 %v505_v14, %v3654_v7  ;;  %v3756_v13 = vadd.f32 %v538_v61, %v504_v60  ;;  %v521_v7 = vld [vmem:[%s5650_s4 + $0x68] sm:$0xff]  ;;  %5770 = vst [vmem:[#allocation9_spill] sm:$0xff] %v3770_v42  ;;  %5775 = vst [vmem:[#allocation14_spill] sm:$0xff] %v3796_v58  ;;  %v520_v60 = vld [vmem:[%s5650_s4 + $0x60] sm:$0xff]  ;;  %v3810_v1 = vadd.f32 %v530_v30, %v494_v19 }
 0x1c3   :  { %5763 = vst [vmem:[#allocation2_spill] sm:$0xff] %v3743_v21  ;;  %v3758_v26 = vadd.f32 %v537_v2, %v433_v12  ;;  %5772 = vst [vmem:[#allocation11_spill] sm:$0xff] %v3782_v53  ;;  %v616_v15 = vpack.c.bf16 %v3743_v21, %v3768_v37  ;;  %v3808_v61 = vadd.f32 %v521_v7, %v413_v45  ;;  %v515_v12 = vld [vmem:[%s5650_s4 + $0x38] sm:$0xff]  ;;  %v516_v14 = vld [vmem:[%s5650_s4 + $0x40] sm:$0xff] }
 0x1c4   :  { %5766 = vst [vmem:[#allocation5_spill] sm:$0xff] %v3756_v13  ;;  %v3772_v47 = vadd.f32 %v539_v16, %v506_v22  ;;  %5777 = vst [vmem:[#allocation16_spill] sm:$0xff] %v3810_v1  ;;  %v618_v2 = vpack.c.bf16 %v3756_v13, %v3784_v51  ;;  %v613_v3 = vpack.c.bf16 %v3752_v28, %v3782_v53  ;;  %v518_v19 = vld [vmem:[%s5650_s4 + $0x50] sm:$0xff]  ;;  %v508_v30 = vld [vmem:[%s5650_s4] sm:$0xff] }
 0x1c5   :  { %5767 = vst [vmem:[#allocation6_spill] sm:$0xff] %v3758_v26  ;;  %v617_v54 = vpack.c.bf16 %v3758_v26, %v3754_v25  ;;  %5776 = vst [vmem:[#allocation15_spill] sm:$0xff] %v3808_v61  ;;  %v3823_v45 = vadd.f32 %v523_v49, %v3696_v46  ;;  %v615_v11 = vpack.c.bf16 %v3766_v32, %v3794_v57 }
 0x1c6   :  { %5771 = vst [vmem:[#allocation10_spill] sm:$0xff] %v3772_v47  ;;  %v619_v20 = vpack.c.bf16 %v3772_v47, %v3770_v42  ;;  %5779 = vst [vmem:[#allocation18_spill] sm:$0xff] %v3826_v9  ;;  %v480_v46 = vadd.f32 %v3656_v10, %v3662_v23  ;;  %v3839_v16 = vadd.f32 %v517_v55, %v3687_v40 }
 0x1c7   :  { %949 = vmatprep.subr.bf16.mxu0 %v617_v54  ;;  %5778 = vst [vmem:[#allocation17_spill] sm:$0xff] %v3823_v45  ;;  %v3841_v48 = vadd.f32 %v526_v56, %v490_v52  ;;  %v474_v18 = vadd.f32 %v3650_v4, %v3664_v29  ;;  %v3852_v10 = vadd.f32 %v519_v59, %v3690_v41  ;;  %v512_v4 = vld [vmem:[%s5650_s4 + $0x20] sm:$0xff]  ;;  %v3033_v59 = vld [vmem:[%s5649_s9 + $0x8] sm:$0xff]  }
 0x1c8   :  { %1142 = vmatprep.subr.bf16.mxu1 %v619_v20  ;;  %950 = vmatpush1.bf16.msra.mxu0 %v616_v15  ;;  %5780 = vst [vmem:[#allocation19_spill] sm:$0xff] %v3839_v16  ;;  %v3855_v23 = vadd.f32 %v520_v60, %v3692_v43  ;;  %v612_v40 = vpack.c.bf16 %v3796_v58, %v3826_v9  ;;  %v3032_v20 = vld [vmem:[%s5649_s9] sm:$0xff]   ;;  %v3034_v60 = vld [vmem:[%s5649_s9 + $0x10] sm:$0xff]  }
 0x1c9   :  { %5781 = vst [vmem:[#allocation20_spill] sm:$0xff] %v3841_v48  ;;  %1143 = vmatpush1.bf16.msra.mxu1 %v618_v2  ;;  %951 = vmatprep.subr.bf16.mxu0 %v613_v3  ;;  %5782 = vst [vmem:[#allocation21_spill] sm:$0xff] %v3852_v10  ;;  %v3866_v29 = vadd.f32 %v513_v6, %v3678_v36  ;;  %v3869_v41 = vadd.f32 %v522_v8, %v3694_v44  ;;  %v3035_v2 = vld [vmem:[%s5649_s9 + $0x18] sm:$0xff]   ;;  %v3036_v3 = vld [vmem:[%s5649_s9 + $0x20] sm:$0xff]  }
 0x1ca   :  { %5783 = vst [vmem:[#allocation22_spill] sm:$0xff] %v3855_v23  ;;  %1144 = vmatprep.subr.bf16.mxu1 %v615_v11  ;;  %v614_v43 = vpack.c.bf16 %v3810_v1, %v3841_v48  ;;  %v609_v22 = vpack.c.bf16 %v3808_v61, %v3839_v16  ;;  %v3881_v7 = vadd.f32 %v515_v12, %v3681_v38  ;;  %v510_v38 = vld [vmem:[%s5650_s4 + $0x10] sm:$0xff]  ;;  %v3037_v6 = vld [vmem:[%s5649_s9 + $0x28] sm:$0xff]   ;;  %v3039_v11 = vld [vmem:[%s5649_s9 + $0x38] sm:$0xff]  }
 0x1cb   :  { %5784 = vst [vmem:[#allocation23_spill] sm:$0xff] %v3866_v29  ;;  %5785 = vst [vmem:[#allocation24_spill] sm:$0xff] %v3869_v41  ;;  %v3884_v36 = vadd.f32 %v516_v14, %v3684_v39  ;;  %v611_v44 = vpack.c.bf16 %v3823_v45, %v3852_v10  ;;  %v3894_v49 = vadd.f32 %v509_v17, %v3669_v33  ;;  %v3038_v8 = vld [vmem:[%s5649_s9 + $0x30] sm:$0xff]   ;;  %v3040_v12 = vld [vmem:[%s5649_s9 + $0x40] sm:$0xff]  }
 0x1cc   :  { %5786 = vst [vmem:[#allocation25_spill] sm:$0xff] %v3881_v7  ;;  %952 = vmatpush1.bf16.msra.mxu0 %v612_v40  ;;  %v3896_v50 = vadd.f32 %v518_v19, %v480_v46  ;;  %v3902_v39 = vadd.f32 %v511_v5, %v3672_v34  ;;  %v3905_v52 = vadd.f32 %v512_v4, %v3675_v35  ;;  %v3041_v14 = vld [vmem:[%s5649_s9 + $0x48] sm:$0xff]   ;;  %v3042_v46 = vld [vmem:[%s5649_s9 + $0x50] sm:$0xff]   ;;  %v3043_v17 = vld [vmem:[%s5649_s9 + $0x58] sm:$0xff]   ;;  %v4035_v4 = vpop.permute.xlu1 %724 }
 0x1cd   :  { %5787 = vst [vmem:[#allocation26_spill] sm:$0xff] %v3884_v36  ;;  %5788 = vst [vmem:[#allocation27_spill] sm:$0xff] %v3894_v49  ;;  %1145 = vmatpush1.bf16.msra.mxu1 %v614_v43  ;;  %953 = vmatprep.subr.bf16.mxu0 %v609_v22  ;;  %v608_v63 = vpack.c.bf16 %v3855_v23, %v3884_v36  ;;  %v3909_v31 = vadd.f32 %v514_v27, %v474_v18  ;;  %v3044_v18 = vld [vmem:[%s5649_s9 + $0x60] sm:$0xff]   ;;  %v3045_v19 = vld [vmem:[%s5649_s9 + $0x68] sm:$0xff]   ;;  %v4037_v43 = vpop.permute.xlu0 %729 }
 0x1ce   :  { %5789 = vst [vmem:[#allocation28_spill] sm:$0xff] %v3896_v50  ;;  %5790 = vst [vmem:[#allocation29_spill] sm:$0xff] %v3902_v39  ;;  %1146 = vmatprep.subr.bf16.mxu1 %v611_v44  ;;  %v610_v33 = vpack.c.bf16 %v3869_v41, %v3896_v50  ;;  %v605_v54 = vpack.c.bf16 %v3866_v29, %v3894_v49  ;;  %v3915_v55 = vadd.f32 %v508_v30, %v397_v24  ;;  %v3046_v40 = vld [vmem:[%s5649_s9 + $0x70] sm:$0xff]   ;;  %v3047_v5 = vld [vmem:[%s5649_s9 + $0x78] sm:$0xff]  }
 0x1cf   :  { %5791 = vst [vmem:[#allocation30_spill] sm:$0xff] %v3905_v52  ;;  %5792 = vst [vmem:[#allocation31_spill] sm:$0xff] %v3909_v31  ;;  %v607_v34 = vpack.c.bf16 %v3881_v7, %v3902_v39  ;;  %v3919_v35 = vadd.f32 %v510_v38, %v470_v62 }
 0x1d0   :  { %5793 = vst [vmem:[#allocation32_spill] sm:$0xff] %v3915_v55  ;;  %954 = vmatpush1.bf16.msra.mxu0 %v608_v63  ;;  %v604_v56 = vpack.c.bf16 %v3905_v52, %v3915_v55  ;;  %v4039_v22 = vpop.permute.xlu1 %714 }
 0x1d1   :  { %5794 = vst [vmem:[#allocation33_spill] sm:$0xff] %v3919_v35  ;;  %1147 = vmatpush1.bf16.msra.mxu1 %v610_v33  ;;  %955 = vmatprep.subr.bf16.mxu0 %v605_v54  ;;  %v606_v15 = vpack.c.bf16 %v3909_v31, %v3919_v35  ;;  %v4041_v24 = vpop.permute.xlu0 %719 }
 0x1d2   :  { %1148 = vmatprep.subr.bf16.mxu1 %v607_v34 }
 0x1d4   :  { %956 = vmatpush1.bf16.msra.mxu0 %v604_v56  ;;  %v4043_v27 = vpop.permute.xlu1 %704 }
 0x1d5   :  { %1149 = vmatpush1.bf16.msra.mxu1 %v606_v15  ;;  %v4045_v44 = vpop.permute.xlu0 %709 }
 0x1d7   :  { %2981 = vmatmul.mubr.msk.bf16.vlgmr.msra.gmra.mxu0 %vm892_vm4, %v3032_v20 }
 0x1d8   :  { %2997 = vmatmul.mubr.msk.bf16.vlgmr.msra.gmra.mxu1 %vm892_vm4, %v3032_v20  ;;  %983 = vmatprep.mubr.bf16.mxu0 %v5655_v0  ;;  %v4047_v30 = vpop.permute.xlu1 %694 }
 0x1d9   :  { %1176 = vmatprep.mubr.bf16.mxu1 %v5655_v0  ;;  %v4049_v62 = vpop.permute.xlu0 %699 }
 0x1dc   :  { %v4051_v38 = vpop.permute.xlu1 %684 }
 0x1dd   :  { %v4053_v63 = vpop.permute.xlu0 %689 }
 0x1df   :  { %2982 = vmatmul.mubr.msk.bf16.gmra.mxu0 %vm892_vm4, %v3033_v59 }
 0x1e0   :  { %2998 = vmatmul.mubr.msk.bf16.gmra.mxu1 %vm892_vm4, %v3033_v59  ;;  %993 = vmatprep.mubr.bf16.mxu0 %v5655_v0  ;;  %v4055_v33 = vpop.permute.xlu1 %674 }
 0x1e1   :  { %1186 = vmatprep.mubr.bf16.mxu1 %v5655_v0  ;;  %v4057_v54 = vpop.permute.xlu0 %679 }
 0x1e4   :  { %v4059_v34 = vpop.permute.xlu1 %664 }
 0x1e5   :  { %v4061_v15 = vpop.permute.xlu0 %669 }
 0x1e7   :  { %2983 = vmatmul.mubr.msk.bf16.gmra.mxu0 %vm892_vm4, %v3034_v60 }
 0x1e8   :  { %2999 = vmatmul.mubr.msk.bf16.gmra.mxu1 %vm892_vm4, %v3034_v60  ;;  %1003 = vmatprep.mubr.bf16.mxu0 %v5655_v0 }
 0x1e9   :  { %1196 = vmatprep.mubr.bf16.mxu1 %v5655_v0 }
 0x1ef   :  { %2984 = vmatmul.mubr.msk.bf16.gmra.mxu0 %vm892_vm4, %v3035_v2 }
 0x1f0   :  { %3000 = vmatmul.mubr.msk.bf16.gmra.mxu1 %vm892_vm4, %v3035_v2  ;;  %1013 = vmatprep.mubr.bf16.mxu0 %v5655_v0  ;;  %v655_v2 = vpop.permute.xlu1 %654 }
 0x1f1   :  { %1206 = vmatprep.mubr.bf16.mxu1 %v5655_v0 }
 0x1f7   :  { %2985 = vmatmul.mubr.msk.bf16.gmra.mxu0 %vm892_vm4, %v3036_v3 }
 0x1f8   :  { %3001 = vmatmul.mubr.msk.bf16.gmra.mxu1 %vm892_vm4, %v3036_v3  ;;  %1023 = vmatprep.mubr.bf16.mxu0 %v5655_v0 }
 0x1f9   :  { %1216 = vmatprep.mubr.bf16.mxu1 %v5655_v0 }
 0x1ff   :  { %2986 = vmatmul.mubr.msk.bf16.gmra.mxu0 %vm892_vm4, %v3037_v6 }
 0x200   :  { %3002 = vmatmul.mubr.msk.bf16.gmra.mxu1 %vm892_vm4, %v3037_v6  ;;  %1033 = vmatprep.mubr.bf16.mxu0 %v5655_v0 }
 0x201   :  { %1226 = vmatprep.mubr.bf16.mxu1 %v5655_v0 }
 0x207   :  { %2987 = vmatmul.mubr.msk.bf16.gmra.mxu0 %vm892_vm4, %v3038_v8 }
 0x208   :  { %3003 = vmatmul.mubr.msk.bf16.gmra.mxu1 %vm892_vm4, %v3038_v8  ;;  %1043 = vmatprep.mubr.bf16.mxu0 %v5655_v0  ;;  %v660_v8 = vpop.permute.xlu0 %659 }
 0x209   :  { %1236 = vmatprep.mubr.bf16.mxu1 %v5655_v0 }
 0x20f   :  { %2988 = vmatmul.mubr.msk.bf16.gmra.mxu0 %vm892_vm4, %v3039_v11 }
 0x210   :  { %3004 = vmatmul.mubr.msk.bf16.gmra.mxu1 %vm892_vm4, %v3039_v11  ;;  %1053 = vmatprep.mubr.bf16.mxu0 %v5655_v0 }
 0x211   :  { %1246 = vmatprep.mubr.bf16.mxu1 %v5655_v0 }
 0x217   :  { %2989 = vmatmul.mubr.msk.bf16.gmra.mxu0 %vm892_vm4, %v3040_v12 }
 0x218   :  { %3005 = vmatmul.mubr.msk.bf16.gmra.mxu1 %vm892_vm4, %v3040_v12  ;;  %1063 = vmatprep.mubr.bf16.mxu0 %v5655_v0 }
 0x219   :  { %1256 = vmatprep.mubr.bf16.mxu1 %v5655_v0 }
 0x21f   :  { %2990 = vmatmul.mubr.msk.bf16.gmra.mxu0 %vm892_vm4, %v3041_v14 }
 0x220   :  { %3006 = vmatmul.mubr.msk.bf16.gmra.mxu1 %vm892_vm4, %v3041_v14  ;;  %1073 = vmatprep.mubr.bf16.mxu0 %v5655_v0 }
 0x221   :  { %1266 = vmatprep.mubr.bf16.mxu1 %v5655_v0 }
 0x227   :  { %2991 = vmatmul.mubr.msk.bf16.gmra.mxu0 %vm892_vm4, %v3042_v46 }
 0x228   :  { %3007 = vmatmul.mubr.msk.bf16.gmra.mxu1 %vm892_vm4, %v3042_v46  ;;  %1083 = vmatprep.mubr.bf16.mxu0 %v5655_v0 }
 0x229   :  { %1276 = vmatprep.mubr.bf16.mxu1 %v5655_v0 }
 0x22f   :  { %2992 = vmatmul.mubr.msk.bf16.gmra.mxu0 %vm892_vm4, %v3043_v17 }
 0x230   :  { %3008 = vmatmul.mubr.msk.bf16.gmra.mxu1 %vm892_vm4, %v3043_v17  ;;  %1093 = vmatprep.mubr.bf16.mxu0 %v5655_v0 }
 0x231   :  { %1286 = vmatprep.mubr.bf16.mxu1 %v5655_v0 }
 0x237   :  { %2993 = vmatmul.mubr.msk.bf16.gmra.mxu0 %vm892_vm4, %v3044_v18 }
 0x238   :  { %3009 = vmatmul.mubr.msk.bf16.gmra.mxu1 %vm892_vm4, %v3044_v18  ;;  %1103 = vmatprep.mubr.bf16.mxu0 %v5655_v0 }
 0x239   :  { %1296 = vmatprep.mubr.bf16.mxu1 %v5655_v0 }
 0x23f   :  { %2994 = vmatmul.mubr.msk.bf16.gmra.mxu0 %vm892_vm4, %v3045_v19 }
 0x240   :  { %3010 = vmatmul.mubr.msk.bf16.gmra.mxu1 %vm892_vm4, %v3045_v19  ;;  %1113 = vmatprep.mubr.bf16.mxu0 %v5655_v0 }
 0x241   :  { %1306 = vmatprep.mubr.bf16.mxu1 %v5655_v0 }
 0x247   :  { %2995 = vmatmul.mubr.msk.bf16.gmra.mxu0 %vm892_vm4, %v3046_v40 }
 0x248   :  { %3011 = vmatmul.mubr.msk.bf16.gmra.mxu1 %vm892_vm4, %v3046_v40  ;;  %1123 = vmatprep.mubr.bf16.mxu0 %v5655_v0 }
 0x249   :  { %1316 = vmatprep.mubr.bf16.mxu1 %v5655_v0 }
 0x24f   :  { %2996 = vmatmul.mubr.msk.bf16.gmra.mxu0 %vm892_vm4, %v3047_v5 }
 0x250   :  { %3012 = vmatmul.mubr.msk.bf16.gmra.mxu1 %vm892_vm4, %v3047_v5 }
 0x297   :  { %v975_v56 = vpop.f32.mrf.mxu0 }
 0x298   :  { %v1168_v20 = vpop.f32.mrf.mxu1  ;;  %v4063_v6 = vadd.f32 %v975_v56, %v655_v2 }
 0x299   :  { %v977_v59 = vpop.f32.mrf.mxu0  ;;  %v4065_v11 = vadd.f32 %v1168_v20, %v655_v2 }
 0x29a   :  { %v1170_v60 = vpop.f32.mrf.mxu1  ;;  %v1327_v46 = vmul.f32 %v4063_v6, %v4063_v6  ;;  %v4081_v35 = vadd.f32 %v977_v59, %v655_v2 }
 0x29b   :  { %v979_v3 = vpop.f32.mrf.mxu0  ;;  %v1329_v19 = vmul.f32 %v4065_v11, %v4065_v11  ;;  %v4084_v31 = vadd.f32 %v1170_v60, %v655_v2 }
 0x29c   :  { %v1172_v12 = vpop.f32.mrf.mxu1  ;;  %v4067_v14 = vadd.f32 %v979_v3, %v660_v8  ;;  %v1455_v56 = vmul.f32 %v1327_v46, %v4063_v6  ;;  %5795 = vst [vmem:[#allocation34_spill] sm:$0xff] %v4081_v35 }
 0x29d   :  { %v4071_v17 = vadd.f32 %v1172_v12, %v660_v8  ;;  %v981_v18 = vpop.f32.mrf.mxu0  ;;  %v1457_v0 = vmul.f32 %v1329_v19, %v4065_v11  ;;  %5796 = vst [vmem:[#allocation35_spill] sm:$0xff] %v4084_v31  ;;  %v1328_v19 = vmul.f32 %v4081_v35, %v4081_v35  ;;  %v1330_v60 = vmul.f32 %v4084_v31, %v4084_v31 }
 0x29e   :  { %v1331_v40 = vmul.f32 %v4067_v14, %v4067_v14  ;;  %v1174_v5 = vpop.f32.mrf.mxu1  ;;  %v1583_v52 = vmul.f32 0.044715, %v1455_v56  ;;  %v4087_v50 = vadd.f32 %v981_v18, %v660_v8 }
 0x29f   :  { %v1333_v20 = vmul.f32 %v4071_v17, %v4071_v17  ;;  %v985_v3 = vpop.f32.mrf.mxu0  ;;  %v1585_v46 = vmul.f32 0.044715, %v1457_v0  ;;  %v4099_v2 = vadd.f32 %v1174_v5, %v660_v8 }
 0x2a0   :  { %v1459_v12 = vmul.f32 %v1331_v40, %v4067_v14  ;;  %v1178_v55 = vpop.f32.mrf.mxu1  ;;  %5797 = vst [vmem:[#allocation36_spill] sm:$0xff] %v4087_v50  ;;  %v4090_v36 = vadd.f32 %v985_v3, %v4059_v34  ;;  %v1711_v18 = vadd.f32 %v1583_v52, %v4063_v6  ;;  %v1332_v0 = vmul.f32 %v4087_v50, %v4087_v50 }
 0x2a1   :  { %v1461_v39 = vmul.f32 %v1333_v20, %v4071_v17  ;;  %v987_v49 = vpop.f32.mrf.mxu0  ;;  %v4095_v7 = vadd.f32 %v1178_v55, %v4059_v34  ;;  %5798 = vst [vmem:[#allocation37_spill] sm:$0xff] %v4099_v2  ;;  %v1713_v3 = vadd.f32 %v1585_v46, %v4065_v11  ;;  %v1456_v55 = vmul.f32 %v1328_v19, %v4081_v35 }
 0x2a2   :  { %v1587_v59 = vmul.f32 0.044715, %v1459_v12  ;;  %v1180_v40 = vpop.f32.mrf.mxu1  ;;  %v1335_v12 = vmul.f32 %v4090_v36, %v4090_v36  ;;  %v1458_v52 = vmul.f32 %v1330_v60, %v4084_v31  ;;  %v1839_v46 = vmul.f32 0.7978846, %v1711_v18 }
 0x2a3   :  { %v1589_v56 = vmul.f32 0.044715, %v1461_v39  ;;  %v989_v20 = vpop.f32.mrf.mxu0  ;;  %v1337_v8 = vmul.f32 %v4095_v7, %v4095_v7  ;;  %v1334_v39 = vmul.f32 %v4099_v2, %v4099_v2  ;;  %v1460_v10 = vmul.f32 %v1332_v0, %v4087_v50 }
 0x2a4   :  { %v1715_v41 = vadd.f32 %v1587_v59, %v4067_v14  ;;  %v1182_v5 = vpop.f32.mrf.mxu1  ;;  %v4115_v29 = vadd.f32 %v989_v20, %v4061_v15  ;;  %v1841_v19 = vmul.f32 0.7978846, %v1713_v3  ;;  %v1463_v59 = vmul.f32 %v1335_v12, %v4090_v36 }
 0x2a5   :  { %v1717_v23 = vadd.f32 %v1589_v56, %v4071_v17  ;;  %v4121_v48 = vadd.f32 %v1182_v5, %v4061_v15  ;;  %v1584_v16 = vmul.f32 0.044715, %v1456_v55  ;;  %v1465_v60 = vmul.f32 %v1337_v8, %v4095_v7  ;;  %v991_v20 = vpop.f32.mrf.mxu0 }
 0x2a6   :  { %v1843_v9 = vmul.f32 0.7978846, %v1715_v41  ;;  %v4125_v45 = vadd.f32 %v987_v49, %v4059_v34  ;;  %v1586_v1 = vmul.f32 0.044715, %v1458_v52  ;;  %v1462_v18 = vmul.f32 %v1334_v39, %v4099_v2  ;;  %v1184_v0 = vpop.f32.mrf.mxu1 }
 0x2a7   :  { %v1339_v56 = vmul.f32 %v4115_v29, %v4115_v29  ;;  %3060 = vtanh.f32 %v1839_v46  ;;  %v1845_v3 = vmul.f32 0.7978846, %v1717_v23  ;;  %v1588_v12 = vmul.f32 0.044715, %v1460_v10  ;;  %v995_v39 = vpop.f32.mrf.mxu0 }
 0x2a8   :  { %5799 = vst [vmem:[#allocation38_spill] sm:$0xff] %v4125_v45  ;;  %v4131_v5 = vadd.f32 %v1180_v40, %v4059_v34  ;;  %3062 = vtanh.f32 %v1841_v19  ;;  %v1591_v41 = vmul.f32 0.044715, %v1463_v59  ;;  %v1341_v49 = vmul.f32 %v4121_v48, %v4121_v48  ;;  %v1188_v34 = vpop.f32.mrf.mxu1 }
 0x2a9   :  { %v1712_v55 = vadd.f32 %v1584_v16, %v4081_v35  ;;  %3064 = vtanh.f32 %v1843_v9  ;;  %v1593_v8 = vmul.f32 0.044715, %v1465_v60  ;;  %v1336_v52 = vmul.f32 %v4125_v45, %v4125_v45  ;;  %v997_v61 = vpop.f32.mrf.mxu0 }
 0x2aa   :  { %5800 = vst [vmem:[#allocation39_spill] sm:$0xff] %v4131_v5  ;;  %v1714_v46 = vadd.f32 %v1586_v1, %v4084_v31  ;;  %v1467_v10 = vmul.f32 %v1339_v56, %v4115_v29  ;;  %v4141_v23 = vadd.f32 %v991_v20, %v4061_v15  ;;  %3066 = vtanh.f32 %v1845_v3 }
 0x2ab   :  { %v1716_v40 = vadd.f32 %v1588_v12, %v4087_v50  ;;  %v1590_v19 = vmul.f32 0.044715, %v1462_v18  ;;  %v1338_v9 = vmul.f32 %v4131_v5, %v4131_v5  ;;  %v1719_v16 = vadd.f32 %v1591_v41, %v4090_v36  ;;  %v1190_v12 = vpop.f32.mrf.mxu1  ;;  %v999_v51 = vpop.f32.mrf.mxu0 }
 0x2ac   :  { %5801 = vst [vmem:[#allocation40_spill] sm:$0xff] %v4141_v23  ;;  %v1469_v59 = vmul.f32 %v1341_v49, %v4121_v48  ;;  %v1840_v60 = vmul.f32 0.7978846, %v1712_v55  ;;  %v1721_v1 = vadd.f32 %v1593_v8, %v4095_v7  ;;  %v1464_v56 = vmul.f32 %v1336_v52, %v4125_v45 }
 0x2ad   :  { %v4151_v20 = vadd.f32 %v1184_v0, %v4061_v15  ;;  %v1842_v3 = vmul.f32 0.7978846, %v1714_v46  ;;  %v1595_v58 = vmul.f32 0.044715, %v1467_v10  ;;  %v1340_v18 = vmul.f32 %v4141_v23, %v4141_v23 }
 0x2ae   :  { %v1844_v57 = vmul.f32 0.7978846, %v1716_v40  ;;  %v1718_v41 = vadd.f32 %v1590_v19, %v4099_v2  ;;  %v1466_v49 = vmul.f32 %v1338_v9, %v4131_v5  ;;  %v4158_v55 = vadd.f32 %v995_v39, %v4055_v33  ;;  %v1192_v9 = vpop.f32.mrf.mxu1 }
 0x2af   :  { %5802 = vst [vmem:[#allocation41_spill] sm:$0xff] %v4151_v20  ;;  %v1847_v8 = vmul.f32 0.7978846, %v1719_v16  ;;  %v1597_v52 = vmul.f32 0.044715, %v1469_v59  ;;  %v4161_v15 = vadd.f32 %v1188_v34, %v4055_v33  ;;  %3068 = vtanh.f32 %v1840_v60 }
 0x2b0   :  { %v1849_v0 = vmul.f32 0.7978846, %v1721_v1  ;;  %v1592_v46 = vmul.f32 0.044715, %v1464_v56  ;;  %v1342_v10 = vmul.f32 %v4151_v20, %v4151_v20  ;;  %3070 = vtanh.f32 %v1842_v3 }
 0x2b1   :  { %v1723_v40 = vadd.f32 %v1595_v58, %v4115_v29  ;;  %v1468_v19 = vmul.f32 %v1340_v18, %v4141_v23  ;;  %3072 = vtanh.f32 %v1844_v57  ;;  %v1846_v39 = vmul.f32 0.7978846, %v1718_v41  ;;  %v1001_v18 = vpop.f32.mrf.mxu0 }
 0x2b2   :  { %v1594_v16 = vmul.f32 0.044715, %v1466_v49  ;;  %v1343_v34 = vmul.f32 %v4158_v55, %v4158_v55  ;;  %3074 = vtanh.f32 %v1847_v8  ;;  %v1725_v60 = vadd.f32 %v1597_v52, %v4121_v48  ;;  %v4180_v52 = vpop.f32.mrf.mxu1 }
 0x2b3   :  { %v1345_v1 = vmul.f32 %v4161_v15, %v4161_v15  ;;  %3076 = vtanh.f32 %v1849_v0  ;;  %v1720_v58 = vadd.f32 %v1592_v46, %v4125_v45  ;;  %v1470_v3 = vmul.f32 %v1342_v10, %v4151_v20 }
 0x2b4   :  { %v3061_v59 = vpop.eup %3060  ;;  %v1851_v41 = vmul.f32 0.7978846, %v1723_v40  ;;  %v1596_v49 = vmul.f32 0.044715, %v1468_v19  ;;  %v4175_v53 = vadd.f32 %v997_v61, %v4055_v33  ;;  %v4178_v8 = vadd.f32 %v1190_v12, %v4055_v33 }
 0x2b5   :  { %v3063_v56 = vpop.eup %3062  ;;  %3078 = vtanh.f32 %v1846_v39  ;;  %v1722_v47 = vadd.f32 %v1594_v16, %v4131_v5  ;;  %v1471_v0 = vmul.f32 %v1343_v34, %v4158_v55  ;;  %v4185_v46 = vadd.f32 %v999_v51, %v4057_v54  ;;  %v1005_v39 = vpop.f32.mrf.mxu0 }
 0x2b6   :  { %v3065_v57 = vpop.eup %3064  ;;  %5803 = vst [vmem:[#allocation42_spill] sm:$0xff] %v4175_v53  ;;  %5804 = vst [vmem:[#allocation43_spill] sm:$0xff] %v4178_v8  ;;  %v2095_v42 = vadd.f32 1.0, %v3061_v59  ;;  %v1853_v40 = vmul.f32 0.7978846, %v1725_v60  ;;  %v1473_v19 = vmul.f32 %v1345_v1, %v4161_v15  ;;  %v4189_v61 = vadd.f32 %v1192_v9, %v4057_v54  ;;  %v1198_v59 = vpop.f32.mrf.mxu1 }
 0x2b7   :  { %v3067_v10 = vpop.eup %3066  ;;  %v2097_v33 = vadd.f32 1.0, %v3063_v56  ;;  %v2099_v12 = vadd.f32 1.0, %v3065_v57  ;;  %v1848_v37 = vmul.f32 0.7978846, %v1720_v58  ;;  %v1598_v32 = vmul.f32 0.044715, %v1470_v3  ;;  %v1007_v13 = vpop.f32.mrf.mxu0 }
 0x2b8   :  { %3080 = vtanh.f32 %v1851_v41  ;;  %v1724_v16 = vadd.f32 %v1596_v49, %v4141_v23  ;;  %v1344_v51 = vmul.f32 %v4175_v53, %v4175_v53  ;;  %v1346_v34 = vmul.f32 %v4178_v8, %v4178_v8 }
 0x2b9   :  { %v2101_v60 = vadd.f32 1.0, %v3067_v10  ;;  %v1850_v1 = vmul.f32 0.7978846, %v1722_v47  ;;  %v1599_v26 = vmul.f32 0.044715, %v1471_v0  ;;  %v1347_v9 = vmul.f32 %v4185_v46, %v4185_v46 }
 0x2ba   :  { %v2223_v56 = vmul.f32 0.5, %v2095_v42  ;;  %3082 = vtanh.f32 %v1853_v40  ;;  %v1601_v58 = vmul.f32 0.044715, %v1473_v19  ;;  %v1349_v3 = vmul.f32 %v4189_v61, %v4189_v61  ;;  %v4208_v40 = vpop.f32.mrf.mxu1 }
 0x2bb   :  { %v2225_v57 = vmul.f32 0.5, %v2097_v33  ;;  %3084 = vtanh.f32 %v1848_v37  ;;  %v1726_v41 = vadd.f32 %v1598_v32, %v4151_v20  ;;  %v4202_v49 = vadd.f32 %v1005_v39, %v4051_v38 }
 0x2bc   :  { %v4204_v10 = vpop.eup %3068  ;;  %v2227_v47 = vmul.f32 0.5, %v2099_v12  ;;  %v1852_v0 = vmul.f32 0.7978846, %v1724_v16  ;;  %v1472_v25 = vmul.f32 %v1344_v51, %v4175_v53  ;;  %v1474_v42 = vmul.f32 %v1346_v34, %v4178_v8  ;;  %v1202_v21 = vpop.f32.mrf.mxu1 }
 0x2bd   :  { %5805 = vst [vmem:[#allocation44_spill] sm:$0xff] %v4204_v10  ;;  %v4210_v19 = vpop.eup %3070  ;;  %v2229_v33 = vmul.f32 0.5, %v2101_v60  ;;  %3086 = vtanh.f32 %v1850_v1  ;;  %v1727_v32 = vadd.f32 %v1599_v26, %v4158_v55  ;;  %v1475_v37 = vmul.f32 %v1347_v9, %v4185_v46 }
 0x2be   :  { %5806 = vst [vmem:[#allocation45_spill] sm:$0xff] %v4210_v19  ;;  %v4214_v39 = vpop.eup %3072  ;;  %v4217_v28 = vmul.f32 %v2223_v56, %v4063_v6  ;;  %v1729_v12 = vadd.f32 %v1601_v58, %v4161_v15  ;;  %v1477_v16 = vmul.f32 %v1349_v3, %v4189_v61  ;;  %v4222_v51 = vadd.f32 %v1198_v59, %v4051_v38  ;;  %v1009_v6 = vpop.f32.mrf.mxu0 }
 0x2bf   :  { %5807 = vst [vmem:[#allocation46_spill] sm:$0xff] %v4214_v39  ;;  %v3075_v34 = vpop.eup %3074  ;;  %v4225_v60 = vmul.f32 %v2225_v57, %v4065_v11  ;;  %v1854_v1 = vmul.f32 0.7978846, %v1726_v41  ;;  %v4228_v26 = vadd.f32 %v1001_v18, %v4057_v54  ;;  %v1351_v9 = vmul.f32 %v4202_v49, %v4202_v49 }
 0x2c0   :  { %5808 = vst [vmem:[#allocation47_spill] sm:$0xff] %v4217_v28  ;;  %v3077_v56 = vpop.eup %3076  ;;  %v4233_v58 = vmul.f32 %v2227_v47, %v4067_v14  ;;  %3088 = vtanh.f32 %v1852_v0  ;;  %v1600_v3 = vmul.f32 0.044715, %v1472_v25  ;;  %v1602_v59 = vmul.f32 0.044715, %v1474_v42 }
 0x2c1   :  { %5809 = vst [vmem:[#allocation48_spill] sm:$0xff] %v4225_v60  ;;  %5810 = vst [vmem:[#allocation49_spill] sm:$0xff] %v4228_v26  ;;  %v4236_v28 = vmul.f32 %v2229_v33, %v4071_v17  ;;  %v1855_v11 = vmul.f32 0.7978846, %v1727_v32  ;;  %v1603_v57 = vmul.f32 0.044715, %v1475_v37  ;;  %v4240_v18 = vadd.f32 %v4180_v52, %v4057_v54  ;;  %v1011_v32 = vpop.f32.mrf.mxu0 }
 0x2c2   :  { %5811 = vst [vmem:[#allocation50_spill] sm:$0xff] %v4233_v58  ;;  %v4242_v41 = vpop.eup %3078  ;;  %v1857_v60 = vmul.f32 0.7978846, %v1729_v12  ;;  %v1605_v2 = vmul.f32 0.044715, %v1477_v16  ;;  %v1353_v14 = vmul.f32 %v4222_v51, %v4222_v51  ;;  %v4247_v25 = vadd.f32 %v1009_v6, %v4053_v63 }
 0x2c3   :  { %5812 = vst [vmem:[#allocation51_spill] sm:$0xff] %v4236_v28  ;;  %5813 = vst [vmem:[#allocation52_spill] sm:$0xff] %v4240_v18  ;;  %v2103_v47 = vadd.f32 1.0, %v3075_v34  ;;  %v1348_v17 = vmul.f32 %v4228_v26, %v4228_v26  ;;  %v1479_v0 = vmul.f32 %v1351_v9, %v4202_v49  ;;  %v4253_v42 = vadd.f32 %v1202_v21, %v4053_v63  ;;  %v1015_v31 = vpop.f32.mrf.mxu0 }
 0x2c4   :  { %5814 = vst [vmem:[#allocation53_spill] sm:$0xff] %v4242_v41  ;;  %v2105_v54 = vadd.f32 1.0, %v3077_v56  ;;  %3090 = vtanh.f32 %v1854_v1  ;;  %v1728_v52 = vadd.f32 %v1600_v3, %v4175_v53  ;;  %v1730_v33 = vadd.f32 %v1602_v59, %v4178_v8 }
 0x2c5   :  { %v3081_v37 = vpop.eup %3080  ;;  %3092 = vtanh.f32 %v1855_v11  ;;  %v1731_v12 = vadd.f32 %v1603_v57, %v4185_v46  ;;  %v1350_v16 = vmul.f32 %v4240_v18, %v4240_v18  ;;  %v4261_v34 = vadd.f32 %v1007_v13, %v4051_v38  ;;  %v1204_v57 = vpop.f32.mrf.mxu1 }
 0x2c6   :  { %3094 = vtanh.f32 %v1857_v60  ;;  %v1733_v21 = vadd.f32 %v1605_v2, %v4189_v61  ;;  %v1481_v1 = vmul.f32 %v1353_v14, %v4222_v51  ;;  %v1355_v9 = vmul.f32 %v4247_v25, %v4247_v25 }
 0x2c7   :  { %5815 = vst [vmem:[#allocation54_spill] sm:$0xff] %v4261_v34  ;;  %v3083_v6 = vpop.eup %3082  ;;  %v2231_v56 = vmul.f32 0.5, %v2103_v47  ;;  %v1476_v3 = vmul.f32 %v1348_v17, %v4228_v26  ;;  %v1607_v59 = vmul.f32 0.044715, %v1479_v0  ;;  %v1357_v11 = vmul.f32 %v4253_v42, %v4253_v42 }
 0x2c8   :  { %v4270_v28 = vpop.eup %3084  ;;  %v2233_v13 = vmul.f32 0.5, %v2105_v54  ;;  %v2107_v60 = vadd.f32 1.0, %v3081_v37  ;;  %v1856_v58 = vmul.f32 0.7978846, %v1728_v52  ;;  %v1858_v2 = vmul.f32 0.7978846, %v1730_v33 }
 0x2c9   :  { %5816 = vst [vmem:[#allocation55_spill] sm:$0xff] %v4270_v28  ;;  %v1859_v14 = vmul.f32 0.7978846, %v1731_v12  ;;  %v1478_v50 = vmul.f32 %v1350_v16, %v4240_v18  ;;  %v1352_v47 = vmul.f32 %v4261_v34, %v4261_v34  ;;  %v4277_v17 = vadd.f32 %v4208_v40, %v4051_v38  ;;  %v1208_v16 = vpop.f32.mrf.mxu1 }
 0x2ca   :  { %v4279_v0 = vpop.eup %3086  ;;  %v2109_v35 = vadd.f32 1.0, %v3083_v6  ;;  %v1861_v41 = vmul.f32 0.7978846, %v1733_v21  ;;  %v1609_v19 = vmul.f32 0.044715, %v1481_v1  ;;  %v1483_v54 = vmul.f32 %v1355_v9, %v4247_v25  ;;  %v1017_v1 = vpop.f32.mrf.mxu0 }
 0x2cb   :  { %5817 = vst [vmem:[#allocation56_spill] sm:$0xff] %v4277_v17  ;;  %5818 = vst [vmem:[#allocation57_spill] sm:$0xff] %v4279_v0  ;;  %v4283_v52 = vmul.f32 %v2231_v56, %v4090_v36  ;;  %v1735_v33 = vadd.f32 %v1607_v59, %v4202_v49  ;;  %v1485_v37 = vmul.f32 %v1357_v11, %v4253_v42  ;;  %v2235_v40 = vmul.f32 0.5, %v2107_v60 }
 0x2cc   :  { %v4288_v12 = vadd.f32 %v1011_v32, %v4053_v63  ;;  %v4291_v38 = vmul.f32 %v2233_v13, %v4095_v7  ;;  %v1604_v6 = vmul.f32 0.044715, %v1476_v3  ;;  %v4294_v21 = vadd.f32 %v1015_v31, %v4047_v30 }
 0x2cd   :  { %5819 = vst [vmem:[#allocation58_spill] sm:$0xff] %v4283_v52  ;;  %v4296_v9 = vpop.eup %3088  ;;  %3096 = vtanh.f32 %v1859_v14  ;;  %v1480_v36 = vmul.f32 %v1352_v47, %v4261_v34  ;;  %v1354_v56 = vmul.f32 %v4277_v17, %v4277_v17  ;;  %v4302_v32 = vadd.f32 %v1204_v57, %v4053_v63  ;;  %v1210_v14 = vpop.f32.mrf.mxu1 }
 0x2ce   :  { %5820 = vst [vmem:[#allocation59_spill] sm:$0xff] %v4288_v12  ;;  %5821 = vst [vmem:[#allocation60_spill] sm:$0xff] %v4291_v38  ;;  %v2237_v59 = vmul.f32 0.5, %v2109_v35  ;;  %3098 = vtanh.f32 %v1861_v41  ;;  %v1737_v7 = vadd.f32 %v1609_v19, %v4222_v51  ;;  %v1611_v3 = vmul.f32 0.044715, %v1483_v54  ;;  %v1019_v63 = vpop.f32.mrf.mxu0 }
 0x2cf   :  { %5822 = vst [vmem:[#allocation61_spill] sm:$0xff] %v4296_v9  ;;  %5823 = vst [vmem:[#allocation62_spill] sm:$0xff] %v4302_v32  ;;  %v1863_v11 = vmul.f32 0.7978846, %v1735_v33  ;;  %v1613_v31 = vmul.f32 0.044715, %v1485_v37  ;;  %v1356_v13 = vmul.f32 %v4288_v12, %v4288_v12  ;;  %v4308_v60 = vadd.f32 %v1208_v16, %v4047_v30  ;;  %v1212_v10 = vpop.f32.mrf.mxu1 }
 0x2d0   :  { %3100 = vtanh.f32 %v1856_v58  ;;  %v1732_v47 = vadd.f32 %v1604_v6, %v4228_v26  ;;  %v1606_v39 = vmul.f32 0.044715, %v1478_v50  ;;  %v1359_v35 = vmul.f32 %v4294_v21, %v4294_v21  ;;  %v4461_v26 = vpop.permute.xlu0 %809 }
 0x2d1   :  { %v4313_v41 = vpop.eup %3090  ;;  %3102 = vtanh.f32 %v1858_v2  ;;  %v1608_v19 = vmul.f32 0.044715, %v1480_v36  ;;  %v1482_v57 = vmul.f32 %v1354_v56, %v4277_v17  ;;  %v1358_v54 = vmul.f32 %v4302_v32, %v4302_v32  ;;  %v1214_v52 = vpop.f32.mrf.mxu1  ;;  %5849 = vst [vmem:[#allocation88_spill] sm:$0xff] %v4461_v26 }
 0x2d2   :  { %5824 = vst [vmem:[#allocation63_spill] sm:$0xff] %v4313_v41  ;;  %v3093_v33 = vpop.eup %3092  ;;  %v4319_v37 = vmul.f32 %v2235_v40, %v4115_v29  ;;  %v4322_v58 = vmul.f32 %v2237_v59, %v4121_v48  ;;  %v1865_v50 = vmul.f32 0.7978846, %v1737_v7  ;;  %v1739_v16 = vadd.f32 %v1611_v3, %v4247_v25  ;;  %v1021_v59 = vpop.f32.mrf.mxu0 }
 0x2d3   :  { %v3095_v6 = vpop.eup %3094  ;;  %3104 = vtanh.f32 %v1863_v11  ;;  %v1741_v2 = vadd.f32 %v1613_v31, %v4253_v42  ;;  %v1484_v36 = vmul.f32 %v1356_v13, %v4288_v12  ;;  %v1361_v56 = vmul.f32 %v4308_v60, %v4308_v60 }
 0x2d4   :  { %5825 = vst [vmem:[#allocation64_spill] sm:$0xff] %v4319_v37  ;;  %5826 = vst [vmem:[#allocation65_spill] sm:$0xff] %v4322_v58  ;;  %v1860_v38 = vmul.f32 0.7978846, %v1732_v47  ;;  %v1734_v29 = vadd.f32 %v1606_v39, %v4240_v18  ;;  %v1487_v40 = vmul.f32 %v1359_v35, %v4294_v21  ;;  %v4332_v48 = vadd.f32 %v1019_v63, %v4049_v62 }
 0x2d5   :  { %v2111_v7 = vadd.f32 1.0, %v3093_v33  ;;  %v1736_v3 = vadd.f32 %v1608_v19, %v4261_v34  ;;  %v1610_v11 = vmul.f32 0.044715, %v1482_v57  ;;  %v1486_v31 = vmul.f32 %v1358_v54, %v4302_v32  ;;  %v1025_v54 = vpop.f32.mrf.mxu0 }
 0x2d6   :  { %v2113_v13 = vadd.f32 1.0, %v3095_v6  ;;  %3106 = vtanh.f32 %v1865_v50  ;;  %v1867_v58 = vmul.f32 0.7978846, %v1739_v16  ;;  %v4337_v37 = vadd.f32 %v1017_v1, %v4047_v30 }
 0x2d7   :  { %v1869_v47 = vmul.f32 0.7978846, %v1741_v2  ;;  %v1612_v39 = vmul.f32 0.044715, %v1484_v36  ;;  %v1489_v35 = vmul.f32 %v1361_v56, %v4308_v60  ;;  %v4341_v63 = vadd.f32 %v1210_v14, %v4047_v30 }
 0x2d8   :  { %5827 = vst [vmem:[#allocation66_spill] sm:$0xff] %v4337_v37  ;;  %v1862_v33 = vmul.f32 0.7978846, %v1734_v29  ;;  %v1615_v20 = vmul.f32 0.044715, %v1487_v40  ;;  %v1363_v19 = vmul.f32 %v4332_v48, %v4332_v48  ;;  %v4346_v57 = vadd.f32 %v1212_v10, %v4049_v62  ;;  %v1218_v40 = vpop.f32.mrf.mxu1 }
 0x2d9   :  { %5828 = vst [vmem:[#allocation67_spill] sm:$0xff] %v4341_v63  ;;  %v2239_v50 = vmul.f32 0.5, %v2111_v7  ;;  %3108 = vtanh.f32 %v1860_v38  ;;  %v1738_v1 = vadd.f32 %v1610_v11, %v4277_v17  ;;  %v1614_v16 = vmul.f32 0.044715, %v1486_v31 }
 0x2da   :  { %v3097_v6 = vpop.eup %3096  ;;  %v2241_v2 = vmul.f32 0.5, %v2113_v13  ;;  %v1864_v36 = vmul.f32 0.7978846, %v1736_v3  ;;  %3110 = vtanh.f32 %v1867_v58  ;;  %v1360_v30 = vmul.f32 %v4337_v37, %v4337_v37  ;;  %v1027_v3 = vpop.f32.mrf.mxu0 }
 0x2db   :  { %v3099_v14 = vpop.eup %3098  ;;  %3112 = vtanh.f32 %v1869_v47  ;;  %v1740_v56 = vadd.f32 %v1612_v39, %v4288_v12  ;;  %v1617_v29 = vmul.f32 0.044715, %v1489_v35  ;;  %v1362_v10 = vmul.f32 %v4341_v63, %v4341_v63 }
 0x2dc   :  { %3114 = vtanh.f32 %v1862_v33  ;;  %v1743_v38 = vadd.f32 %v1615_v20, %v4294_v21  ;;  %v1491_v7 = vmul.f32 %v1363_v19, %v4332_v48  ;;  %v1365_v58 = vmul.f32 %v4346_v57, %v4346_v57 }
 0x2dd   :  { %v4358_v11 = vpop.eup %3100  ;;  %v2115_v31 = vadd.f32 1.0, %v3097_v6  ;;  %v1866_v13 = vmul.f32 0.7978846, %v1738_v1  ;;  %v1742_v47 = vadd.f32 %v1614_v16, %v4302_v32  ;;  %v4362_v39 = vadd.f32 %v1021_v59, %v4049_v62  ;;  %v1220_v6 = vpop.f32.mrf.mxu1 }
 0x2de   :  { %5829 = vst [vmem:[#allocation68_spill] sm:$0xff] %v4358_v11  ;;  %v4364_v35 = vpop.eup %3102  ;;  %v4367_v33 = vmul.f32 %v2239_v50, %v4158_v55  ;;  %v2117_v20 = vadd.f32 1.0, %v3099_v14  ;;  %3116 = vtanh.f32 %v1864_v36  ;;  %v1488_v19 = vmul.f32 %v1360_v30, %v4337_v37  ;;  %v1029_v50 = vpop.f32.mrf.mxu0 }
 0x2df   :  { %5830 = vst [vmem:[#allocation69_spill] sm:$0xff] %v4362_v39  ;;  %5831 = vst [vmem:[#allocation70_spill] sm:$0xff] %v4364_v35  ;;  %v4371_v5 = vmul.f32 %v2241_v2, %v4161_v15  ;;  %v1868_v23 = vmul.f32 0.7978846, %v1740_v56  ;;  %v1745_v1 = vadd.f32 %v1617_v29, %v4308_v60  ;;  %v1490_v16 = vmul.f32 %v1362_v10, %v4341_v63 }
 0x2e0   :  { %5832 = vst [vmem:[#allocation71_spill] sm:$0xff] %v4367_v33  ;;  %v3105_v59 = vpop.eup %3104  ;;  %v1871_v45 = vmul.f32 0.7978846, %v1743_v38  ;;  %v1619_v41 = vmul.f32 0.044715, %v1491_v7  ;;  %v1493_v0 = vmul.f32 %v1365_v58, %v4346_v57  ;;  %v4377_v55 = vadd.f32 %v1214_v52, %v4049_v62  ;;  %v1222_v7 = vpop.f32.mrf.mxu1 }
 0x2e1   :  { %5833 = vst [vmem:[#allocation72_spill] sm:$0xff] %v4371_v5  ;;  %v2243_v36 = vmul.f32 0.5, %v2115_v31  ;;  %v1870_v30 = vmul.f32 0.7978846, %v1742_v47  ;;  %v1364_v15 = vmul.f32 %v4362_v39, %v4362_v39  ;;  %v4382_v2 = vadd.f32 %v1025_v54, %v4043_v27  ;;  %v1031_v47 = vpop.f32.mrf.mxu0  ;;  %v4415_v5 = vpop.permute.xlu1 %804 }
 0x2e2   :  { %5834 = vst [vmem:[#allocation73_spill] sm:$0xff] %v4377_v55  ;;  %v2245_v14 = vmul.f32 0.5, %v2117_v20  ;;  %3118 = vtanh.f32 %v1866_v13  ;;  %v1616_v56 = vmul.f32 0.044715, %v1488_v19  ;;  %v4385_v29 = vadd.f32 %v1218_v40, %v4043_v27  ;;  %5840 = vst [vmem:[#allocation79_spill] sm:$0xff] %v4415_v5 }
 0x2e3   :  { %v3107_v10 = vpop.eup %3106  ;;  %v2119_v38 = vadd.f32 1.0, %v3105_v59  ;;  %3120 = vtanh.f32 %v1868_v23  ;;  %v1873_v62 = vmul.f32 0.7978846, %v1745_v1  ;;  %v1618_v52 = vmul.f32 0.044715, %v1490_v16 }
 0x2e4   :  { %3122 = vtanh.f32 %v1871_v45  ;;  %v1747_v58 = vadd.f32 %v1619_v41, %v4332_v48  ;;  %v1621_v31 = vmul.f32 0.044715, %v1493_v0  ;;  %v1366_v54 = vmul.f32 %v4377_v55, %v4377_v55 }
 0x2e5   :  { %v4391_v13 = vmul.f32 %v2243_v36, %v4185_v46  ;;  %3124 = vtanh.f32 %v1870_v30  ;;  %v1492_v40 = vmul.f32 %v1364_v15, %v4362_v39  ;;  %v1367_v23 = vmul.f32 %v4382_v2, %v4382_v2  ;;  %v1224_v36 = vpop.f32.mrf.mxu1 }
 0x2e6   :  { %v4396_v20 = vpop.eup %3108  ;;  %v2121_v19 = vadd.f32 1.0, %v3107_v10  ;;  %v1744_v45 = vadd.f32 %v1616_v56, %v4337_v37  ;;  %v1369_v0 = vmul.f32 %v4385_v29, %v4385_v29  ;;  %v4402_v41 = vadd.f32 %v1029_v50, %v4045_v44  ;;  %v1035_v50 = vpop.f32.mrf.mxu0 }
 0x2e7   :  { %5835 = vst [vmem:[#allocation74_spill] sm:$0xff] %v4391_v13  ;;  %5836 = vst [vmem:[#allocation75_spill] sm:$0xff] %v4396_v20  ;;  %v3111_v1 = vpop.eup %3110  ;;  %v4405_v46 = vmul.f32 %v2245_v14, %v4189_v61  ;;  %v2247_v16 = vmul.f32 0.5, %v2119_v38  ;;  %3126 = vtanh.f32 %v1873_v62  ;;  %v1746_v59 = vadd.f32 %v1618_v52, %v4341_v63 }
 0x2e8   :  { %v3113_v30 = vpop.eup %3112  ;;  %v1875_v15 = vmul.f32 0.7978846, %v1747_v58  ;;  %v1749_v10 = vadd.f32 %v1621_v31, %v4346_v57  ;;  %v1494_v56 = vmul.f32 %v1366_v54, %v4377_v55  ;;  %v4411_v9 = vadd.f32 %v1027_v3, %v4043_v27 }
 0x2e9   :  { %5837 = vst [vmem:[#allocation76_spill] sm:$0xff] %v4405_v46  ;;  %v4413_v28 = vpop.eup %3114  ;;  %v1620_v61 = vmul.f32 0.044715, %v1492_v40  ;;  %v1495_v14 = vmul.f32 %v1367_v23, %v4382_v2  ;;  %v4419_v38 = vadd.f32 %v1220_v6, %v4043_v27  ;;  %v4422_v62 = vadd.f32 %v1222_v7, %v4045_v44  ;;  %v1228_v27 = vpop.f32.mrf.mxu1 }
 0x2ea   :  { %5838 = vst [vmem:[#allocation77_spill] sm:$0xff] %v4411_v9  ;;  %5839 = vst [vmem:[#allocation78_spill] sm:$0xff] %v4413_v28  ;;  %v2249_v52 = vmul.f32 0.5, %v2121_v19  ;;  %v1872_v58 = vmul.f32 0.7978846, %v1744_v45  ;;  %v1497_v31 = vmul.f32 %v1369_v0, %v4385_v29  ;;  %v1371_v3 = vmul.f32 %v4402_v41, %v4402_v41  ;;  %v4434_v45 = vpop.f32.mrf.mxu0 }
 0x2eb   :  { %5841 = vst [vmem:[#allocation80_spill] sm:$0xff] %v4419_v38  ;;  %v4427_v54 = vpop.eup %3116  ;;  %v4430_v5 = vmul.f32 %v2247_v16, %v4202_v49  ;;  %v2123_v40 = vadd.f32 1.0, %v3111_v1  ;;  %v2125_v23 = vadd.f32 1.0, %v3113_v30  ;;  %v1874_v46 = vmul.f32 0.7978846, %v1746_v59 }
 0x2ec   :  { %5842 = vst [vmem:[#allocation81_spill] sm:$0xff] %v4427_v54  ;;  %3128 = vtanh.f32 %v1875_v15  ;;  %v1877_v6 = vmul.f32 0.7978846, %v1749_v10  ;;  %v1622_v7 = vmul.f32 0.044715, %v1494_v56  ;;  %v1368_v19 = vmul.f32 %v4411_v9, %v4411_v9  ;;  %v4447_v15 = vpop.permute.xlu1 %794  ;;  %v1039_v18 = vpop.f32.mrf.mxu0 }
 0x2ed   :  { %5843 = vst [vmem:[#allocation82_spill] sm:$0xff] %v4430_v5  ;;  %v1748_v0 = vadd.f32 %v1620_v61, %v4362_v39  ;;  %v1623_v13 = vmul.f32 0.044715, %v1495_v14  ;;  %v1370_v33 = vmul.f32 %v4419_v38, %v4419_v38  ;;  %v1373_v49 = vmul.f32 %v4422_v62, %v4422_v62  ;;  %5845 = vst [vmem:[#allocation84_spill] sm:$0xff] %v4447_v15  ;;  %v4455_v14 = vpop.f32.mrf.mxu1 }
 0x2ee   :  { %3130 = vtanh.f32 %v1872_v58  ;;  %v1625_v1 = vmul.f32 0.044715, %v1497_v31  ;;  %v1499_v16 = vmul.f32 %v1371_v3, %v4402_v41  ;;  %v4443_v59 = vadd.f32 %v1035_v50, %v4039_v22  ;;  %v1041_v11 = vpop.f32.mrf.mxu0 }
 0x2ef   :  { %v4445_v30 = vpop.eup %3118  ;;  %v4450_v10 = vmul.f32 %v2249_v52, %v4222_v51  ;;  %v2251_v56 = vmul.f32 0.5, %v2123_v40  ;;  %3132 = vtanh.f32 %v1874_v46  ;;  %v4453_v61 = vadd.f32 %v1031_v47, %v4045_v44 }
 0x2f0   :  { %5844 = vst [vmem:[#allocation83_spill] sm:$0xff] %v4445_v30  ;;  %v4457_v58 = vpop.eup %3120  ;;  %v2253_v31 = vmul.f32 0.5, %v2125_v23  ;;  %3134 = vtanh.f32 %v1877_v6  ;;  %v1750_v50 = vadd.f32 %v1622_v7, %v4377_v55  ;;  %v1496_v3 = vmul.f32 %v1368_v19, %v4411_v9  ;;  %v4488_v35 = vpop.permute.xlu1 %784 }
 0x2f1   :  { %5846 = vst [vmem:[#allocation85_spill] sm:$0xff] %v4450_v10  ;;  %5847 = vst [vmem:[#allocation86_spill] sm:$0xff] %v4453_v61  ;;  %v3123_v8 = vpop.eup %3122  ;;  %v1876_v51 = vmul.f32 0.7978846, %v1748_v0  ;;  %v1751_v46 = vadd.f32 %v1623_v13, %v4382_v2  ;;  %v1498_v47 = vmul.f32 %v1370_v33, %v4419_v38  ;;  %v1501_v52 = vmul.f32 %v1373_v49, %v4422_v62  ;;  %v1232_v49 = vpop.f32.mrf.mxu1 }
 0x2f2   :  { %5848 = vst [vmem:[#allocation87_spill] sm:$0xff] %v4457_v58  ;;  %v4466_v40 = vpop.eup %3124  ;;  %v1753_v23 = vadd.f32 %v1625_v1, %v4385_v29  ;;  %v1627_v6 = vmul.f32 0.044715, %v1499_v16  ;;  %v1375_v7 = vmul.f32 %v4443_v59, %v4443_v59  ;;  %v4472_v19 = vadd.f32 %v1228_v27, %v4039_v22  ;;  %5854 = vst [vmem:[#allocation93_spill] sm:$0xff] %v4488_v35 }
 0x2f3   :  { %5850 = vst [vmem:[#allocation89_spill] sm:$0xff] %v4466_v40  ;;  %v4475_v26 = vmul.f32 %v2251_v56, %v4247_v25  ;;  %v1372_v13 = vmul.f32 %v4453_v61, %v4453_v61  ;;  %v4480_v33 = vadd.f32 %v1224_v36, %v4045_v44  ;;  %v4483_v0 = vadd.f32 %v1039_v18, %v4041_v24 }
 0x2f4   :  { %v3127_v1 = vpop.eup %3126  ;;  %v4486_v16 = vmul.f32 %v2253_v31, %v4253_v42  ;;  %v2127_v53 = vadd.f32 1.0, %v3123_v8  ;;  %v1878_v27 = vmul.f32 0.7978846, %v1750_v50  ;;  %v1624_v28 = vmul.f32 0.044715, %v1496_v3  ;;  %v4494_v42 = vpop.permute.xlu0 %799 }
 0x2f5   :  { %5851 = vst [vmem:[#allocation90_spill] sm:$0xff] %v4475_v26  ;;  %5852 = vst [vmem:[#allocation91_spill] sm:$0xff] %v4480_v33  ;;  %3136 = vtanh.f32 %v1876_v51  ;;  %v1879_v25 = vmul.f32 0.7978846, %v1751_v46  ;;  %v1626_v56 = vmul.f32 0.044715, %v1498_v47  ;;  %v1755_v36 = vadd.f32 %v1627_v6, %v4402_v41  ;;  %v4501_v51 = vpop.f32.mrf.mxu1 }
 0x2f6   :  { %5853 = vst [vmem:[#allocation92_spill] sm:$0xff] %v4486_v16  ;;  %v1629_v20 = vmul.f32 0.044715, %v1501_v52  ;;  %v1881_v44 = vmul.f32 0.7978846, %v1753_v23  ;;  %v1503_v18 = vmul.f32 %v1375_v7, %v4443_v59  ;;  %v1377_v10 = vmul.f32 %v4472_v19, %v4472_v19  ;;  %5855 = vst [vmem:[#allocation94_spill] sm:$0xff] %v4494_v42 }
 0x2f7   :  { %v2129_v8 = vadd.f32 1.0, %v3127_v1  ;;  %v1500_v31 = vmul.f32 %v1372_v13, %v4453_v61  ;;  %v1374_v50 = vmul.f32 %v4480_v33, %v4480_v33  ;;  %v1379_v3 = vmul.f32 %v4483_v0, %v4483_v0  ;;  %v1045_v1 = vpop.f32.mrf.mxu0  ;;  %v1238_v26 = vpop.f32.mrf.mxu1 }
 0x2f8   :  { %v2255_v46 = vmul.f32 0.5, %v2127_v53  ;;  %3138 = vtanh.f32 %v1878_v27  ;;  %v1752_v47 = vadd.f32 %v1624_v28, %v4411_v9  ;;  %v4505_v52 = vadd.f32 %v1232_v49, %v4041_v24  ;;  %v4516_v49 = vpop.permute.xlu1 %774 }
 0x2f9   :  { %v3129_v23 = vpop.eup %3128  ;;  %3140 = vtanh.f32 %v1879_v25  ;;  %v1754_v6 = vadd.f32 %v1626_v56, %v4419_v38  ;;  %v1757_v7 = vadd.f32 %v1629_v20, %v4422_v62  ;;  %v4511_v13 = vadd.f32 %v4434_v45, %v4039_v22  ;;  %v1047_v32 = vpop.f32.mrf.mxu0 }
 0x2fa   :  { %3142 = vtanh.f32 %v1881_v44  ;;  %v1883_v42 = vmul.f32 0.7978846, %v1755_v36  ;;  %v1631_v53 = vmul.f32 0.044715, %v1503_v18  ;;  %v1505_v27 = vmul.f32 %v1377_v10, %v4472_v19 }
 0x2fb   :  { %v4514_v28 = vpop.eup %3130  ;;  %v2257_v16 = vmul.f32 0.5, %v2129_v8  ;;  %v1628_v25 = vmul.f32 0.044715, %v1500_v31  ;;  %v1502_v56 = vmul.f32 %v1374_v50, %v4480_v33  ;;  %v1507_v20 = vmul.f32 %v1379_v3, %v4483_v0  ;;  %v4530_v8 = vpop.permute.xlu0 %789 }
 0x2fc   :  { %5856 = vst [vmem:[#allocation95_spill] sm:$0xff] %v4514_v28  ;;  %v4520_v5 = vpop.eup %3132  ;;  %v4523_v45 = vmul.f32 %v2255_v46, %v4294_v21  ;;  %v1880_v44 = vmul.f32 0.7978846, %v1752_v47  ;;  %v1381_v10 = vmul.f32 %v4505_v52, %v4505_v52  ;;  %v4528_v36 = vadd.f32 %v1045_v1, %v4035_v4  ;;  %5859 = vst [vmem:[#allocation98_spill] sm:$0xff] %v4530_v8 }
 0x2fd   :  { %5857 = vst [vmem:[#allocation96_spill] sm:$0xff] %v4520_v5  ;;  %v3135_v18 = vpop.eup %3134  ;;  %v2131_v31 = vadd.f32 1.0, %v3129_v23  ;;  %v1882_v50 = vmul.f32 0.7978846, %v1754_v6  ;;  %v1885_v15 = vmul.f32 0.7978846, %v1757_v7  ;;  %v1376_v3 = vmul.f32 %v4511_v13, %v4511_v13 }
 0x2fe   :  { %5858 = vst [vmem:[#allocation97_spill] sm:$0xff] %v4523_v45  ;;  %3144 = vtanh.f32 %v1883_v42  ;;  %v1759_v21 = vadd.f32 %v1631_v53, %v4443_v59  ;;  %v1633_v46 = vmul.f32 0.044715, %v1505_v27  ;;  %v4536_v47 = vadd.f32 %v1238_v26, %v4035_v4  ;;  %v4552_v53 = vpop.permute.xlu1 %764 }
 0x2ff   :  { %v1756_v1 = vadd.f32 %v1628_v25, %v4453_v61  ;;  %v1630_v17 = vmul.f32 0.044715, %v1502_v56  ;;  %v4541_v12 = vadd.f32 %v4455_v14, %v4039_v22  ;;  %v1635_v23 = vmul.f32 0.044715, %v1507_v20  ;;  %v1240_v56 = vpop.f32.mrf.mxu1  ;;  %v1049_v20 = vpop.f32.mrf.mxu0 }
 0x300   :  { %v4544_v6 = vmul.f32 %v2257_v16, %v4308_v60  ;;  %v1509_v42 = vmul.f32 %v1381_v10, %v4505_v52  ;;  %v4548_v7 = vadd.f32 %v1041_v11, %v4041_v24  ;;  %v1383_v26 = vmul.f32 %v4528_v36, %v4528_v36  ;;  %v4560_v10 = vpop.permute.xlu0 %779 }
 0x301   :  { %v2259_v27 = vmul.f32 0.5, %v2131_v31  ;;  %v2133_v25 = vadd.f32 1.0, %v3135_v18  ;;  %3146 = vtanh.f32 %v1880_v44  ;;  %v1504_v22 = vmul.f32 %v1376_v3, %v4511_v13  ;;  %5862 = vst [vmem:[#allocation101_spill] sm:$0xff] %v4560_v10 }
 0x302   :  { %5860 = vst [vmem:[#allocation99_spill] sm:$0xff] %v4544_v6  ;;  %v4555_v14 = vpop.eup %3136  ;;  %3148 = vtanh.f32 %v1885_v15  ;;  %v1887_v60 = vmul.f32 0.7978846, %v1759_v21  ;;  %v1761_v16 = vadd.f32 %v1633_v46, %v4472_v19  ;;  %v1385_v11 = vmul.f32 %v4536_v47, %v4536_v47 }
 0x303   :  { %5861 = vst [vmem:[#allocation100_spill] sm:$0xff] %v4555_v14  ;;  %v1884_v34 = vmul.f32 0.7978846, %v1756_v1  ;;  %v1758_v31 = vadd.f32 %v1630_v17, %v4480_v33  ;;  %v1378_v44 = vmul.f32 %v4541_v12, %v4541_v12  ;;  %v1763_v18 = vadd.f32 %v1635_v23, %v4483_v0 }
 0x304   :  { %v1637_v3 = vmul.f32 0.044715, %v1509_v42  ;;  %v1380_v15 = vmul.f32 %v4548_v7, %v4548_v7  ;;  %v4570_v21 = vadd.f32 %v4501_v51, %v4041_v24  ;;  %v1511_v46 = vmul.f32 %v1383_v26, %v4528_v36  ;;  %v1242_v24 = vpop.f32.mrf.mxu1 }
 0x305   :  { %v4573_v40 = vpop.eup %3138  ;;  %v2261_v1 = vmul.f32 0.5, %v2133_v25  ;;  %3150 = vtanh.f32 %v1882_v50  ;;  %v1632_v17 = vmul.f32 0.044715, %v1504_v22  ;;  %v4576_v30 = vadd.f32 %v1049_v20, %v4037_v43  ;;  %v1051_v50 = vpop.f32.mrf.mxu0 }
 0x306   :  { %5863 = vst [vmem:[#allocation102_spill] sm:$0xff] %v4573_v40  ;;  %v3141_v58 = vpop.eup %3140  ;;  %v4579_v23 = vmul.f32 %v2259_v27, %v4332_v48  ;;  %3152 = vtanh.f32 %v1887_v60  ;;  %v1889_v42 = vmul.f32 0.7978846, %v1761_v16  ;;  %v1513_v8 = vmul.f32 %v1385_v11, %v4536_v47  ;;  %v4583_v22 = vpop.permute.xlu1 %754 }
 0x307   :  { %v3143_v51 = vpop.eup %3142  ;;  %3154 = vtanh.f32 %v1884_v34  ;;  %v1886_v26 = vmul.f32 0.7978846, %v1758_v31  ;;  %v1506_v54 = vmul.f32 %v1378_v44, %v4541_v12  ;;  %v1891_v25 = vmul.f32 0.7978846, %v1763_v18  ;;  %v4589_v60 = vpop.permute.xlu0 %769 }
 0x308   :  { %5864 = vst [vmem:[#allocation103_spill] sm:$0xff] %v4579_v23  ;;  %v1765_v20 = vadd.f32 %v1637_v3, %v4505_v52  ;;  %v1508_v6 = vmul.f32 %v1380_v15, %v4548_v7  ;;  %v1382_v48 = vmul.f32 %v4570_v21, %v4570_v21  ;;  %v1639_v27 = vmul.f32 0.044715, %v1511_v46 }
 0x309   :  { %v2135_v16 = vadd.f32 1.0, %v3141_v58  ;;  %v1760_v34 = vadd.f32 %v1632_v17, %v4511_v13  ;;  %v1387_v11 = vmul.f32 %v4576_v30, %v4576_v30  ;;  %v4595_v31 = vadd.f32 %v1242_v24, %v4037_v43  ;;  %v1055_v17 = vpop.f32.mrf.mxu0 }
 0x30a   :  { %v2137_v44 = vadd.f32 1.0, %v3143_v51  ;;  %3156 = vtanh.f32 %v1889_v42  ;;  %v1641_v18 = vmul.f32 0.044715, %v1513_v8  ;;  %v4598_v3 = vadd.f32 %v1047_v32, %v4035_v4  ;;  %v1244_v8 = vpop.f32.mrf.mxu1 }
 0x30b   :  { %v3145_v15 = vpop.eup %3144  ;;  %v4601_v46 = vmul.f32 %v2261_v1, %v4346_v57  ;;  %v1634_v23 = vmul.f32 0.044715, %v1506_v54  ;;  %3158 = vtanh.f32 %v1891_v25  ;;  %v4604_v58 = vadd.f32 %v1240_v56, %v4035_v4  ;;  %v4613_v1 = vpop.permute.xlu1 %744 }
 0x30c   :  { %v1893_v45 = vmul.f32 0.7978846, %v1765_v20  ;;  %v1636_v55 = vmul.f32 0.044715, %v1508_v6  ;;  %v1510_v24 = vmul.f32 %v1382_v48, %v4570_v21  ;;  %v1767_v42 = vadd.f32 %v1639_v27, %v4528_v36  ;;  %v4618_v48 = vpop.permute.xlu0 %759  ;;  %v1248_v63 = vpop.f32.mrf.mxu1 }
 0x30d   :  { %5865 = vst [vmem:[#allocation104_spill] sm:$0xff] %v4601_v46  ;;  %v2263_v51 = vmul.f32 0.5, %v2135_v16  ;;  %3160 = vtanh.f32 %v1886_v26  ;;  %v1515_v32 = vmul.f32 %v1387_v11, %v4576_v30  ;;  %v1389_v57 = vmul.f32 %v4595_v31, %v4595_v31  ;;  %v1057_v46 = vpop.f32.mrf.mxu0 }
 0x30e   :  { %v4611_v54 = vpop.eup %3146  ;;  %v2265_v4 = vmul.f32 0.5, %v2137_v44  ;;  %v1888_v56 = vmul.f32 0.7978846, %v1760_v34  ;;  %v1769_v6 = vadd.f32 %v1641_v18, %v4536_v47  ;;  %v1384_v25 = vmul.f32 %v4598_v3, %v4598_v3 }
 0x30f   :  { %5866 = vst [vmem:[#allocation105_spill] sm:$0xff] %v4611_v54  ;;  %v3149_v20 = vpop.eup %3148  ;;  %v2139_v26 = vadd.f32 1.0, %v3145_v15  ;;  %v1762_v27 = vadd.f32 %v1634_v23, %v4541_v12  ;;  %v1386_v16 = vmul.f32 %v4604_v58, %v4604_v58  ;;  %v4624_v11 = vadd.f32 %v1051_v50, %v4037_v43 }
 0x310   :  { %3162 = vtanh.f32 %v1893_v45  ;;  %v1764_v34 = vadd.f32 %v1636_v55, %v4548_v7  ;;  %v1638_v44 = vmul.f32 0.044715, %v1510_v24  ;;  %v1895_v18 = vmul.f32 0.7978846, %v1767_v42 }
 0x311   :  { %v4628_v39 = vmul.f32 %v2263_v51, %v4382_v2  ;;  %v1643_v37 = vmul.f32 0.044715, %v1515_v32  ;;  %v1517_v15 = vmul.f32 %v1389_v57, %v4595_v31  ;;  %v4632_v23 = vadd.f32 %v1244_v8, %v4037_v43  ;;  %v1059_v32 = vpop.f32.mrf.mxu0  ;;  %v735_v8 = vpop.permute.xlu1 %734 }
 0x312   :  { %v4634_v40 = vpop.eup %3150  ;;  %v4637_v50 = vmul.f32 %v2265_v4, %v4385_v29  ;;  %3164 = vtanh.f32 %v1888_v56  ;;  %v1897_v45 = vmul.f32 0.7978846, %v1769_v6  ;;  %v1512_v55 = vmul.f32 %v1384_v25, %v4598_v3  ;;  %v1250_v4 = vpop.f32.mrf.mxu1 }
 0x313   :  { %5867 = vst [vmem:[#allocation106_spill] sm:$0xff] %v4628_v39  ;;  %5868 = vst [vmem:[#allocation107_spill] sm:$0xff] %v4634_v40  ;;  %v3153_v24 = vpop.eup %3152  ;;  %v2141_v42 = vadd.f32 1.0, %v3149_v20  ;;  %v1890_v5 = vmul.f32 0.7978846, %v1762_v27  ;;  %v1514_v2 = vmul.f32 %v1386_v16, %v4604_v58  ;;  %v1388_v51 = vmul.f32 %v4624_v11, %v4624_v11  ;;  %v4646_v56 = vpop.permute.xlu0 %749 }
 0x314   :  { %5869 = vst [vmem:[#allocation108_spill] sm:$0xff] %v4637_v50  ;;  %v4643_v43 = vpop.eup %3154  ;;  %v2267_v57 = vmul.f32 0.5, %v2139_v26  ;;  %v1892_v14 = vmul.f32 0.7978846, %v1764_v34  ;;  %v1766_v29 = vadd.f32 %v1638_v44, %v4570_v21  ;;  %3166 = vtanh.f32 %v1895_v18  ;;  %v1061_v39 = vpop.f32.mrf.mxu0 }
 0x315   :  { %5870 = vst [vmem:[#allocation109_spill] sm:$0xff] %v4643_v43  ;;  %v1771_v6 = vadd.f32 %v1643_v37, %v4576_v30  ;;  %v1645_v25 = vmul.f32 0.044715, %v1517_v15  ;;  %v1390_v20 = vmul.f32 %v4632_v23, %v4632_v23  ;;  %v4651_v27 = vadd.f32 %v1055_v17, %v735_v8 }
 0x316   :  { %v2143_v16 = vadd.f32 1.0, %v3153_v24  ;;  %3168 = vtanh.f32 %v1897_v45  ;;  %v1640_v28 = vmul.f32 0.044715, %v1512_v55  ;;  %v4653_v50 = vadd.f32 %v1248_v63, %v735_v8  ;;  %v1252_v24 = vpop.f32.mrf.mxu1 }
 0x317   :  { %5871 = vst [vmem:[#allocation110_spill] sm:$0xff] %v4651_v27  ;;  %v3157_v26 = vpop.eup %3156  ;;  %3170 = vtanh.f32 %v1890_v5  ;;  %v1642_v34 = vmul.f32 0.044715, %v1514_v2  ;;  %v1516_v44 = vmul.f32 %v1388_v51, %v4624_v11  ;;  %v4656_v18 = vadd.f32 %v1057_v46, %v735_v8 }
 0x318   :  { %5872 = vst [vmem:[#allocation111_spill] sm:$0xff] %v4653_v50  ;;  %v3159_v37 = vpop.eup %3158  ;;  %v4659_v15 = vmul.f32 %v2267_v57, %v4402_v41  ;;  %v2269_v35 = vmul.f32 0.5, %v2141_v42  ;;  %3172 = vtanh.f32 %v1892_v14  ;;  %v1894_v17 = vmul.f32 0.7978846, %v1766_v29  ;;  %v740_v14 = vpop.permute.xlu0 %739 }
 0x319   :  { %5873 = vst [vmem:[#allocation112_spill] sm:$0xff] %v4656_v18  ;;  %v1899_v45 = vmul.f32 0.7978846, %v1771_v6  ;;  %v1773_v63 = vadd.f32 %v1645_v25, %v4595_v31  ;;  %v1518_v55 = vmul.f32 %v1390_v20, %v4632_v23  ;;  %v1391_v5 = vmul.f32 %v4651_v27, %v4651_v27  ;;  %v1065_v25 = vpop.f32.mrf.mxu0 }
 0x31a   :  { %5874 = vst [vmem:[#allocation113_spill] sm:$0xff] %v4659_v15  ;;  %v4665_v2 = vpop.eup %3160  ;;  %v2271_v46 = vmul.f32 0.5, %v2143_v16  ;;  %v2145_v51 = vadd.f32 1.0, %v3157_v26  ;;  %v1768_v33 = vadd.f32 %v1640_v28, %v4598_v3  ;;  %v1393_v41 = vmul.f32 %v4653_v50, %v4653_v50  ;;  %v1254_v28 = vpop.f32.mrf.mxu1 }
 0x31b   :  { %5875 = vst [vmem:[#allocation114_spill] sm:$0xff] %v4665_v2  ;;  %v1770_v42 = vadd.f32 %v1642_v34, %v4604_v58  ;;  %v1644_v57 = vmul.f32 0.044715, %v1516_v44  ;;  %v1392_v29 = vmul.f32 %v4656_v18, %v4656_v18  ;;  %v4673_v6 = vadd.f32 %v1250_v4, %v735_v8 }
 0x31c   :  { %v4676_v20 = vmul.f32 %v2269_v35, %v4422_v62  ;;  %v2147_v16 = vadd.f32 1.0, %v3159_v37  ;;  %3174 = vtanh.f32 %v1894_v17  ;;  %v4678_v26 = vadd.f32 %v1059_v32, %v740_v14 }
 0x31d   :  { %5876 = vst [vmem:[#allocation115_spill] sm:$0xff] %v4673_v6  ;;  %v3163_v15 = vpop.eup %3162  ;;  %3176 = vtanh.f32 %v1899_v45  ;;  %v1901_v38 = vmul.f32 0.7978846, %v1773_v63  ;;  %v1646_v61 = vmul.f32 0.044715, %v1518_v55  ;;  %v1519_v34 = vmul.f32 %v1391_v5, %v4651_v27  ;;  %v4691_v45 = vpop.f32.mrf.mxu0 }
 0x31e   :  { %5877 = vst [vmem:[#allocation116_spill] sm:$0xff] %v4676_v20  ;;  %5878 = vst [vmem:[#allocation117_spill] sm:$0xff] %v4678_v26  ;;  %v4682_v44 = vmul.f32 %v2271_v46, %v4443_v59  ;;  %v2273_v8 = vmul.f32 0.5, %v2145_v51  ;;  %v1896_v4 = vmul.f32 0.7978846, %v1768_v33  ;;  %v1521_v9 = vmul.f32 %v1393_v41, %v4653_v50  ;;  %v1258_v5 = vpop.f32.mrf.mxu1 }
 0x31f   :  { %v4685_v35 = vpop.eup %3164  ;;  %v1898_v62 = vmul.f32 0.7978846, %v1770_v42  ;;  %v1772_v32 = vadd.f32 %v1644_v57, %v4624_v11  ;;  %v1520_v37 = vmul.f32 %v1392_v29, %v4656_v18  ;;  %v1394_v17 = vmul.f32 %v4673_v6, %v4673_v6 }
 0x320   :  { %v2275_v63 = vmul.f32 0.5, %v2147_v16  ;;  %v2149_v55 = vadd.f32 1.0, %v3163_v15  ;;  %v1395_v59 = vmul.f32 %v4678_v26, %v4678_v26  ;;  %v4695_v33 = vadd.f32 %v1252_v24, %v740_v14 }
 0x321   :  { %v3167_v46 = vpop.eup %3166  ;;  %3178 = vtanh.f32 %v1901_v38  ;;  %v1774_v51 = vadd.f32 %v1646_v61, %v4632_v23  ;;  %v1647_v41 = vmul.f32 0.044715, %v1519_v34  ;;  %v4699_v42 = vadd.f32 %v1065_v25, %v4613_v1  ;;  %v1069_v38 = vpop.f32.mrf.mxu0 }
 0x322   :  { %5879 = vst [vmem:[#allocation118_spill] sm:$0xff] %v4695_v33  ;;  %v4702_v57 = vmul.f32 %v2273_v8, %v4472_v19  ;;  %3180 = vtanh.f32 %v1896_v4  ;;  %v1649_v29 = vmul.f32 0.044715, %v1521_v9  ;;  %v4704_v15 = vadd.f32 %v1061_v39, %v740_v14  ;;  %v1260_v39 = vpop.f32.mrf.mxu1 }
 0x323   :  { %5880 = vst [vmem:[#allocation119_spill] sm:$0xff] %v4699_v42  ;;  %v3169_v16 = vpop.eup %3168  ;;  %3182 = vtanh.f32 %v1898_v62  ;;  %v1900_v24 = vmul.f32 0.7978846, %v1772_v32  ;;  %v1648_v20 = vmul.f32 0.044715, %v1520_v37  ;;  %v1522_v2 = vmul.f32 %v1394_v17, %v4673_v6 }
 0x324   :  { %5881 = vst [vmem:[#allocation120_spill] sm:$0xff] %v4704_v15  ;;  %v4707_v40 = vpop.eup %3170  ;;  %v4710_v61 = vmul.f32 %v2275_v63, %v4483_v0  ;;  %v2151_v25 = vadd.f32 1.0, %v3167_v46  ;;  %v1523_v19 = vmul.f32 %v1395_v59, %v4678_v26  ;;  %v1397_v9 = vmul.f32 %v4695_v33, %v4695_v33 }
 0x325   :  { %v4715_v34 = vpop.eup %3172  ;;  %v2277_v8 = vmul.f32 0.5, %v2149_v55  ;;  %v1902_v4 = vmul.f32 0.7978846, %v1774_v51  ;;  %v1775_v62 = vadd.f32 %v1647_v41, %v4651_v27  ;;  %v1399_v32 = vmul.f32 %v4699_v42, %v4699_v42  ;;  %v4729_v51 = vpop.f32.mrf.mxu0 }
 0x326   :  { %v2153_v37 = vadd.f32 1.0, %v3169_v16  ;;  %v1777_v0 = vadd.f32 %v1649_v29, %v4653_v50  ;;  %v1396_v17 = vmul.f32 %v4704_v15, %v4704_v15  ;;  %v4723_v63 = vadd.f32 %v1254_v28, %v740_v14  ;;  %v1262_v50 = vpop.f32.mrf.mxu1 }
 0x327   :  { %3184 = vtanh.f32 %v1900_v24  ;;  %v1776_v59 = vadd.f32 %v1648_v20, %v4656_v18  ;;  %v1650_v46 = vmul.f32 0.044715, %v1522_v2  ;;  %v4727_v55 = vadd.f32 %v1258_v5, %v4613_v1 }
 0x328   :  { %5882 = vst [vmem:[#allocation121_spill] sm:$0xff] %v4723_v63  ;;  %v2279_v41 = vmul.f32 0.5, %v2151_v25  ;;  %v1651_v27 = vmul.f32 0.044715, %v1523_v19  ;;  %v1525_v16 = vmul.f32 %v1397_v9, %v4695_v33  ;;  %v4733_v29 = vadd.f32 %v1069_v38, %v4646_v56 }
 0x329   :  { %5883 = vst [vmem:[#allocation122_spill] sm:$0xff] %v4727_v55  ;;  %v4735_v10 = vpop.eup %3174  ;;  %v4738_v14 = vmul.f32 %v2277_v8, %v4505_v52  ;;  %3186 = vtanh.f32 %v1902_v4  ;;  %v1903_v2 = vmul.f32 0.7978846, %v1775_v62  ;;  %v1527_v20 = vmul.f32 %v1399_v32, %v4699_v42  ;;  %v1075_v8 = vpop.f32.mrf.mxu0 }
 0x32a   :  { %5884 = vst [vmem:[#allocation123_spill] sm:$0xff] %v4733_v29  ;;  %v3177_v28 = vpop.eup %3176  ;;  %v2281_v5 = vmul.f32 0.5, %v2153_v37  ;;  %v1905_v24 = vmul.f32 0.7978846, %v1777_v0  ;;  %v1524_v25 = vmul.f32 %v1396_v17, %v4704_v15  ;;  %v1398_v19 = vmul.f32 %v4723_v63, %v4723_v63  ;;  %v1264_v0 = vpop.f32.mrf.mxu1 }
 0x32b   :  { %v1904_v38 = vmul.f32 0.7978846, %v1776_v59  ;;  %v1778_v9 = vadd.f32 %v1650_v46, %v4673_v6  ;;  %v1401_v18 = vmul.f32 %v4727_v55, %v4727_v55  ;;  %v4748_v52 = vadd.f32 %v1262_v50, %v4646_v56 }
 0x32c   :  { %v4751_v4 = vmul.f32 %v2279_v41, %v4528_v36  ;;  %v1779_v62 = vadd.f32 %v1651_v27, %v4678_v26  ;;  %v1653_v32 = vmul.f32 0.044715, %v1525_v16  ;;  %v1403_v37 = vmul.f32 %v4733_v29, %v4733_v29 }
 0x32d   :  { %5885 = vst [vmem:[#allocation124_spill] sm:$0xff] %v4748_v52  ;;  %v2155_v17 = vadd.f32 1.0, %v3177_v28  ;;  %3188 = vtanh.f32 %v1903_v2  ;;  %v1655_v59 = vmul.f32 0.044715, %v1527_v20  ;;  %v4758_v46 = vadd.f32 %v4691_v45, %v4613_v1 }
 0x32e   :  { %v3179_v50 = vpop.eup %3178  ;;  %v4761_v6 = vmul.f32 %v2281_v5, %v4536_v47  ;;  %v1652_v36 = vmul.f32 0.044715, %v1524_v25  ;;  %v1526_v41 = vmul.f32 %v1398_v19, %v4723_v63  ;;  %v4765_v27 = vadd.f32 %v1075_v8, %v4583_v22  ;;  %v1268_v19 = vpop.f32.mrf.mxu1 }
 0x32f   :  { %5886 = vst [vmem:[#allocation125_spill] sm:$0xff] %v4758_v46  ;;  %v4767_v16 = vpop.eup %3180  ;;  %v1906_v26 = vmul.f32 0.7978846, %v1778_v9  ;;  %v1529_v2 = vmul.f32 %v1401_v18, %v4727_v55  ;;  %v4771_v20 = vadd.f32 %v1260_v39, %v4613_v1  ;;  %v1405_v45 = vmul.f32 %v4748_v52, %v4748_v52 }
 0x330   :  { %5887 = vst [vmem:[#allocation126_spill] sm:$0xff] %v4765_v27  ;;  %v4775_v28 = vpop.eup %3182  ;;  %3190 = vtanh.f32 %v1905_v24  ;;  %v1907_v47 = vmul.f32 0.7978846, %v1779_v62  ;;  %v1781_v5 = vadd.f32 %v1653_v32, %v4695_v33  ;;  %v1531_v25 = vmul.f32 %v1403_v37, %v4733_v29  ;;  %v1077_v62 = vpop.f32.mrf.mxu0 }
 0x331   :  { %5888 = vst [vmem:[#allocation127_spill] sm:$0xff] %v4771_v20  ;;  %v2283_v8 = vmul.f32 0.5, %v2155_v17  ;;  %v2157_v43 = vadd.f32 1.0, %v3179_v50  ;;  %v1783_v9 = vadd.f32 %v1655_v59, %v4699_v42  ;;  %v1400_v1 = vmul.f32 %v4758_v46, %v4758_v46 }
 0x332   :  { %3192 = vtanh.f32 %v1904_v38  ;;  %v1780_v18 = vadd.f32 %v1652_v36, %v4704_v15  ;;  %v1654_v39 = vmul.f32 0.044715, %v1526_v41  ;;  %v1407_v24 = vmul.f32 %v4765_v27, %v4765_v27  ;;  %v1270_v36 = vpop.f32.mrf.mxu1 }
 0x333   :  { %3194 = vtanh.f32 %v1906_v26  ;;  %v1657_v32 = vmul.f32 0.044715, %v1529_v2  ;;  %v1402_v37 = vmul.f32 %v4771_v20, %v4771_v20  ;;  %v1533_v17 = vmul.f32 %v1405_v45, %v4748_v52 }
 0x334   :  { %v4788_v50 = vpop.eup %3184  ;;  %3196 = vtanh.f32 %v1907_v47  ;;  %v1909_v59 = vmul.f32 0.7978846, %v1781_v5  ;;  %v1659_v33 = vmul.f32 0.044715, %v1531_v25  ;;  %v4792_v38 = vadd.f32 %v4729_v51, %v4646_v56  ;;  %v1079_v51 = vpop.f32.mrf.mxu0 }
 0x335   :  { %v4795_v41 = vmul.f32 %v2283_v8, %v4576_v30  ;;  %v2285_v26 = vmul.f32 0.5, %v2157_v43  ;;  %v1911_v2 = vmul.f32 0.7978846, %v1783_v9  ;;  %v1528_v42 = vmul.f32 %v1400_v1, %v4758_v46 }
 0x336   :  { %5889 = vst [vmem:[#allocation128_spill] sm:$0xff] %v4792_v38  ;;  %v4798_v15 = vpop.eup %3186  ;;  %v1908_v45 = vmul.f32 0.7978846, %v1780_v18  ;;  %v1782_v54 = vadd.f32 %v1654_v39, %v4723_v63  ;;  %v4802_v47 = vadd.f32 %v1264_v0, %v4646_v56  ;;  %v1535_v5 = vmul.f32 %v1407_v24, %v4765_v27  ;;  %v1272_v0 = vpop.f32.mrf.mxu1 }
 0x337   :  { %v1785_v25 = vadd.f32 %v1657_v32, %v4727_v55  ;;  %v1530_v30 = vmul.f32 %v1402_v37, %v4771_v20  ;;  %v1661_v8 = vmul.f32 0.044715, %v1533_v17  ;;  %v4808_v43 = vadd.f32 %v1268_v19, %v4583_v22 }
 0x338   :  { %5890 = vst [vmem:[#allocation129_spill] sm:$0xff] %v4802_v47  ;;  %3198 = vtanh.f32 %v1909_v59  ;;  %v1787_v9 = vadd.f32 %v1659_v33, %v4733_v29  ;;  %v1404_v1 = vmul.f32 %v4792_v38, %v4792_v38  ;;  %v4814_v56 = vadd.f32 %v1077_v62, %v4583_v22 }
 0x339   :  { %5891 = vst [vmem:[#allocation130_spill] sm:$0xff] %v4808_v43  ;;  %v4817_v18 = vmul.f32 %v2285_v26, %v4595_v31  ;;  %3200 = vtanh.f32 %v1911_v2  ;;  %v1656_v39 = vmul.f32 0.044715, %v1528_v42  ;;  %v4820_v24 = vadd.f32 %v1079_v51, %v4618_v48  ;;  %v1081_v26 = vpop.f32.mrf.mxu0 }
 0x33a   :  { %5892 = vst [vmem:[#allocation131_spill] sm:$0xff] %v4814_v56  ;;  %v3189_v19 = vpop.eup %3188  ;;  %3202 = vtanh.f32 %v1908_v45  ;;  %v1910_v32 = vmul.f32 0.7978846, %v1782_v54  ;;  %v1406_v33 = vmul.f32 %v4802_v47, %v4802_v47  ;;  %v1663_v37 = vmul.f32 0.044715, %v1535_v5  ;;  %v1274_v45 = vpop.f32.mrf.mxu1 }
 0x33b   :  { %v1913_v17 = vmul.f32 0.7978846, %v1785_v25  ;;  %v1658_v59 = vmul.f32 0.044715, %v1530_v30  ;;  %v1789_v62 = vadd.f32 %v1661_v8, %v4748_v52  ;;  %v1409_v31 = vmul.f32 %v4808_v43, %v4808_v43 }
 0x33c   :  { %v1915_v2 = vmul.f32 0.7978846, %v1787_v9  ;;  %v1532_v42 = vmul.f32 %v1404_v1, %v4792_v38  ;;  %v1408_v51 = vmul.f32 %v4814_v56, %v4814_v56  ;;  %v4831_v54 = vadd.f32 %v1270_v36, %v4583_v22 }
 0x33d   :  { %v3191_v55 = vpop.eup %3190  ;;  %v4833_v5 = vadd.f32 1.0, %v3189_v19  ;;  %v1784_v25 = vadd.f32 %v1656_v39, %v4758_v46  ;;  %v1411_v30 = vmul.f32 %v4820_v24, %v4820_v24  ;;  %v4839_v8 = vadd.f32 %v1272_v0, %v4618_v48 }
 0x33e   :  { %5893 = vst [vmem:[#allocation132_spill] sm:$0xff] %v4831_v54  ;;  %3204 = vtanh.f32 %v1910_v32  ;;  %v1534_v9 = vmul.f32 %v1406_v33, %v4802_v47  ;;  %v1791_v1 = vadd.f32 %v1663_v37, %v4765_v27  ;;  %v4844_v22 = vadd.f32 %v1081_v26, %v4618_v48  ;;  %v1278_v37 = vpop.f32.mrf.mxu1 }
 0x33f   :  { %5894 = vst [vmem:[#allocation133_spill] sm:$0xff] %v4833_v5  ;;  %v4846_v36 = vpop.eup %3192  ;;  %3206 = vtanh.f32 %v1913_v17  ;;  %v1786_v19 = vadd.f32 %v1658_v59, %v4771_v20  ;;  %v1917_v39 = vmul.f32 0.7978846, %v1789_v62  ;;  %v1537_v63 = vmul.f32 %v1409_v31, %v4808_v43  ;;  %v1085_v5 = vpop.f32.mrf.mxu0 }
 0x340   :  { %5895 = vst [vmem:[#allocation134_spill] sm:$0xff] %v4844_v22  ;;  %5896 = vst [vmem:[#allocation135_spill] sm:$0xff] %v4846_v36  ;;  %v4850_v52 = vpop.eup %3194  ;;  %3208 = vtanh.f32 %v1915_v2  ;;  %v1660_v0 = vmul.f32 0.044715, %v1532_v42  ;;  %v1536_v32 = vmul.f32 %v1408_v51, %v4814_v56  ;;  %v1410_v33 = vmul.f32 %v4831_v54, %v4831_v54 }
 0x341   :  { %5897 = vst [vmem:[#allocation136_spill] sm:$0xff] %v4850_v52  ;;  %v3197_v26 = vpop.eup %3196  ;;  %v1912_v29 = vmul.f32 0.7978846, %v1784_v25  ;;  %v1539_v17 = vmul.f32 %v1411_v30, %v4820_v24  ;;  %v1413_v59 = vmul.f32 %v4839_v8, %v4839_v8  ;;  %v4859_v62 = vadd.f32 %v1274_v45, %v4618_v48 }
 0x342   :  { %v1662_v31 = vmul.f32 0.044715, %v1534_v9  ;;  %v1919_v20 = vmul.f32 0.7978846, %v1791_v1  ;;  %v1412_v2 = vmul.f32 %v4844_v22, %v4844_v22  ;;  %v4864_v42 = vadd.f32 %v1085_v5, %v4552_v53  ;;  %v1087_v9 = vpop.f32.mrf.mxu0 }
 0x343   :  { %5898 = vst [vmem:[#allocation137_spill] sm:$0xff] %v4859_v62  ;;  %v4866_v51 = vadd.f32 1.0, %v3191_v55  ;;  %v1914_v46 = vmul.f32 0.7978846, %v1786_v19  ;;  %v1665_v25 = vmul.f32 0.044715, %v1537_v63  ;;  %v4869_v30 = vadd.f32 %v1278_v37, %v4552_v53 }
 0x344   :  { %3210 = vtanh.f32 %v1917_v39  ;;  %v1788_v27 = vadd.f32 %v1660_v0, %v4792_v38  ;;  %v1664_v48 = vmul.f32 0.044715, %v1536_v32  ;;  %v1538_v45 = vmul.f32 %v1410_v33, %v4831_v54 }
 0x345   :  { %5899 = vst [vmem:[#allocation138_spill] sm:$0xff] %v4866_v51  ;;  %5900 = vst [vmem:[#allocation139_spill] sm:$0xff] %v4869_v30  ;;  %v3199_v1 = vpop.eup %3198  ;;  %3212 = vtanh.f32 %v1912_v29  ;;  %v1667_v52 = vmul.f32 0.044715, %v1539_v17  ;;  %v1541_v5 = vmul.f32 %v1413_v59, %v4839_v8  ;;  %v1414_v55 = vmul.f32 %v4859_v62, %v4859_v62 }
 0x346   :  { %v3201_v19 = vpop.eup %3200  ;;  %v1790_v63 = vadd.f32 %v1662_v31, %v4802_v47  ;;  %3214 = vtanh.f32 %v1919_v20  ;;  %v1540_v39 = vmul.f32 %v1412_v2, %v4844_v22  ;;  %v1415_v0 = vmul.f32 %v4864_v42, %v4864_v42  ;;  %v1280_v20 = vpop.f32.mrf.mxu1 }
 0x347   :  { %v4880_v32 = vpop.eup %3202  ;;  %v2163_v33 = vadd.f32 1.0, %v3197_v26  ;;  %3216 = vtanh.f32 %v1914_v46  ;;  %v1793_v29 = vadd.f32 %v1665_v25, %v4808_v43  ;;  %v1417_v37 = vmul.f32 %v4869_v30, %v4869_v30  ;;  %v1089_v47 = vpop.f32.mrf.mxu0 }
 0x348   :  { %5901 = vst [vmem:[#allocation140_spill] sm:$0xff] %v4880_v32  ;;  %v2165_v17 = vadd.f32 1.0, %v3199_v1  ;;  %v1916_v59 = vmul.f32 0.7978846, %v1788_v27  ;;  %v1792_v51 = vadd.f32 %v1664_v48, %v4814_v56  ;;  %v1666_v31 = vmul.f32 0.044715, %v1538_v45 }
 0x349   :  { %v2167_v2 = vadd.f32 1.0, %v3201_v19  ;;  %v1795_v38 = vadd.f32 %v1667_v52, %v4820_v24  ;;  %v1669_v36 = vmul.f32 0.044715, %v1541_v5  ;;  %v1542_v32 = vmul.f32 %v1414_v55, %v4859_v62 }
 0x34a   :  { %v1918_v26 = vmul.f32 0.7978846, %v1790_v63  ;;  %v1668_v46 = vmul.f32 0.044715, %v1540_v39  ;;  %v1543_v25 = vmul.f32 %v1415_v0, %v4864_v42  ;;  %v4890_v43 = vadd.f32 %v1087_v9, %v4552_v53  ;;  %v1282_v39 = vpop.f32.mrf.mxu1 }
 0x34b   :  { %v4892_v1 = vpop.eup %3204  ;;  %v4894_v27 = vmul.f32 0.5, %v2163_v33  ;;  %v1921_v48 = vmul.f32 0.7978846, %v1793_v29  ;;  %v1545_v45 = vmul.f32 %v1417_v37, %v4869_v30  ;;  %v4898_v19 = vadd.f32 %v1089_v47, %v4589_v60 }
 0x34c   :  { %5902 = vst [vmem:[#allocation141_spill] sm:$0xff] %v4890_v43  ;;  %5903 = vst [vmem:[#allocation142_spill] sm:$0xff] %v4892_v1  ;;  %v3207_v52 = vpop.eup %3206  ;;  %v4900_v5 = vmul.f32 0.5, %v2165_v17  ;;  %3218 = vtanh.f32 %v1916_v59  ;;  %v1920_v55 = vmul.f32 0.7978846, %v1792_v51  ;;  %v1794_v63 = vadd.f32 %v1666_v31, %v4831_v54 }
 0x34d   :  { %5904 = vst [vmem:[#allocation143_spill] sm:$0xff] %v4894_v27  ;;  %v3209_v9 = vpop.eup %3208  ;;  %v4903_v0 = vmul.f32 0.5, %v2167_v2  ;;  %v1923_v56 = vmul.f32 0.7978846, %v1795_v38  ;;  %v1797_v33 = vadd.f32 %v1669_v36, %v4839_v8  ;;  %v1670_v29 = vmul.f32 0.044715, %v1542_v32 }
 0x34e   :  { %5905 = vst [vmem:[#allocation144_spill] sm:$0xff] %v4900_v5  ;;  %3220 = vtanh.f32 %v1918_v26  ;;  %v1796_v37 = vadd.f32 %v1668_v46, %v4844_v22  ;;  %v1671_v47 = vmul.f32 0.044715, %v1543_v25  ;;  %v1416_v17 = vmul.f32 %v4890_v43, %v4890_v43  ;;  %v1091_v25 = vpop.f32.mrf.mxu0 }
 0x34f   :  { %5906 = vst [vmem:[#allocation145_spill] sm:$0xff] %v4903_v0  ;;  %3222 = vtanh.f32 %v1921_v48  ;;  %v1673_v59 = vmul.f32 0.044715, %v1545_v45  ;;  %v1419_v51 = vmul.f32 %v4898_v19, %v4898_v19  ;;  %v4912_v31 = vadd.f32 %v1282_v39, %v4589_v60 }
 0x350   :  { %v4914_v2 = vadd.f32 1.0, %v3207_v52  ;;  %v2171_v38 = vadd.f32 1.0, %v3209_v9  ;;  %3224 = vtanh.f32 %v1920_v55  ;;  %v1922_v36 = vmul.f32 0.7978846, %v1794_v63 }
 0x351   :  { %v3211_v32 = vpop.eup %3210  ;;  %3226 = vtanh.f32 %v1923_v56  ;;  %v1925_v26 = vmul.f32 0.7978846, %v1797_v33  ;;  %v1798_v46 = vadd.f32 %v1670_v29, %v4859_v62  ;;  %v2152_v48 = vadd.f32 1.0, %v4767_v16 }
 0x352   :  { %5907 = vst [vmem:[#allocation146_spill] sm:$0xff] %v4914_v2  ;;  %v4918_v45 = vpop.eup %3212  ;;  %v1924_v5 = vmul.f32 0.7978846, %v1796_v37  ;;  %v1799_v27 = vadd.f32 %v1671_v47, %v4864_v42  ;;  %v1544_v39 = vmul.f32 %v1416_v17, %v4890_v43  ;;  %v4923_v52 = vadd.f32 %v1280_v20, %v4552_v53  ;;  %v1284_v17 = vpop.f32.mrf.mxu1 }
 0x353   :  { %5908 = vst [vmem:[#allocation147_spill] sm:$0xff] %v4918_v45  ;;  %v3215_v55 = vpop.eup %3214  ;;  %v1801_v63 = vadd.f32 %v1673_v59, %v4869_v30  ;;  %v1547_v56 = vmul.f32 %v1419_v51, %v4898_v19  ;;  %v1421_v9 = vmul.f32 %v4912_v31, %v4912_v31  ;;  %v2156_v16 = vadd.f32 1.0, %v4788_v50  ;;  %v5965_v30 = vld [vmem:[#allocation89_spill] sm:$0xff]  ;;  %v5970_v45 = vld [vmem:[#allocation62_spill] sm:$0xff] }
 0x354   :  { %5909 = vst [vmem:[#allocation148_spill] sm:$0xff] %v4923_v52  ;;  %v4930_v33 = vpop.eup %3216  ;;  %v4932_v29 = vadd.f32 1.0, %v3211_v32  ;;  %3228 = vtanh.f32 %v1922_v36  ;;  %v4935_v37 = vadd.f32 %v1091_v25, %v4589_v60  ;;  %v2280_v53 = vmul.f32 0.5, %v2152_v48  ;;  %v1095_v32 = vpop.f32.mrf.mxu0 }
 0x355   :  { %5910 = vst [vmem:[#allocation149_spill] sm:$0xff] %v4930_v33  ;;  %v4937_v20 = vmul.f32 0.5, %v2171_v38  ;;  %3230 = vtanh.f32 %v1925_v26  ;;  %v1926_v47 = vmul.f32 0.7978846, %v1798_v46  ;;  %v2284_v59 = vmul.f32 0.5, %v2156_v16 }
 0x356   :  { %5911 = vst [vmem:[#allocation150_spill] sm:$0xff] %v4935_v37  ;;  %v4939_v51 = vadd.f32 1.0, %v3215_v55  ;;  %v1927_v0 = vmul.f32 0.7978846, %v1799_v27  ;;  %v1672_v2 = vmul.f32 0.044715, %v1544_v39  ;;  %v1418_v50 = vmul.f32 %v4923_v52, %v4923_v52 }
 0x357   :  { %5912 = vst [vmem:[#allocation151_spill] sm:$0xff] %v4937_v20  ;;  %3232 = vtanh.f32 %v1924_v5  ;;  %v1929_v36 = vmul.f32 0.7978846, %v1801_v63  ;;  %v1675_v54 = vmul.f32 0.044715, %v1547_v56  ;;  %v1549_v25 = vmul.f32 %v1421_v9, %v4912_v31 }
 0x358   :  { %v1420_v38 = vmul.f32 %v4935_v37, %v4935_v37  ;;  %v4947_v26 = vadd.f32 %v1284_v17, %v4589_v60  ;;  %v2408_v46 = vmul.f32 %v2280_v53, %v4598_v3  ;;  %v2412_v27 = vmul.f32 %v2284_v59, %v4624_v11  ;;  %v1288_v11 = vpop.f32.mrf.mxu1 }
 0x359   :  { %v4951_v48 = vpop.eup %3218  ;;  %3234 = vtanh.f32 %v1926_v47  ;;  %v4954_v39 = vadd.f32 %v1095_v32, %v4516_v49  ;;  %v2154_v5 = vadd.f32 1.0, %v4775_v28  ;;  %v2158_v55 = vadd.f32 1.0, %v4798_v15 }
 0x35a   :  { %5913 = vst [vmem:[#allocation152_spill] sm:$0xff] %v4947_v26  ;;  %5914 = vst [vmem:[#allocation153_spill] sm:$0xff] %v4951_v48  ;;  %3236 = vtanh.f32 %v1927_v0  ;;  %v1800_v63 = vadd.f32 %v1672_v2, %v4890_v43  ;;  %v1546_v60 = vmul.f32 %v1418_v50, %v4923_v52  ;;  %v2516_v56 = vpack.c.bf16 %v2412_v27, %v2408_v46  ;;  %v5984_v48 = vld [vmem:[#allocation78_spill] sm:$0xff] }
 0x35b   :  { %v4960_v9 = vpop.eup %3220  ;;  %3238 = vtanh.f32 %v1929_v36  ;;  %v1677_v3 = vmul.f32 0.044715, %v1549_v25  ;;  %v2282_v16 = vmul.f32 0.5, %v2154_v5  ;;  %v2286_v53 = vmul.f32 0.5, %v2158_v55 }
 0x35c   :  { %5915 = vst [vmem:[#allocation154_spill] sm:$0xff] %v4960_v9  ;;  %v3223_v47 = vpop.eup %3222  ;;  %v1803_v17 = vadd.f32 %v1675_v54, %v4898_v19  ;;  %v1548_v28 = vmul.f32 %v1420_v38, %v4935_v37  ;;  %v1422_v15 = vmul.f32 %v4947_v26, %v4947_v26  ;;  %2639 = vmatprep.subr.bf16.mxu0 %v2516_v56  ;;  %v2144_v54 = vadd.f32 1.0, %v4685_v35 }
 0x35d   :  { %v2515_v0 = vpack.c.bf16 %v4795_v41, %v4751_v4  ;;  %v4968_v2 = vpop.eup %3224  ;;  %v1423_v59 = vmul.f32 %v4954_v39, %v4954_v39  ;;  %v2410_v50 = vmul.f32 %v2282_v16, %v4604_v58  ;;  %v2414_v32 = vmul.f32 %v2286_v53, %v4632_v23 }
 0x35e   :  { %5916 = vst [vmem:[#allocation155_spill] sm:$0xff] %v4968_v2  ;;  %v3227_v36 = vpop.eup %3226  ;;  %v4976_v25 = vadd.f32 %v1288_v11, %v4516_v49  ;;  %v2148_v38 = vadd.f32 1.0, %v4715_v34  ;;  %v2146_v4 = vadd.f32 1.0, %v4707_v40  ;;  %v2150_v41 = vadd.f32 1.0, %v4735_v10  ;;  %v1097_v40 = vpop.f32.mrf.mxu0 }
 0x35f   :  { %2640 = vmatpush1.bf16.msra.mxu0 %v2515_v0  ;;  %v1674_v46 = vmul.f32 0.044715, %v1546_v60  ;;  %v1805_v27 = vadd.f32 %v1677_v3, %v4912_v31  ;;  %v2518_v5 = vpack.c.bf16 %v2414_v32, %v2410_v50  ;;  %v2272_v58 = vmul.f32 0.5, %v2144_v54 }
 0x360   :  { %v1550_v23 = vmul.f32 %v1422_v15, %v4947_v26  ;;  %v2517_v35 = vpack.c.bf16 %v4817_v18, %v4761_v6  ;;  %v2276_v55 = vmul.f32 0.5, %v2148_v38  ;;  %v2274_v56 = vmul.f32 0.5, %v2146_v4  ;;  %v1290_v15 = vpop.f32.mrf.mxu1 }
 0x361   :  { %v4985_v11 = vpop.eup %3228  ;;  %v2179_v16 = vadd.f32 1.0, %v3227_v36  ;;  %v1931_v34 = vmul.f32 0.7978846, %v1803_v17  ;;  %v1676_v53 = vmul.f32 0.044715, %v1548_v28  ;;  %2712 = vmatprep.subr.bf16.mxu1 %v2518_v5  ;;  %v2278_v10 = vmul.f32 0.5, %v2150_v41 }
 0x362   :  { %5917 = vst [vmem:[#allocation156_spill] sm:$0xff] %v4985_v11  ;;  %v3231_v60 = vpop.eup %3230  ;;  %v1551_v3 = vmul.f32 %v1423_v59, %v4954_v39  ;;  %v1425_v0 = vmul.f32 %v4976_v25, %v4976_v25  ;;  %2713 = vmatpush1.bf16.msra.mxu1 %v2517_v35  ;;  %v2400_v6 = vmul.f32 %v2272_v58, %v4511_v13  ;;  %v1933_v32 = vmul.f32 0.7978846, %v1805_v27 }
 0x363   :  { %v2404_v18 = vmul.f32 %v2276_v55, %v4548_v7  ;;  %v1802_v50 = vadd.f32 %v1674_v46, %v4923_v52  ;;  %v2402_v17 = vmul.f32 %v2274_v56, %v4541_v12  ;;  %v2406_v28 = vmul.f32 %v2278_v10, %v4570_v21 }
 0x364   :  { %v4995_v54 = vpop.eup %3232  ;;  %v2177_v36 = vadd.f32 1.0, %v3223_v47  ;;  %v1678_v59 = vmul.f32 0.044715, %v1550_v23  ;;  %v4998_v38 = vadd.f32 %v1097_v40, %v4516_v49  ;;  %v1928_v41 = vmul.f32 0.7978846, %v1800_v63  ;;  %v1099_v40 = vpop.f32.mrf.mxu0 }
 0x365   :  { %5918 = vst [vmem:[#allocation157_spill] sm:$0xff] %v4995_v54  ;;  %v2512_v4 = vpack.c.bf16 %v2404_v18, %v2400_v6  ;;  %v1804_v13 = vadd.f32 %v1676_v53, %v4935_v37  ;;  %v5002_v7 = vadd.f32 %v1290_v15, %v4516_v49  ;;  %v2514_v46 = vpack.c.bf16 %v2406_v28, %v2402_v17  ;;  %v1292_v6 = vpop.f32.mrf.mxu1 }
 0x366   :  { %5919 = vst [vmem:[#allocation158_spill] sm:$0xff] %v4998_v38  ;;  %v5004_v27 = vpop.eup %3234  ;;  %v5007_v12 = vmul.f32 0.5, %v4932_v29  ;;  %3240 = vtanh.f32 %v1931_v34  ;;  %v1679_v21 = vmul.f32 0.044715, %v1551_v3  ;;  %v1553_v47 = vmul.f32 %v1425_v0, %v4976_v25  ;;  %v5925_v3 = vld [vmem:[#allocation105_spill] sm:$0xff] }
 0x367   :  { %5920 = vst [vmem:[#allocation159_spill] sm:$0xff] %v5002_v7  ;;  %5921 = vst [vmem:[#allocation160_spill] sm:$0xff] %v5004_v27  ;;  %2641 = vmatprep.subr.bf16.mxu0 %v2512_v4  ;;  %v3237_v5 = vpop.eup %3236  ;;  %v2307_v58 = vmul.f32 0.5, %v2179_v16  ;;  %v2181_v23 = vadd.f32 1.0, %v3231_v60  ;;  %v1930_v63 = vmul.f32 0.7978846, %v1802_v50  ;;  %3242 = vtanh.f32 %v1933_v32  ;;  %2714 = vmatprep.subr.bf16.mxu1 %v2514_v46 }
 0x368   :  { %5922 = vst [vmem:[#allocation161_spill] sm:$0xff] %v5007_v12  ;;  %v3239_v35 = vpop.eup %3238  ;;  %v5011_v49 = vmul.f32 0.5, %v4939_v51  ;;  %v1806_v55 = vadd.f32 %v1678_v59, %v4947_v26  ;;  %v1424_v29 = vmul.f32 %v4998_v38, %v4998_v38  ;;  %v2511_v56 = vpack.c.bf16 %v4710_v61, %v4682_v44  ;;  %v5927_v32 = vld [vmem:[#allocation109_spill] sm:$0xff]  ;;  %v5987_v27 = vld [vmem:[#allocation43_spill] sm:$0xff] }
 0x369   :  { %v5018_v34 = vmul.f32 0.5, %v2177_v36  ;;  %3244 = vtanh.f32 %v1928_v41  ;;  %v1932_v16 = vmul.f32 0.7978846, %v1804_v13  ;;  %v1426_v53 = vmul.f32 %v5002_v7, %v5002_v7  ;;  %v5928_v59 = vld [vmem:[#allocation101_spill] sm:$0xff]  ;;  %v5930_v41 = vld [vmem:[#allocation114_spill] sm:$0xff] }
 0x36a   :  { %5923 = vst [vmem:[#allocation162_spill] sm:$0xff] %v5011_v49  ;;  %v1807_v10 = vadd.f32 %v1679_v21, %v4954_v39  ;;  %v1681_v51 = vmul.f32 0.044715, %v1553_v47  ;;  %2642 = vmatpush1.bf16.msra.mxu0 %v2511_v56  ;;  %v2513_v60 = vpack.c.bf16 %v4738_v14, %v4702_v57  ;;  %v2136_v0 = vadd.f32 1.0, %v5925_v3  ;;  %v5035_v14 = vpop.f32.mrf.mxu0  ;;  %v5931_v56 = vld [vmem:[#allocation77_spill] sm:$0xff] }
 0x36b   :  { %5924 = vst [vmem:[#allocation163_spill] sm:$0xff] %v5018_v34  ;;  %v5027_v15 = vmul.f32 %v2307_v58, %v4820_v24  ;;  %v2309_v44 = vmul.f32 0.5, %v2181_v23  ;;  %v2183_v61 = vadd.f32 1.0, %v3237_v5  ;;  %3246 = vtanh.f32 %v1930_v63  ;;  %v5929_v24 = vld [vmem:[#allocation107_spill] sm:$0xff]  ;;  %v5040_v23 = vpop.f32.mrf.mxu1  ;;  %v5962_v34 = vld [vmem:[#allocation98_spill] sm:$0xff] }
 0x36c   :  { %v1934_v18 = vmul.f32 0.7978846, %v1806_v55  ;;  %v1552_v50 = vmul.f32 %v1424_v29, %v4998_v38  ;;  %2715 = vmatpush1.bf16.msra.mxu1 %v2513_v60  ;;  %v2140_v17 = vadd.f32 1.0, %v5927_v32  ;;  %v2264_v28 = vmul.f32 0.5, %v2136_v0 }
 0x36d   :  { %5926 = vst [vmem:[#allocation105_spill] sm:$0xff] %v5027_v15  ;;  %v1554_v36 = vmul.f32 %v1426_v53, %v5002_v7  ;;  %v5033_v57 = vadd.f32 %v1099_v40, %v5928_v59  ;;  %v2138_v4 = vadd.f32 1.0, %v5929_v24  ;;  %v2142_v13 = vadd.f32 1.0, %v5930_v41  ;;  %v5932_v40 = vld [vmem:[#allocation86_spill] sm:$0xff] }
 0x36e   :  { %3248 = vtanh.f32 %v1932_v16  ;;  %v1935_v46 = vmul.f32 0.7978846, %v1807_v10  ;;  %v1809_v21 = vadd.f32 %v1681_v51, %v4976_v25  ;;  %v2268_v47 = vmul.f32 0.5, %v2140_v17  ;;  %v5933_v10 = vld [vmem:[#allocation80_spill] sm:$0xff]  ;;  %v5934_v51 = vld [vmem:[#allocation91_spill] sm:$0xff] }
 0x36f   :  { %v2311_v5 = vmul.f32 0.5, %v2183_v61  ;;  %v2185_v58 = vadd.f32 1.0, %v3239_v35  ;;  %v2266_v63 = vmul.f32 0.5, %v2138_v4  ;;  %v2270_v55 = vmul.f32 0.5, %v2142_v13  ;;  %v1105_v61 = vpop.f32.mrf.mxu0  ;;  %v3050_v17 = vld [vmem:[%s5651_s11 + $0x4] ss:$8 sps:$4 sm:$0xff]   ;;  %v1298_v13 = vpop.f32.mrf.mxu1 }
 0x370   :  { %3250 = vtanh.f32 %v1934_v18  ;;  %v1680_v29 = vmul.f32 0.044715, %v1552_v50  ;;  %v2392_v53 = vmul.f32 %v2264_v28, %v5931_v56  ;;  %v2396_v60 = vmul.f32 %v2268_v47, %v5932_v40  ;;  %v5939_v47 = vld [vmem:[#allocation106_spill] sm:$0xff]  ;;  %v5941_v56 = vld [vmem:[#allocation108_spill] sm:$0xff]  ;;  %2671 = vmatprep.mubr.bf16.mxu0 %v3050_v17  ;;  %2744 = vmatprep.mubr.bf16.mxu1 %v3050_v17 }
 0x371   :  { %v1682_v3 = vmul.f32 0.044715, %v1554_v36  ;;  %v1427_v16 = vmul.f32 %v5033_v57, %v5033_v57  ;;  %v2394_v0 = vmul.f32 %v2266_v63, %v5933_v10  ;;  %v2398_v32 = vmul.f32 %v2270_v55, %v5934_v51  ;;  %v5940_v63 = vld [vmem:[#allocation113_spill] sm:$0xff]  ;;  %v5944_v10 = vld [vmem:[#allocation100_spill] sm:$0xff] }
 0x372   :  { %v5049_v35 = vmul.f32 %v2309_v44, %v4839_v8  ;;  %3252 = vtanh.f32 %v1935_v46  ;;  %v5052_v18 = vadd.f32 %v1292_v6, %v5928_v59  ;;  %v2508_v50 = vpack.c.bf16 %v2396_v60, %v2392_v53  ;;  %v5938_v6 = vld [vmem:[#allocation93_spill] sm:$0xff]  ;;  %v5942_v53 = vld [vmem:[#allocation116_spill] sm:$0xff] }
 0x373   :  { %v3241_v28 = vpop.eup %3240  ;;  %v5058_v36 = vmul.f32 %v2311_v5, %v4864_v42  ;;  %v5060_v24 = vmul.f32 0.5, %v2185_v58  ;;  %v1937_v4 = vmul.f32 0.7978846, %v1809_v21  ;;  %v2510_v41 = vpack.c.bf16 %v2398_v32, %v2394_v0  ;;  %v1107_v21 = vpop.f32.mrf.mxu0  ;;  %v5943_v58 = vld [vmem:[#allocation95_spill] sm:$0xff] }
 0x374   :  { %5935 = vst [vmem:[#allocation109_spill] sm:$0xff] %v5049_v35  ;;  %v3243_v8 = vpop.eup %3242  ;;  %v1808_v44 = vadd.f32 %v1680_v29, %v4998_v38  ;;  %2643 = vmatprep.subr.bf16.mxu0 %v2508_v50  ;;  %v5064_v46 = vadd.f32 %v1105_v61, %v5938_v6  ;;  %v2507_v55 = vpack.c.bf16 %v5940_v63, %v5939_v47  ;;  %v2128_v60 = vadd.f32 1.0, %v5943_v58 }
 0x375   :  { %5936 = vst [vmem:[#allocation101_spill] sm:$0xff] %v5058_v36  ;;  %5937 = vst [vmem:[#allocation107_spill] sm:$0xff] %v5060_v24  ;;  %v2509_v40 = vpack.c.bf16 %v5942_v53, %v5941_v56  ;;  %v1810_v42 = vadd.f32 %v1682_v3, %v5002_v7  ;;  %v1555_v5 = vmul.f32 %v1427_v16, %v5033_v57  ;;  %2716 = vmatprep.subr.bf16.mxu1 %v2510_v41  ;;  %v5946_v3 = vld [vmem:[#allocation96_spill] sm:$0xff]  ;;  %v5947_v16 = vld [vmem:[#allocation102_spill] sm:$0xff] }
 0x376   :  { %v2132_v29 = vadd.f32 1.0, %v5944_v10  ;;  %v5074_v0 = vpop.eup %3244  ;;  %v1429_v51 = vmul.f32 %v5052_v18, %v5052_v18  ;;  %v5079_v32 = vadd.f32 %v1298_v13, %v5938_v6  ;;  %2644 = vmatpush1.bf16.msra.mxu0 %v2507_v55  ;;  %v2130_v61 = vadd.f32 1.0, %v5946_v3  ;;  %v5963_v36 = vld [vmem:[#allocation87_spill] sm:$0xff] }
 0x377   :  { %5945 = vst [vmem:[#allocation114_spill] sm:$0xff] %v5074_v0  ;;  %2717 = vmatpush1.bf16.msra.mxu1 %v2509_v40  ;;  %v2134_v50 = vadd.f32 1.0, %v5947_v16  ;;  %v2187_v41 = vadd.f32 1.0, %v3241_v28  ;;  %v2189_v47 = vadd.f32 1.0, %v3243_v8  ;;  %v2256_v63 = vmul.f32 0.5, %v2128_v60  ;;  %v1300_v16 = vpop.f32.mrf.mxu1  ;;  %v5950_v8 = vld [vmem:[#allocation66_spill] sm:$0xff] }
 0x378   :  { %v2260_v56 = vmul.f32 0.5, %v2132_v29  ;;  %v5083_v53 = vpop.eup %3246  ;;  %v1431_v58 = vmul.f32 %v5064_v46, %v5064_v46  ;;  %v5088_v10 = vadd.f32 %v1107_v21, %v5938_v6  ;;  %v2258_v13 = vmul.f32 0.5, %v2130_v61  ;;  %v5951_v29 = vld [vmem:[#allocation69_spill] sm:$0xff]  ;;  %v1109_v61 = vpop.f32.mrf.mxu0 }
 0x379   :  { %5948 = vst [vmem:[#allocation77_spill] sm:$0xff] %v5083_v53  ;;  %v2262_v55 = vmul.f32 0.5, %v2134_v50  ;;  %3254 = vtanh.f32 %v1937_v4  ;;  %v1936_v40 = vmul.f32 0.7978846, %v1808_v44  ;;  %v1938_v3 = vmul.f32 0.7978846, %v1810_v42 }
 0x37a   :  { %5949 = vst [vmem:[#allocation86_spill] sm:$0xff] %v5088_v10  ;;  %v1683_v35 = vmul.f32 0.044715, %v1555_v5  ;;  %v1557_v28 = vmul.f32 %v1429_v51, %v5052_v18  ;;  %v1433_v17 = vmul.f32 %v5079_v32, %v5079_v32  ;;  %v2384_v60 = vmul.f32 %v2256_v63, %v5950_v8  ;;  %v5953_v44 = vld [vmem:[#allocation67_spill] sm:$0xff]  ;;  %v5954_v5 = vld [vmem:[#allocation73_spill] sm:$0xff]  ;;  %v5988_v53 = vld [vmem:[#allocation52_spill] sm:$0xff] }
 0x37b   :  { %v2388_v12 = vmul.f32 %v2260_v56, %v5951_v29  ;;  %v5095_v15 = vpop.eup %3248  ;;  %v5099_v21 = vadd.f32 %v5035_v14, %v5928_v59  ;;  %v5103_v4 = vadd.f32 %v5040_v23, %v5928_v59  ;;  %v2386_v42 = vmul.f32 %v2258_v13, %v5953_v44  ;;  %v1302_v13 = vpop.f32.mrf.mxu1 }
 0x37c   :  { %5952 = vst [vmem:[#allocation80_spill] sm:$0xff] %v5095_v15  ;;  %v2390_v51 = vmul.f32 %v2262_v55, %v5954_v5  ;;  %v1559_v50 = vmul.f32 %v1431_v58, %v5064_v46  ;;  %v1432_v63 = vmul.f32 %v5088_v10, %v5088_v10  ;;  %v5111_v56 = vadd.f32 %v1300_v16, %v5938_v6 }
 0x37d   :  { %v2504_v8 = vpack.c.bf16 %v2388_v12, %v2384_v60  ;;  %v5113_v14 = vpop.eup %3250  ;;  %v5115_v29 = vmul.f32 0.5, %v2187_v41  ;;  %3256 = vtanh.f32 %v1936_v40  ;;  %v1811_v59 = vadd.f32 %v1683_v35, %v5033_v57  ;;  %v1111_v41 = vpop.f32.mrf.mxu0  ;;  %v5957_v35 = vld [vmem:[#allocation97_spill] sm:$0xff]  ;;  %v5958_v40 = vld [vmem:[#allocation103_spill] sm:$0xff]  ;;  %v5960_v60 = vld [vmem:[#allocation104_spill] sm:$0xff] }
 0x37e   :  { %5955 = vst [vmem:[#allocation91_spill] sm:$0xff] %v5111_v56  ;;  %5956 = vst [vmem:[#allocation93_spill] sm:$0xff] %v5113_v14  ;;  %v2506_v23 = vpack.c.bf16 %v2390_v51, %v2386_v42  ;;  %v5118_v55 = vmul.f32 0.5, %v2189_v47  ;;  %3258 = vtanh.f32 %v1938_v3  ;;  %v1685_v58 = vmul.f32 0.044715, %v1557_v28  ;;  %v5959_v47 = vld [vmem:[#allocation99_spill] sm:$0xff] }
 0x37f   :  { %v1561_v44 = vmul.f32 %v1433_v17, %v5079_v32  ;;  %2645 = vmatprep.subr.bf16.mxu0 %v2504_v8  ;;  %v5121_v5 = vpop.eup %3252  ;;  %v1428_v12 = vmul.f32 %v5099_v21, %v5099_v21  ;;  %v1430_v6 = vmul.f32 %v5103_v4, %v5103_v4  ;;  %v2503_v16 = vpack.c.bf16 %v5958_v40, %v5957_v35  ;;  %v5961_v51 = vld [vmem:[#allocation81_spill] sm:$0xff]  ;;  %v5964_v40 = vld [vmem:[#allocation83_spill] sm:$0xff]  ;;  %v1115_v62 = vpop.f32.mrf.mxu0  ;;  %v6003_v14 = vld [vmem:[#allocation40_spill] sm:$0xff] }
 0x380   :  { %2718 = vmatprep.subr.bf16.mxu1 %v2506_v23  ;;  %v2505_v3 = vpack.c.bf16 %v5960_v60, %v5959_v47  ;;  %v1687_v28 = vmul.f32 0.044715, %v1559_v50  ;;  %v1560_v17 = vmul.f32 %v1432_v63, %v5088_v10  ;;  %v1434_v42 = vmul.f32 %v5111_v56, %v5111_v56  ;;  %v1304_v23 = vpop.f32.mrf.mxu1 }
 0x381   :  { %v2120_v8 = vadd.f32 1.0, %v5961_v51  ;;  %v1939_v20 = vmul.f32 0.7978846, %v1811_v59  ;;  %v5136_v49 = vadd.f32 %v1109_v61, %v5962_v34  ;;  %2646 = vmatpush1.bf16.msra.mxu0 %v2503_v16  ;;  %v2124_v35 = vadd.f32 1.0, %v5963_v36 }
 0x382   :  { %2719 = vmatpush1.bf16.msra.mxu1 %v2505_v3  ;;  %v2122_v24 = vadd.f32 1.0, %v5964_v40  ;;  %v1813_v50 = vadd.f32 %v1685_v58, %v5052_v18  ;;  %v1689_v47 = vmul.f32 0.044715, %v1561_v44  ;;  %v5142_v63 = vadd.f32 %v1302_v13, %v5962_v34  ;;  %v5966_v13 = vld [vmem:[#allocation54_spill] sm:$0xff] }
 0x383   :  { %v2248_v60 = vmul.f32 0.5, %v2120_v8  ;;  %v1556_v51 = vmul.f32 %v1428_v12, %v5099_v21  ;;  %v2252_v59 = vmul.f32 0.5, %v2124_v35  ;;  %v2126_v61 = vadd.f32 1.0, %v5965_v30  ;;  %v5967_v8 = vld [vmem:[#allocation59_spill] sm:$0xff]  ;;  %v1308_v35 = vpop.f32.mrf.mxu1 }
 0x384   :  { %v2250_v1 = vmul.f32 0.5, %v2122_v24  ;;  %v1558_v16 = vmul.f32 %v1430_v6, %v5103_v4  ;;  %v1815_v36 = vadd.f32 %v1687_v28, %v5064_v46  ;;  %v1688_v3 = vmul.f32 0.044715, %v1560_v17 }
 0x385   :  { %v1562_v40 = vmul.f32 %v1434_v42, %v5111_v56  ;;  %v1435_v58 = vmul.f32 %v5136_v49, %v5136_v49  ;;  %v2376_v44 = vmul.f32 %v2248_v60, %v5966_v13  ;;  %v2380_v22 = vmul.f32 %v2252_v59, %v5967_v8  ;;  %v5969_v42 = vld [vmem:[#allocation56_spill] sm:$0xff] }
 0x386   :  { %v2254_v12 = vmul.f32 0.5, %v2126_v61  ;;  %v5153_v33 = vpop.eup %3254  ;;  %v1941_v30 = vmul.f32 0.7978846, %v1813_v50  ;;  %v1817_v24 = vadd.f32 %v1689_v47, %v5079_v32  ;;  %v1437_v6 = vmul.f32 %v5142_v63, %v5142_v63  ;;  %v5971_v13 = vld [vmem:[#allocation84_spill] sm:$0xff]  ;;  %v1117_v61 = vpop.f32.mrf.mxu0 }
 0x387   :  { %v5159_v28 = vadd.f32 %v1111_v41, %v5962_v34  ;;  %v2500_v17 = vpack.c.bf16 %v2380_v22, %v2376_v44  ;;  %v2378_v52 = vmul.f32 %v2250_v1, %v5969_v42  ;;  %v5164_v59 = vadd.f32 %v1115_v62, %v5971_v13 }
 0x388   :  { %v2382_v60 = vmul.f32 %v2254_v12, %v5970_v45  ;;  %v1943_v8 = vmul.f32 0.7978846, %v1815_v36  ;;  %v1690_v43 = vmul.f32 0.044715, %v1562_v40  ;;  %v5167_v50 = vadd.f32 %v1304_v23, %v5962_v34  ;;  %v1310_v23 = vpop.f32.mrf.mxu1 }
 0x389   :  { %5968 = vst [vmem:[#allocation106_spill] sm:$0xff] %v5159_v28  ;;  %v5170_v47 = vadd.f32 %v1308_v35, %v5971_v13  ;;  %3260 = vtanh.f32 %v1939_v20  ;;  %v1816_v41 = vadd.f32 %v1688_v3, %v5088_v10  ;;  %v1563_v22 = vmul.f32 %v1435_v58, %v5136_v49  ;;  %2647 = vmatprep.subr.bf16.mxu0 %v2500_v17 }
 0x38a   :  { %5972 = vst [vmem:[#allocation113_spill] sm:$0xff] %v5167_v50  ;;  %v2502_v1 = vpack.c.bf16 %v2382_v60, %v2378_v52  ;;  %v5174_v45 = vpop.eup %3256  ;;  %v5176_v62 = vmul.f32 0.044715, %v1556_v51  ;;  %v1945_v44 = vmul.f32 0.7978846, %v1817_v24  ;;  %v1436_v36 = vmul.f32 %v5159_v28, %v5159_v28  ;;  %v5977_v24 = vld [vmem:[#allocation82_spill] sm:$0xff] }
 0x38b   :  { %5973 = vst [vmem:[#allocation108_spill] sm:$0xff] %v5174_v45  ;;  %v5181_v34 = vadd.f32 %v1117_v61, %v5971_v13  ;;  %v5183_v40 = vpop.eup %3258  ;;  %3262 = vtanh.f32 %v1941_v30  ;;  %v5185_v20 = vmul.f32 0.044715, %v1558_v16  ;;  %v1565_v3 = vmul.f32 %v1437_v6, %v5142_v63  ;;  %v5978_v6 = vld [vmem:[#allocation90_spill] sm:$0xff]  ;;  %v5979_v60 = vld [vmem:[#allocation85_spill] sm:$0xff]  ;;  %v5980_v61 = vld [vmem:[#allocation92_spill] sm:$0xff] }
 0x38c   :  { %5975 = vst [vmem:[#allocation95_spill] sm:$0xff] %v5183_v40  ;;  %2720 = vmatprep.subr.bf16.mxu1 %v2502_v1  ;;  %v1439_v52 = vmul.f32 %v5164_v59, %v5164_v59  ;;  %3264 = vtanh.f32 %v1943_v8  ;;  %v5191_v51 = vadd.f32 %v1690_v43, %v5111_v56  ;;  %v1438_v58 = vmul.f32 %v5167_v50, %v5167_v50  ;;  %v1119_v1 = vpop.f32.mrf.mxu0 }
 0x38d   :  { %5974 = vst [vmem:[#allocation116_spill] sm:$0xff] %v5181_v34  ;;  %v1441_v12 = vmul.f32 %v5170_v47, %v5170_v47  ;;  %v1944_v35 = vmul.f32 0.7978846, %v1816_v41  ;;  %v1691_v30 = vmul.f32 0.044715, %v1563_v22  ;;  %v5198_v16 = vadd.f32 %v1310_v23, %v5971_v13  ;;  %v5981_v22 = vld [vmem:[#allocation68_spill] sm:$0xff] }
 0x38e   :  { %v2499_v17 = vpack.c.bf16 %v5978_v6, %v5977_v24  ;;  %3266 = vtanh.f32 %v1945_v44  ;;  %v1564_v42 = vmul.f32 %v1436_v36, %v5159_v28  ;;  %v1440_v43 = vmul.f32 %v5181_v34, %v5181_v34  ;;  %v5982_v23 = vld [vmem:[#allocation75_spill] sm:$0xff]  ;;  %v5983_v36 = vld [vmem:[#allocation70_spill] sm:$0xff]  ;;  %v1121_v7 = vpop.f32.mrf.mxu0 }
 0x38f   :  { %5976 = vst [vmem:[#allocation100_spill] sm:$0xff] %v5198_v16  ;;  %v2501_v8 = vpack.c.bf16 %v5980_v61, %v5979_v60  ;;  %v1693_v9 = vmul.f32 0.044715, %v1565_v3  ;;  %v1567_v41 = vmul.f32 %v1439_v52, %v5164_v59  ;;  %v2112_v13 = vadd.f32 1.0, %v5981_v22 }
 0x390   :  { %2648 = vmatpush1.bf16.msra.mxu0 %v2499_v17  ;;  %v2116_v26 = vadd.f32 1.0, %v5982_v23  ;;  %v1566_v24 = vmul.f32 %v1438_v58, %v5167_v50  ;;  %v1569_v44 = vmul.f32 %v1441_v12, %v5170_v47  ;;  %v2114_v6 = vadd.f32 1.0, %v5983_v36  ;;  %v1312_v58 = vpop.f32.mrf.mxu1  ;;  %v5985_v36 = vld [vmem:[#allocation42_spill] sm:$0xff] }
 0x391   :  { %2721 = vmatpush1.bf16.msra.mxu1 %v2501_v8  ;;  %v2118_v37 = vadd.f32 1.0, %v5984_v48  ;;  %v1819_v60 = vadd.f32 %v1691_v30, %v5136_v49  ;;  %v1442_v3 = vmul.f32 %v5198_v16, %v5198_v16  ;;  %v2240_v52 = vmul.f32 0.5, %v2112_v13  ;;  %v5986_v48 = vld [vmem:[#allocation49_spill] sm:$0xff] }
 0x392   :  { %v2244_v17 = vmul.f32 0.5, %v2116_v26  ;;  %v1692_v61 = vmul.f32 0.044715, %v1564_v42  ;;  %v1568_v22 = vmul.f32 %v1440_v43, %v5181_v34  ;;  %v2242_v23 = vmul.f32 0.5, %v2114_v6  ;;  %v5989_v26 = vld [vmem:[#allocation94_spill] sm:$0xff] }
 0x393   :  { %v2246_v11 = vmul.f32 0.5, %v2118_v37  ;;  %v1821_v12 = vadd.f32 %v1693_v9, %v5142_v63  ;;  %v1695_v8 = vmul.f32 0.044715, %v1567_v41  ;;  %v2368_v2 = vmul.f32 %v2240_v52, %v5985_v36  ;;  %v5996_v36 = vld [vmem:[#allocation72_spill] sm:$0xff] }
 0x394   :  { %v2372_v38 = vmul.f32 %v2244_v17, %v5986_v48  ;;  %v1697_v30 = vmul.f32 0.044715, %v1569_v44  ;;  %v2370_v54 = vmul.f32 %v2242_v23, %v5987_v27  ;;  %v5224_v42 = vadd.f32 %v1119_v1, %v5989_v26  ;;  %v5997_v48 = vld [vmem:[#allocation76_spill] sm:$0xff] }
 0x395   :  { %v2374_v13 = vmul.f32 %v2246_v11, %v5988_v53  ;;  %v1570_v43 = vmul.f32 %v1442_v3, %v5198_v16  ;;  %v5228_v6 = vadd.f32 %v1312_v58, %v5989_v26  ;;  %v5231_v9 = vadd.f32 %v1121_v7, %v5989_v26  ;;  %v1314_v11 = vpop.f32.mrf.mxu1 }
 0x396   :  { %5990 = vst [vmem:[#allocation96_spill] sm:$0xff] %v5224_v42  ;;  %v2496_v37 = vpack.c.bf16 %v2372_v38, %v2368_v2  ;;  %v5233_v41 = vpop.eup %3260  ;;  %v1947_v52 = vmul.f32 0.7978846, %v1819_v60  ;;  %v1820_v44 = vadd.f32 %v1692_v61, %v5159_v28  ;;  %v1696_v27 = vmul.f32 0.044715, %v1568_v22  ;;  %v5994_v61 = vld [vmem:[#allocation74_spill] sm:$0xff] }
 0x397   :  { %5991 = vst [vmem:[#allocation102_spill] sm:$0xff] %v5228_v6  ;;  %5992 = vst [vmem:[#allocation66_spill] sm:$0xff] %v5231_v9  ;;  %v2498_v17 = vpack.c.bf16 %v2374_v13, %v2370_v54  ;;  %3268 = vtanh.f32 %v1944_v35  ;;  %v1949_v53 = vmul.f32 0.7978846, %v1821_v12  ;;  %v1443_v2 = vmul.f32 %v5224_v42, %v5224_v42  ;;  %v5993_v54 = vld [vmem:[#allocation71_spill] sm:$0xff] }
 0x398   :  { %2649 = vmatprep.subr.bf16.mxu0 %v2496_v37  ;;  %v1445_v38 = vmul.f32 %v5228_v6, %v5228_v6  ;;  %v5240_v1 = vpop.eup %3262  ;;  %v1694_v7 = vmul.f32 0.044715, %v1566_v24  ;;  %v1823_v3 = vadd.f32 %v1695_v8, %v5164_v59  ;;  %v1444_v60 = vmul.f32 %v5231_v9, %v5231_v9  ;;  %v5998_v37 = vld [vmem:[#allocation55_spill] sm:$0xff] }
 0x399   :  { %2722 = vmatprep.subr.bf16.mxu1 %v2498_v17  ;;  %v2495_v35 = vpack.c.bf16 %v5994_v61, %v5993_v54  ;;  %v5247_v22 = vpop.eup %3264  ;;  %v1825_v23 = vadd.f32 %v1697_v30, %v5170_v47  ;;  %v1698_v58 = vmul.f32 0.044715, %v1570_v43  ;;  %v5251_v12 = vadd.f32 %v1314_v11, %v5989_v26  ;;  %v5999_v26 = vld [vmem:[#allocation61_spill] sm:$0xff] }
 0x39a   :  { %v2497_v24 = vpack.c.bf16 %v5997_v48, %v5996_v36  ;;  %3270 = vtanh.f32 %v1947_v52  ;;  %v1948_v8 = vmul.f32 0.7978846, %v1820_v44  ;;  %v1824_v13 = vadd.f32 %v1696_v27, %v5181_v34  ;;  %v6000_v44 = vld [vmem:[#allocation57_spill] sm:$0xff]  ;;  %v1125_v27 = vpop.f32.mrf.mxu0 }
 0x39b   :  { %5995 = vst [vmem:[#allocation69_spill] sm:$0xff] %v5251_v12  ;;  %2650 = vmatpush1.bf16.msra.mxu0 %v2495_v35  ;;  %v2104_v17 = vadd.f32 1.0, %v5998_v37  ;;  %v5257_v56 = vpop.eup %3266  ;;  %3272 = vtanh.f32 %v1949_v53  ;;  %v1571_v54 = vmul.f32 %v1443_v2, %v5224_v42  ;;  %v1573_v30 = vmul.f32 %v1445_v38, %v5228_v6  ;;  %v1318_v2 = vpop.f32.mrf.mxu1 }
 0x39c   :  { %2723 = vmatpush1.bf16.msra.mxu1 %v2497_v24  ;;  %v2108_v43 = vadd.f32 1.0, %v5999_v26  ;;  %v1951_v11 = vmul.f32 0.7978846, %v1823_v3  ;;  %v1572_v61 = vmul.f32 %v1444_v60, %v5231_v9  ;;  %v2106_v36 = vadd.f32 1.0, %v6000_v44  ;;  %v6001_v24 = vld [vmem:[#allocation63_spill] sm:$0xff]  ;;  %v6002_v60 = vld [vmem:[#allocation38_spill] sm:$0xff]  ;;  %v1127_v28 = vpop.f32.mrf.mxu0 }
 0x39d   :  { %v2232_v52 = vmul.f32 0.5, %v2104_v17  ;;  %v1953_v35 = vmul.f32 0.7978846, %v1825_v23  ;;  %v1826_v48 = vadd.f32 %v1698_v58, %v5198_v16  ;;  %v1446_v53 = vmul.f32 %v5251_v12, %v5251_v12 }
 0x39e   :  { %v2236_v37 = vmul.f32 0.5, %v2108_v43  ;;  %3274 = vtanh.f32 %v1948_v8  ;;  %v1952_v38 = vmul.f32 0.7978846, %v1824_v13  ;;  %v2110_v0 = vadd.f32 1.0, %v6001_v24  ;;  %v1320_v24 = vpop.f32.mrf.mxu1 }
 0x39f   :  { %v2234_v26 = vmul.f32 0.5, %v2106_v36  ;;  %v1699_v3 = vmul.f32 0.044715, %v1571_v54  ;;  %v1701_v10 = vmul.f32 0.044715, %v1573_v30  ;;  %v2360_v17 = vmul.f32 %v2232_v52, %v6002_v60  ;;  %v6004_v54 = vld [vmem:[#allocation39_spill] sm:$0xff] }
 0x3a0   :  { %v2364_v44 = vmul.f32 %v2236_v37, %v6003_v14  ;;  %v5271_v23 = vadd.f32 %v1694_v7, %v5167_v50  ;;  %3276 = vtanh.f32 %v1951_v11  ;;  %v1700_v58 = vmul.f32 0.044715, %v1572_v61  ;;  %v6005_v36 = vld [vmem:[#allocation41_spill] sm:$0xff]  ;;  %v6006_v60 = vld [vmem:[#allocation79_spill] sm:$0xff] }
 0x3a1   :  { %v2238_v15 = vmul.f32 0.5, %v2110_v0  ;;  %3278 = vtanh.f32 %v1953_v35  ;;  %v1954_v43 = vmul.f32 0.7978846, %v1826_v48  ;;  %v1574_v8 = vmul.f32 %v1446_v53, %v5251_v12 }
 0x3a2   :  { %v2492_v13 = vpack.c.bf16 %v2364_v44, %v2360_v17  ;;  %3280 = vtanh.f32 %v1952_v38  ;;  %v2362_v30 = vmul.f32 %v2234_v26, %v6004_v54  ;;  %v5277_v14 = vadd.f32 %v1125_v27, %v6006_v60  ;;  %v6009_v38 = vld [vmem:[#allocation64_spill] sm:$0xff] }
 0x3a3   :  { %v2366_v52 = vmul.f32 %v2238_v15, %v6005_v36  ;;  %v1827_v7 = vadd.f32 %v1699_v3, %v5224_v42  ;;  %v1829_v11 = vadd.f32 %v1701_v10, %v5228_v6  ;;  %v5282_v0 = vadd.f32 %v1318_v2, %v6006_v60  ;;  %v6010_v44 = vld [vmem:[#allocation60_spill] sm:$0xff]  ;;  %v6018_v42 = vld [vmem:[#allocation35_spill] sm:$0xff] }
 0x3a4   :  { %2651 = vmatprep.subr.bf16.mxu0 %v2492_v13  ;;  %v5285_v61 = vadd.f32 %v1127_v28, %v6006_v60  ;;  %v5287_v35 = vpop.eup %3268  ;;  %v1828_v48 = vadd.f32 %v1700_v58, %v5231_v9  ;;  %v1447_v15 = vmul.f32 %v5277_v14, %v5277_v14  ;;  %v5293_v27 = vadd.f32 %v1320_v24, %v6006_v60  ;;  %v6008_v28 = vld [vmem:[#allocation58_spill] sm:$0xff]  ;;  %v6011_v58 = vld [vmem:[#allocation65_spill] sm:$0xff]  ;;  %v6012_v24 = vld [vmem:[#allocation44_spill] sm:$0xff] }
 0x3a5   :  { %6007 = vst [vmem:[#allocation67_spill] sm:$0xff] %v5287_v35  ;;  %v2494_v53 = vpack.c.bf16 %v2366_v52, %v2362_v30  ;;  %v1702_v37 = vmul.f32 0.044715, %v1574_v8  ;;  %v1449_v10 = vmul.f32 %v5282_v0, %v5282_v0  ;;  %v2491_v26 = vpack.c.bf16 %v6009_v38, %v6008_v28  ;;  %v6013_v52 = vld [vmem:[#allocation46_spill] sm:$0xff]  ;;  %v6014_v28 = vld [vmem:[#allocation45_spill] sm:$0xff]  ;;  %v1322_v35 = vpop.f32.mrf.mxu1 }
 0x3a6   :  { %v1448_v2 = vmul.f32 %v5285_v61, %v5285_v61  ;;  %v1575_v3 = vmul.f32 %v1447_v15, %v5277_v14  ;;  %v1450_v17 = vmul.f32 %v5293_v27, %v5293_v27  ;;  %v2493_v13 = vpack.c.bf16 %v6011_v58, %v6010_v44  ;;  %v6015_v58 = vld [vmem:[#allocation53_spill] sm:$0xff] }
 0x3a7   :  { %2724 = vmatprep.subr.bf16.mxu1 %v2494_v53  ;;  %v2096_v8 = vadd.f32 1.0, %v6012_v24  ;;  %v5307_v54 = vpop.eup %3270  ;;  %v1955_v30 = vmul.f32 0.7978846, %v1827_v7  ;;  %2652 = vmatpush1.bf16.msra.mxu0 %v2491_v26  ;;  %v2100_v60 = vadd.f32 1.0, %v6013_v52  ;;  %v2098_v53 = vadd.f32 1.0, %v6014_v28  ;;  %v1129_v26 = vpop.f32.mrf.mxu0 }
 0x3a8   :  { %v1576_v36 = vmul.f32 %v1448_v2, %v5285_v61  ;;  %v5312_v38 = vpop.eup %3272  ;;  %v1577_v15 = vmul.f32 %v1449_v10, %v5282_v0  ;;  %v1578_v50 = vmul.f32 %v1450_v17, %v5293_v27  ;;  %2725 = vmatpush1.bf16.msra.mxu1 %v2493_v13  ;;  %v2102_v24 = vadd.f32 1.0, %v6015_v58  ;;  %v6016_v17 = vld [vmem:[#allocation34_spill] sm:$0xff] }
 0x3a9   :  { %v2224_v44 = vmul.f32 0.5, %v2096_v8  ;;  %v1830_v40 = vadd.f32 %v1702_v37, %v5251_v12  ;;  %v1703_v7 = vmul.f32 0.044715, %v1575_v3  ;;  %v2228_v45 = vmul.f32 0.5, %v2100_v60  ;;  %v6017_v8 = vld [vmem:[#allocation36_spill] sm:$0xff]  ;;  %v6019_v3 = vld [vmem:[#allocation37_spill] sm:$0xff] }
 0x3aa   :  { %v2226_v2 = vmul.f32 0.5, %v2098_v53  ;;  %3282 = vtanh.f32 %v1954_v43  ;;  %v1957_v52 = vmul.f32 0.7978846, %v1829_v11  ;;  %v1704_v28 = vmul.f32 0.044715, %v1576_v36  ;;  %v6020_v53 = vld [vmem:[#allocation88_spill] sm:$0xff] }
 0x3ab   :  { %v2230_v16 = vmul.f32 0.5, %v2102_v24  ;;  %v5318_v34 = vpop.eup %3274  ;;  %v1956_v10 = vmul.f32 0.7978846, %v1828_v48  ;;  %v1706_v6 = vmul.f32 0.044715, %v1578_v50  ;;  %v2352_v13 = vmul.f32 %v2224_v44, %v6016_v17  ;;  %v1131_v48 = vpop.f32.mrf.mxu0 }
 0x3ac   :  { %v2356_v9 = vmul.f32 %v2228_v45, %v6017_v8  ;;  %v1705_v58 = vmul.f32 0.044715, %v1577_v15  ;;  %v2354_v37 = vmul.f32 %v2226_v2, %v6018_v42  ;;  %v5325_v12 = vadd.f32 %v1129_v26, %v6020_v53  ;;  %v1324_v44 = vpop.f32.mrf.mxu1  ;;  %v6022_v8 = vld [vmem:[#allocation50_spill] sm:$0xff] }
 0x3ad   :  { %v2358_v60 = vmul.f32 %v2230_v16, %v6019_v3  ;;  %v5327_v43 = vpop.eup %3276  ;;  %v1958_v11 = vmul.f32 0.7978846, %v1830_v40  ;;  %v1831_v36 = vadd.f32 %v1703_v7, %v5277_v14  ;;  %v5331_v50 = vadd.f32 %v1322_v35, %v6020_v53 }
 0x3ae   :  { %v2488_v24 = vpack.c.bf16 %v2356_v9, %v2352_v13  ;;  %v5333_v45 = vpop.eup %3278  ;;  %v1950_v42 = vmul.f32 0.7978846, %v5271_v23  ;;  %3284 = vtanh.f32 %v1955_v30  ;;  %v1832_v16 = vadd.f32 %v1704_v28, %v5285_v61  ;;  %v6021_v13 = vld [vmem:[#allocation47_spill] sm:$0xff] }
 0x3af   :  { %v2490_v15 = vpack.c.bf16 %v2358_v60, %v2354_v37  ;;  %v5337_v2 = vpop.eup %3280  ;;  %3286 = vtanh.f32 %v1956_v10  ;;  %v1834_v40 = vadd.f32 %v1706_v6, %v5293_v27  ;;  %v1451_v9 = vmul.f32 %v5325_v12, %v5325_v12 }
 0x3b0   :  { %2653 = vmatprep.subr.bf16.mxu0 %v2488_v24  ;;  %v1453_v35 = vmul.f32 %v5331_v50, %v5331_v50  ;;  %3288 = vtanh.f32 %v1957_v52  ;;  %v1833_v7 = vadd.f32 %v1705_v58, %v5282_v0  ;;  %v5346_v23 = vadd.f32 %v1131_v48, %v6020_v53 }
 0x3b1   :  { %2726 = vmatprep.subr.bf16.mxu1 %v2490_v15  ;;  %v5349_v30 = vadd.f32 %v1324_v44, %v6020_v53  ;;  %3290 = vtanh.f32 %v1958_v11  ;;  %v1959_v26 = vmul.f32 0.7978846, %v1831_v36  ;;  %v1579_v6 = vmul.f32 %v1451_v9, %v5325_v12  ;;  %v6023_v53 = vld [vmem:[#allocation48_spill] sm:$0xff]  ;;  %v6024_v11 = vld [vmem:[#allocation51_spill] sm:$0xff] }
 0x3b2   :  { %v1581_v28 = vmul.f32 %v1453_v35, %v5331_v50  ;;  %v1960_v10 = vmul.f32 0.7978846, %v1832_v16  ;;  %v1452_v17 = vmul.f32 %v5346_v23, %v5346_v23  ;;  %v2487_v58 = vpack.c.bf16 %v6022_v8, %v6021_v13 }
 0x3b3   :  { %v1454_v52 = vmul.f32 %v5349_v30, %v5349_v30  ;;  %v1962_v37 = vmul.f32 0.7978846, %v1834_v40  ;;  %v1707_v3 = vmul.f32 0.044715, %v1579_v6  ;;  %v2489_v36 = vpack.c.bf16 %v6024_v11, %v6023_v53 }
 0x3b4   :  { %v1709_v60 = vmul.f32 0.044715, %v1581_v28  ;;  %3292 = vtanh.f32 %v1950_v42  ;;  %v1961_v24 = vmul.f32 0.7978846, %v1833_v7  ;;  %v1580_v48 = vmul.f32 %v1452_v17, %v5346_v23  ;;  %2654 = vmatpush1.bf16.msra.mxu0 %v2487_v58 }
 0x3b5   :  { %v1582_v44 = vmul.f32 %v1454_v52, %v5349_v30  ;;  %v1812_v16 = vadd.f32 %v5176_v62, %v5099_v21  ;;  %3294 = vtanh.f32 %v1959_v26  ;;  %v1835_v15 = vadd.f32 %v1707_v3, %v5325_v12  ;;  %2727 = vmatpush1.bf16.msra.mxu1 %v2489_v36 }
 0x3b6   :  { %v1837_v40 = vadd.f32 %v1709_v60, %v5331_v50  ;;  %v1814_v9 = vadd.f32 %v5185_v20, %v5103_v4  ;;  %3296 = vtanh.f32 %v1960_v10  ;;  %v1708_v42 = vmul.f32 0.044715, %v1580_v48 }
 0x3b7   :  { %v1710_v35 = vmul.f32 0.044715, %v1582_v44  ;;  %v3283_v7 = vpop.eup %3282  ;;  %v1946_v6 = vmul.f32 0.7978846, %v5191_v51  ;;  %3298 = vtanh.f32 %v1962_v37  ;;  %v1963_v28 = vmul.f32 0.7978846, %v1835_v15 }
 0x3b8   :  { %v1965_v17 = vmul.f32 0.7978846, %v1837_v40  ;;  %v2191_v62 = vadd.f32 1.0, %v5121_v5  ;;  %3300 = vtanh.f32 %v1961_v24  ;;  %v1836_v26 = vadd.f32 %v1708_v42, %v5346_v23 }
 0x3b9   :  { %v1838_v52 = vadd.f32 %v1710_v35, %v5349_v30  ;;  %v5375_v13 = vmul.f32 %v5115_v29, %v4898_v19  ;;  %v5379_v20 = vmul.f32 %v5118_v55, %v4912_v31  ;;  %v2193_v51 = vadd.f32 1.0, %v5153_v33 }
 0x3ba   :  { %3302 = vtanh.f32 %v1963_v28  ;;  %v1940_v10 = vmul.f32 0.7978846, %v1812_v16  ;;  %v1964_v8 = vmul.f32 0.7978846, %v1836_v26  ;;  %v2195_v37 = vadd.f32 1.0, %v5233_v41 }
 0x3bb   :  { %3304 = vtanh.f32 %v1965_v17  ;;  %v1966_v5 = vmul.f32 0.7978846, %v1838_v52  ;;  %v3285_v58 = vpop.eup %3284  ;;  %v2197_v3 = vadd.f32 1.0, %v5240_v1  ;;  %v1942_v60 = vmul.f32 0.7978846, %v1814_v9 }
 0x3bc   :  { %3306 = vtanh.f32 %v1946_v6  ;;  %v3287_v19 = vpop.eup %3286  ;;  %v2319_v29 = vmul.f32 0.5, %v2191_v62  ;;  %v2199_v53 = vadd.f32 1.0, %v5247_v22  ;;  %v2201_v31 = vadd.f32 1.0, %v5257_v56 }
 0x3bd   :  { %3308 = vtanh.f32 %v1964_v8  ;;  %v3289_v33 = vpop.eup %3288  ;;  %v2203_v55 = vadd.f32 1.0, %v5307_v54  ;;  %v2205_v11 = vadd.f32 1.0, %v5312_v38  ;;  %v2207_v36 = vadd.f32 1.0, %v5327_v43 }
 0x3be   :  { %3310 = vtanh.f32 %v1966_v5  ;;  %v3291_v41 = vpop.eup %3290  ;;  %v2321_v24 = vmul.f32 0.5, %v2193_v51  ;;  %v2209_v1 = vadd.f32 1.0, %v5333_v45  ;;  %v2211_v48 = vadd.f32 1.0, %v3285_v58 }
 0x3bf   :  { %3312 = vtanh.f32 %v1940_v10  ;;  %v2323_v44 = vmul.f32 0.5, %v2195_v37  ;;  %v2325_v16 = vmul.f32 0.5, %v2197_v3  ;;  %v2212_v22 = vadd.f32 1.0, %v3287_v19  ;;  %v6025_v19 = vld [vmem:[#allocation96_spill] sm:$0xff] }
 0x3c0   :  { %3314 = vtanh.f32 %v1942_v60  ;;  %v2327_v56 = vmul.f32 0.5, %v2199_v53  ;;  %v2329_v15 = vmul.f32 0.5, %v2201_v31  ;;  %v2213_v40 = vadd.f32 1.0, %v3289_v33 }
 0x3c1   :  { %v2208_v54 = vadd.f32 1.0, %v5337_v2  ;;  %v3293_v9 = vpop.eup %3292  ;;  %v2331_v38 = vmul.f32 0.5, %v2203_v55  ;;  %v2333_v42 = vmul.f32 0.5, %v2205_v11  ;;  %v2335_v43 = vmul.f32 0.5, %v2207_v36  ;;  %v6026_v11 = vld [vmem:[#allocation66_spill] sm:$0xff] }
 0x3c2   :  { %v2210_v35 = vadd.f32 1.0, %v3283_v7  ;;  %v3295_v6 = vpop.eup %3294  ;;  %v5392_v28 = vmul.f32 %v2319_v29, %v4954_v39  ;;  %v2337_v45 = vmul.f32 0.5, %v2209_v1  ;;  %v2339_v17 = vmul.f32 0.5, %v2211_v48  ;;  %v6028_v48 = vld [vmem:[#allocation116_spill] sm:$0xff] }
 0x3c3   :  { %v2214_v62 = vadd.f32 1.0, %v3291_v41  ;;  %v3297_v26 = vpop.eup %3296  ;;  %v5395_v52 = vmul.f32 %v2321_v24, %v4976_v25  ;;  %v5398_v51 = vmul.f32 %v2323_v44, %v5033_v57  ;;  %v5401_v2 = vmul.f32 %v2325_v16, %v5052_v18  ;;  %v6027_v41 = vld [vmem:[#allocation102_spill] sm:$0xff] }
 0x3c4   :  { %v2340_v10 = vmul.f32 0.5, %v2212_v22  ;;  %v3299_v8 = vpop.eup %3298  ;;  %v5404_v7 = vmul.f32 %v2327_v56, %v5064_v46  ;;  %v5407_v39 = vmul.f32 %v2329_v15, %v5079_v32  ;;  %v2341_v5 = vmul.f32 0.5, %v2213_v40  ;;  %v6029_v22 = vld [vmem:[#allocation100_spill] sm:$0xff] }
 0x3c5   :  { %v2336_v58 = vmul.f32 0.5, %v2208_v54  ;;  %v3301_v37 = vpop.eup %3300  ;;  %v5410_v25 = vmul.f32 %v2331_v38, %v5136_v49  ;;  %v5413_v57 = vmul.f32 %v2333_v42, %v5142_v63  ;;  %v5416_v18 = vmul.f32 %v2335_v43, %v5164_v59 }
 0x3c6   :  { %v2338_v3 = vmul.f32 0.5, %v2210_v35  ;;  %v5419_v46 = vmul.f32 %v2337_v45, %v5170_v47  ;;  %v5422_v32 = vmul.f32 %v2339_v17, %v6025_v19  ;;  %v2216_v29 = vadd.f32 1.0, %v3297_v26  ;;  %v6030_v35 = vld [vmem:[#allocation69_spill] sm:$0xff] }
 0x3c7   :  { %v3303_v60 = vpop.eup %3302  ;;  %v2342_v53 = vmul.f32 0.5, %v2214_v62  ;;  %v2215_v33 = vadd.f32 1.0, %v3295_v6  ;;  %v2218_v55 = vadd.f32 1.0, %v3299_v8  ;;  %v2468_v63 = vmul.f32 %v2340_v10, %v6026_v11 }
 0x3c8   :  { %v3305_v31 = vpop.eup %3304  ;;  %v2219_v49 = vadd.f32 1.0, %v3303_v60  ;;  %v5426_v59 = vmul.f32 %v2341_v5, %v6027_v41  ;;  %v2217_v24 = vadd.f32 1.0, %v3301_v37  ;;  %v2464_v47 = vmul.f32 %v2336_v58, %v6028_v48  ;;  %v6031_v37 = vld [vmem:[#allocation67_spill] sm:$0xff] }
 0x3c9   :  { %v3307_v36 = vpop.eup %3306  ;;  %v2221_v1 = vadd.f32 1.0, %v3305_v31  ;;  %v2466_v56 = vmul.f32 %v2338_v3, %v6029_v22  ;;  %v2204_v15 = vadd.f32 1.0, %v5318_v34  ;;  %v2206_v40 = vadd.f32 1.0, %v3293_v9  ;;  %v6034_v22 = vld [vmem:[#allocation106_spill] sm:$0xff] }
 0x3ca   :  { %v3309_v44 = vpop.eup %3308  ;;  %v2347_v16 = vmul.f32 0.5, %v2219_v49  ;;  %v2344_v43 = vmul.f32 0.5, %v2216_v29  ;;  %v2470_v6 = vmul.f32 %v2342_v53, %v6030_v35  ;;  %v2343_v17 = vmul.f32 0.5, %v2215_v33 }
 0x3cb   :  { %v3311_v54 = vpop.eup %3310  ;;  %v2349_v38 = vmul.f32 0.5, %v2221_v1  ;;  %v2220_v42 = vadd.f32 1.0, %v3309_v44  ;;  %v2346_v26 = vmul.f32 0.5, %v2218_v55  ;;  %v2544_v10 = vpack.c.bf16 %v2468_v63, %v2464_v47  ;;  %v6032_v1 = vld [vmem:[#allocation108_spill] sm:$0xff] }
 0x3cc   :  { %v3313_v45 = vpop.eup %3312  ;;  %v2222_v62 = vadd.f32 1.0, %v3311_v54  ;;  %v2345_v5 = vmul.f32 0.5, %v2217_v24  ;;  %v2200_v60 = vadd.f32 1.0, %v6031_v37  ;;  %v2202_v3 = vadd.f32 1.0, %v3307_v36  ;;  %v6041_v37 = vld [vmem:[#allocation77_spill] sm:$0xff] }
 0x3cd   :  { %v3315_v8 = vpop.eup %3314  ;;  %v2348_v58 = vmul.f32 0.5, %v2220_v42  ;;  %v2475_v34 = vmul.f32 %v2347_v16, %v5325_v12  ;;  %v2332_v19 = vmul.f32 0.5, %v2204_v15  ;;  %v2334_v31 = vmul.f32 0.5, %v2206_v40  ;;  %v6037_v42 = vld [vmem:[#allocation93_spill] sm:$0xff] }
 0x3ce   :  { %v2350_v9 = vmul.f32 0.5, %v2222_v62  ;;  %v2477_v29 = vmul.f32 %v2349_v38, %v5331_v50  ;;  %v2472_v53 = vmul.f32 %v2344_v43, %v5285_v61  ;;  %v2196_v49 = vadd.f32 1.0, %v3313_v45  ;;  %v6033_v61 = vld [vmem:[#allocation95_spill] sm:$0xff]  ;;  %v6038_v45 = vld [vmem:[#allocation86_spill] sm:$0xff] }
 0x3cf   :  { %v2476_v33 = vmul.f32 %v2348_v58, %v5346_v23  ;;  %v2471_v55 = vmul.f32 %v2343_v17, %v5277_v14  ;;  %v2474_v11 = vmul.f32 %v2346_v26, %v5293_v27  ;;  %v2198_v41 = vadd.f32 1.0, %v3315_v8  ;;  %v6035_v27 = vld [vmem:[#allocation80_spill] sm:$0xff]  ;;  %v6039_v26 = vld [vmem:[#allocation114_spill] sm:$0xff] }
 0x3d0   :  { %v2478_v63 = vmul.f32 %v2350_v9, %v5349_v30  ;;  %v2473_v36 = vmul.f32 %v2345_v5, %v5282_v0  ;;  %v2328_v24 = vmul.f32 0.5, %v2200_v60  ;;  %v2192_v48 = vadd.f32 1.0, %v6032_v1  ;;  %v6036_v0 = vld [vmem:[#allocation113_spill] sm:$0xff]  ;;  %v6048_v1 = vld [vmem:[#allocation150_spill] sm:$0xff] }
 0x3d1   :  { %v2548_v12 = vpack.c.bf16 %v2476_v33, %v2472_v53  ;;  %v2547_v50 = vpack.c.bf16 %v2475_v34, %v2471_v55  ;;  %v2330_v44 = vmul.f32 0.5, %v2202_v3  ;;  %v2194_v16 = vadd.f32 1.0, %v6033_v61  ;;  %v6042_v9 = vld [vmem:[#allocation157_spill] sm:$0xff]  ;;  %v6045_v55 = vld [vmem:[#allocation155_spill] sm:$0xff] }
 0x3d2   :  { %v2550_v47 = vpack.c.bf16 %v2478_v63, %v2474_v11  ;;  %v2549_v23 = vpack.c.bf16 %v2477_v29, %v2473_v36  ;;  %v2460_v14 = vmul.f32 %v2332_v19, %v6034_v22  ;;  %v2324_v15 = vmul.f32 0.5, %v2196_v49  ;;  %v6043_v29 = vld [vmem:[#allocation160_spill] sm:$0xff]  ;;  %v6046_v63 = vld [vmem:[#allocation159_spill] sm:$0xff] }
 0x3d3   :  { %2655 = vmatprep.subr.bf16.mxu0 %v2548_v12  ;;  %v2188_v40 = vadd.f32 1.0, %v6035_v27  ;;  %v2546_v30 = vpack.c.bf16 %v2470_v6, %v2466_v56  ;;  %v2462_v54 = vmul.f32 %v2334_v31, %v6036_v0  ;;  %v2326_v38 = vmul.f32 0.5, %v2198_v41  ;;  %v6040_v56 = vld [vmem:[#allocation91_spill] sm:$0xff]  ;;  %v6047_v36 = vld [vmem:[#allocation156_spill] sm:$0xff] }
 0x3d4   :  { %2728 = vmatprep.subr.bf16.mxu1 %v2550_v47  ;;  %2656 = vmatpush2.bf16.msra.mxu0 %v2547_v50  ;;  %v2190_v43 = vadd.f32 1.0, %v6037_v42  ;;  %v2543_v35 = vpack.c.bf16 %v5422_v32, %v5416_v18  ;;  %v2456_v17 = vmul.f32 %v2328_v24, %v6038_v45  ;;  %v2320_v62 = vmul.f32 0.5, %v2192_v48  ;;  %v6049_v50 = vld [vmem:[#allocation153_spill] sm:$0xff]  ;;  %v6053_v27 = vld [vmem:[#allocation147_spill] sm:$0xff]  ;;  %v6054_v0 = vld [vmem:[#allocation148_spill] sm:$0xff] }
 0x3d5   :  { %2729 = vmatpush2.bf16.msra.mxu1 %v2549_v23  ;;  %2657 = vmatprep.subr.bf16.mxu0 %v2544_v10  ;;  %v2184_v8 = vadd.f32 1.0, %v6039_v26  ;;  %v2545_v5 = vpack.c.bf16 %v5426_v59, %v5419_v46  ;;  %v2458_v6 = vmul.f32 %v2330_v44, %v6040_v56  ;;  %v2322_v58 = vmul.f32 0.5, %v2194_v16  ;;  %v6044_v59 = vld [vmem:[#allocation158_spill] sm:$0xff]  ;;  %v6050_v44 = vld [vmem:[#allocation152_spill] sm:$0xff]  ;;  %v6055_v42 = vld [vmem:[#allocation149_spill] sm:$0xff] }
 0x3d6   :  { %2730 = vmatprep.subr.bf16.mxu1 %v2546_v30  ;;  %v2186_v60 = vadd.f32 1.0, %v6041_v37  ;;  %v2540_v3 = vpack.c.bf16 %v2460_v14, %v2456_v17  ;;  %v2452_v10 = vmul.f32 %v2324_v15, %v5099_v21  ;;  %v2316_v34 = vmul.f32 0.5, %v2188_v40  ;;  %v6051_v23 = vld [vmem:[#allocation154_spill] sm:$0xff]  ;;  %v6057_v26 = vld [vmem:[#allocation140_spill] sm:$0xff]  ;;  %v6060_v37 = vld [vmem:[#allocation139_spill] sm:$0xff] }
 0x3d7   :  { %v2180_v18 = vadd.f32 1.0, %v6042_v9  ;;  %v2542_v32 = vpack.c.bf16 %v2462_v54, %v2458_v6  ;;  %v2454_v19 = vmul.f32 %v2326_v38, %v5103_v4  ;;  %v2318_v31 = vmul.f32 0.5, %v2190_v43  ;;  %v6056_v45 = vld [vmem:[#allocation134_spill] sm:$0xff] }
 0x3d8   :  { %2658 = vmatpush2.bf16.msra.mxu0 %v2543_v35  ;;  %v2182_v53 = vadd.f32 1.0, %v6043_v29  ;;  %v2539_v46 = vpack.c.bf16 %v5410_v25, %v5404_v7  ;;  %v2448_v33 = vmul.f32 %v2320_v62, %v6044_v59  ;;  %v2312_v49 = vmul.f32 0.5, %v2184_v8  ;;  %v6058_v8 = vld [vmem:[#allocation137_spill] sm:$0xff]  ;;  %v6059_v6 = vld [vmem:[#allocation142_spill] sm:$0xff] }
 0x3d9   :  { %2731 = vmatpush2.bf16.msra.mxu1 %v2545_v5  ;;  %2659 = vmatprep.subr.bf16.mxu0 %v2540_v3  ;;  %v2176_v21 = vadd.f32 1.0, %v6045_v55  ;;  %v2541_v11 = vpack.c.bf16 %v5413_v57, %v5407_v39  ;;  %v2450_v41 = vmul.f32 %v2322_v58, %v6046_v63  ;;  %v2314_v4 = vmul.f32 0.5, %v2186_v60  ;;  %v6052_v57 = vld [vmem:[#allocation141_spill] sm:$0xff]  ;;  %v6062_v60 = vld [vmem:[#allocation131_spill] sm:$0xff]  ;;  %v6069_v63 = vld [vmem:[#allocation162_spill] sm:$0xff] }
 0x3da   :  { %2732 = vmatprep.subr.bf16.mxu1 %v2542_v32  ;;  %v2178_v12 = vadd.f32 1.0, %v6047_v36  ;;  %v2536_v24 = vpack.c.bf16 %v2452_v10, %v2448_v33  ;;  %v2444_v48 = vmul.f32 %v2316_v34, %v6048_v1  ;;  %v2308_v47 = vmul.f32 0.5, %v2180_v18  ;;  %v6063_v34 = vld [vmem:[#allocation135_spill] sm:$0xff]  ;;  %v6064_v18 = vld [vmem:[#allocation101_spill] sm:$0xff] }
 0x3db   :  { %v2172_v7 = vadd.f32 1.0, %v6049_v50  ;;  %v2538_v25 = vpack.c.bf16 %v2454_v19, %v2450_v41  ;;  %v2446_v61 = vmul.f32 %v2318_v31, %v6050_v44  ;;  %v2310_v16 = vmul.f32 0.5, %v2182_v53  ;;  %v6065_v19 = vld [vmem:[#allocation132_spill] sm:$0xff]  ;;  %v6070_v36 = vld [vmem:[#allocation129_spill] sm:$0xff]  ;;  %v6075_v44 = vld [vmem:[#allocation123_spill] sm:$0xff] }
 0x3dc   :  { %2660 = vmatpush2.bf16.msra.mxu0 %v2539_v46  ;;  %v2174_v22 = vadd.f32 1.0, %v6051_v23  ;;  %v2535_v39 = vpack.c.bf16 %v5398_v51, %v5392_v28  ;;  %v2440_v14 = vmul.f32 %v2312_v49, %v6052_v57  ;;  %v2304_v15 = vmul.f32 0.5, %v2176_v21  ;;  %v6066_v53 = vld [vmem:[#allocation136_spill] sm:$0xff]  ;;  %v6077_v23 = vld [vmem:[#allocation105_spill] sm:$0xff] }
 0x3dd   :  { %2733 = vmatpush2.bf16.msra.mxu1 %v2541_v11  ;;  %2661 = vmatprep.subr.bf16.mxu0 %v2536_v24  ;;  %v2168_v40 = vadd.f32 1.0, %v6053_v27  ;;  %v2537_v30 = vpack.c.bf16 %v5401_v2, %v5395_v52  ;;  %v2442_v54 = vmul.f32 %v2314_v4, %v6054_v0  ;;  %v2306_v38 = vmul.f32 0.5, %v2178_v12  ;;  %v6061_v52 = vld [vmem:[#allocation107_spill] sm:$0xff]  ;;  %v6067_v49 = vld [vmem:[#allocation128_spill] sm:$0xff]  ;;  %v6068_v11 = vld [vmem:[#allocation126_spill] sm:$0xff] }
 0x3de   :  { %2734 = vmatprep.subr.bf16.mxu1 %v2538_v25  ;;  %v2170_v43 = vadd.f32 1.0, %v6055_v42  ;;  %v2532_v35 = vpack.c.bf16 %v2444_v48, %v2440_v14  ;;  %v2436_v17 = vmul.f32 %v2308_v47, %v6056_v45  ;;  %v2300_v62 = vmul.f32 0.5, %v2172_v7  ;;  %v6072_v48 = vld [vmem:[#allocation130_spill] sm:$0xff]  ;;  %v6073_v47 = vld [vmem:[#allocation163_spill] sm:$0xff]  ;;  %v6080_v27 = vld [vmem:[#allocation161_spill] sm:$0xff] }
 0x3df   :  { %v2164_v28 = vadd.f32 1.0, %v6057_v26  ;;  %v2534_v51 = vpack.c.bf16 %v2446_v61, %v2442_v54  ;;  %v2438_v5 = vmul.f32 %v2310_v16, %v6058_v8  ;;  %v2302_v56 = vmul.f32 0.5, %v2174_v22  ;;  %v6076_v61 = vld [vmem:[#allocation151_spill] sm:$0xff]  ;;  %v6087_v8 = vld [vmem:[#allocation138_spill] sm:$0xff] }
 0x3e0   :  { %2662 = vmatpush2.bf16.msra.mxu0 %v2535_v39  ;;  %v2166_v58 = vadd.f32 1.0, %v6059_v6  ;;  %v2441_v2 = vmul.f32 %v6061_v52, %v6060_v37  ;;  %v2432_v3 = vmul.f32 %v2304_v15, %v6062_v60  ;;  %v2296_v10 = vmul.f32 0.5, %v2168_v40  ;;  %v6078_v39 = vld [vmem:[#allocation127_spill] sm:$0xff]  ;;  %v6079_v15 = vld [vmem:[#allocation124_spill] sm:$0xff]  ;;  %v6090_v52 = vld [vmem:[#allocation117_spill] sm:$0xff] }
 0x3e1   :  { %2735 = vmatpush2.bf16.msra.mxu1 %v2537_v30  ;;  %2663 = vmatprep.subr.bf16.mxu0 %v2532_v35  ;;  %v2160_v9 = vadd.f32 1.0, %v6063_v34  ;;  %v2531_v32 = vpack.c.bf16 %v5375_v13, %v6064_v18  ;;  %v2434_v31 = vmul.f32 %v2306_v38, %v6065_v19  ;;  %v2298_v29 = vmul.f32 0.5, %v2170_v43  ;;  %v6071_v13 = vld [vmem:[#allocation146_spill] sm:$0xff]  ;;  %v6081_v30 = vld [vmem:[#allocation109_spill] sm:$0xff]  ;;  %v6082_v38 = vld [vmem:[#allocation120_spill] sm:$0xff] }
 0x3e2   :  { %2736 = vmatprep.subr.bf16.mxu1 %v2534_v51  ;;  %v2162_v46 = vadd.f32 1.0, %v6066_v53  ;;  %v2533_v59 = vpack.c.bf16 %v5379_v20, %v2441_v2  ;;  %v2528_v33 = vpack.c.bf16 %v2436_v17, %v2432_v3  ;;  %v2428_v55 = vmul.f32 %v2300_v62, %v6067_v49  ;;  %v6074_v20 = vld [vmem:[#allocation125_spill] sm:$0xff]  ;;  %v6084_v45 = vld [vmem:[#allocation119_spill] sm:$0xff]  ;;  %v6094_v18 = vld [vmem:[#allocation144_spill] sm:$0xff] }
 0x3e3   :  { %v2292_v21 = vmul.f32 0.5, %v2164_v28  ;;  %v2431_v41 = vmul.f32 %v6069_v63, %v6068_v11  ;;  %v2530_v4 = vpack.c.bf16 %v2438_v5, %v2434_v31  ;;  %v2430_v12 = vmul.f32 %v2302_v56, %v6070_v36  ;;  %v6083_v43 = vld [vmem:[#allocation133_spill] sm:$0xff]  ;;  %v6088_v56 = vld [vmem:[#allocation122_spill] sm:$0xff]  ;;  %v6091_v2 = vld [vmem:[#allocation143_spill] sm:$0xff] }
 0x3e4   :  { %2664 = vmatpush2.bf16.msra.mxu0 %v2531_v32  ;;  %v2294_v24 = vmul.f32 0.5, %v2166_v58  ;;  %v2297_v1 = vmul.f32 0.5, %v6071_v13  ;;  %v2433_v50 = vmul.f32 %v6073_v47, %v6072_v48  ;;  %v2424_v7 = vmul.f32 %v2296_v10, %v6074_v20  ;;  %v6085_v17 = vld [vmem:[#allocation145_spill] sm:$0xff]  ;;  %v6089_v58 = vld [vmem:[#allocation112_spill] sm:$0xff]  ;;  %v6092_v10 = vld [vmem:[#allocation115_spill] sm:$0xff] }
 0x3e5   :  { %2737 = vmatpush2.bf16.msra.mxu1 %v2533_v59  ;;  %2665 = vmatprep.subr.bf16.mxu0 %v2528_v33  ;;  %v2288_v25 = vmul.f32 0.5, %v2160_v9  ;;  %v2427_v16 = vmul.f32 %v6076_v61, %v6075_v44  ;;  %v2527_v22 = vpack.c.bf16 %v6077_v23, %v2431_v41  ;;  %v2426_v57 = vmul.f32 %v2298_v29, %v6078_v39  ;;  %v6086_v28 = vld [vmem:[#allocation121_spill] sm:$0xff]  ;;  %v6093_v9 = vld [vmem:[#allocation118_spill] sm:$0xff]  ;;  %v6096_v59 = vld [vmem:[#allocation111_spill] sm:$0xff]  ;;  %v2592_v44 = vpop.permute.xlu1 %2591 }
 0x3e6   :  { %2738 = vmatprep.subr.bf16.mxu1 %v2530_v4  ;;  %v2290_v14 = vmul.f32 0.5, %v2162_v46  ;;  %v2429_v40 = vmul.f32 %v6080_v27, %v6079_v15  ;;  %v2529_v0 = vpack.c.bf16 %v6081_v30, %v2433_v50  ;;  %v2524_v54 = vpack.c.bf16 %v2428_v55, %v2424_v7  ;;  %v6095_v29 = vld [vmem:[#allocation110_spill] sm:$0xff]  ;;  %v3051_v11 = vld [vmem:[%s5651_s11 + $0x14] ss:$8 sps:$4 sm:$0xff]   ;;  %v3053_v63 = vld [vmem:[%s5651_s11 + $0x10] ss:$8 sps:$4 sm:$0xff]   ;;  %v2597_v7 = vpop.permute.xlu0 %2596 }
 0x3e7   :  { %v2420_v42 = vmul.f32 %v2292_v21, %v6082_v38  ;;  %v2287_v35 = vmul.f32 0.5, %v6083_v43  ;;  %v2423_v62 = vmul.f32 %v6085_v17, %v6084_v45  ;;  %v2526_v26 = vpack.c.bf16 %v2430_v12, %v2426_v57  ;;  %v3048_v21 = vld [vmem:[%s5651_s11] ss:$8 sps:$4 sm:$0xff]   ;;  %v3054_v41 = vld [vmem:[%s5651_s11 + $0x24] ss:$8 sps:$4 sm:$0xff]  }
 0x3e8   :  { %2666 = vmatpush2.bf16.msra.mxu0 %v2527_v22  ;;  %v2422_v51 = vmul.f32 %v2294_v24, %v6086_v28  ;;  %v2289_v5 = vmul.f32 0.5, %v6087_v8  ;;  %v2425_v6 = vmul.f32 %v2297_v1, %v6088_v56  ;;  %v2416_v37 = vmul.f32 %v2288_v25, %v6089_v58  ;;  %v3056_v4 = vld [vmem:[%s5651_s11 + $0x20] ss:$8 sps:$4 sm:$0xff]   ;;  %v3057_v36 = vld [vmem:[%s5651_s11 + $0x34] ss:$8 sps:$4 sm:$0xff]  }
 0x3e9   :  { %2739 = vmatpush2.bf16.msra.mxu1 %v2529_v0  ;;  %2667 = vmatprep.subr.bf16.mxu0 %v2524_v54  ;;  %v2419_v60 = vmul.f32 %v6091_v2, %v6090_v52  ;;  %v2523_v3 = vpack.c.bf16 %v2427_v16, %v2423_v62  ;;  %v2418_v34 = vmul.f32 %v2290_v14, %v6092_v10  ;;  %v3059_v12 = vld [vmem:[%s5651_s11 + $0x30] ss:$8 sps:$4 sm:$0xff]   ;;  %v6097_v24 = vmov 0   ;;  %v2582_v15 = vpop.permute.xlu1 %2581 }
 0x3ea   :  { %2740 = vmatprep.subr.bf16.mxu1 %v2526_v26  ;;  %v2421_v32 = vmul.f32 %v6094_v18, %v6093_v9  ;;  %v2525_v19 = vpack.c.bf16 %v2429_v40, %v2425_v6  ;;  %v2520_v31 = vpack.c.bf16 %v2420_v42, %v2416_v37  ;;  %v2415_v53 = vmul.f32 %v2287_v35, %v6095_v29  ;;  %v2587_v57 = vpop.permute.xlu0 %2586 }
 0x3eb   :  { %v2522_v46 = vpack.c.bf16 %v2422_v51, %v2418_v34  ;;  %v2417_v33 = vmul.f32 %v2289_v5, %v6096_v59 }
 0x3ec   :  { %2668 = vmatpush2.bf16.msra.mxu0 %v2523_v3  ;;  %v2519_v49 = vpack.c.bf16 %v2419_v60, %v2415_v53 }
 0x3ed   :  { %2741 = vmatpush2.bf16.msra.mxu1 %v2525_v19  ;;  %2669 = vmatprep.subr.bf16.mxu0 %v2520_v31  ;;  %v2521_v55 = vpack.c.bf16 %v2421_v32, %v2417_v33  ;;  %v5553_v43 = vpop.permute.xlu1 %2571 }
 0x3ee   :  { %2742 = vmatprep.subr.bf16.mxu1 %v2522_v46  ;;  %v2577_v38 = vpop.permute.xlu0 %2576 }
 0x3f0   :  { %2670 = vmatpush2.bf16.msra.mxu0 %v2519_v49 }
 0x3f1   :  { %2743 = vmatpush2.bf16.msra.mxu1 %v2521_v55  ;;  %v5557_v8 = vpop.permute.xlu1 %2561 }
 0x3f2   :  { %v5555_v28 = vpop.permute.xlu0 %2566 }
 0x3f3   :  { %2672 = vmatmul.mubr.bf16.vlgmr.msra.gmra.mxu0 %v3048_v21 }
 0x3f4   :  { %2745 = vmatmul.mubr.bf16.vlgmr.msra.gmra.mxu1 %v3048_v21  ;;  %2681 = vmatprep.mubr.bf16.mxu0 %v3051_v11 }
 0x3f5   :  { %2754 = vmatprep.mubr.bf16.mxu1 %v3051_v11 }
 0x3fb   :  { %2682 = vmatmul.mubr.bf16.gmra.mxu0 %v3053_v63 }
 0x3fc   :  { %2755 = vmatmul.mubr.bf16.gmra.mxu1 %v3053_v63  ;;  %2691 = vmatprep.mubr.bf16.mxu0 %v3054_v41 }
 0x3fd   :  { %2764 = vmatprep.mubr.bf16.mxu1 %v3054_v41 }
 0x403   :  { %2692 = vmatmul.mubr.bf16.gmra.mxu0 %v3056_v4 }
 0x404   :  { %2765 = vmatmul.mubr.bf16.gmra.mxu1 %v3056_v4  ;;  %2701 = vmatprep.mubr.bf16.mxu0 %v3057_v36 }
 0x405   :  { %2774 = vmatprep.mubr.bf16.mxu1 %v3057_v36 }
 0x40b   :  { %2702 = vmatmul.mubr.bf16.gmra.mxu0 %v3059_v12 }
 0x40c   :  { %2775 = vmatmul.mubr.bf16.gmra.mxu1 %v3059_v12  ;;  %2875 = vmatprep.mubr.bf16.mxu0 %v6097_v24 }
 0x40d   :  { %2916 = vmatprep.mubr.bf16.mxu1 %v6097_v24 }
 0x4b3   :  { %v5545_v13 = vpop.f32.mrf.mxu0 }
 0x4b4   :  { %v5547_v1 = vpop.f32.mrf.mxu1 }
 0x4b5   :  { %v2675_v48 = vpop.f32.mrf.mxu0 }
 0x4b6   :  { %v2748_v47 = vpop.f32.mrf.mxu1  ;;  %v5560_v56 = vadd.f32 %v2675_v48, %v5557_v8 }
 0x4b7   :  { %v2677_v50 = vpop.f32.mrf.mxu0  ;;  %v5563_v6 = vadd.f32 %v2748_v47, %v5557_v8 }
 0x4b8   :  { %v5549_v20 = vpop.f32.mrf.mxu1  ;;  %v5566_v58 = vadd.f32 %v2677_v50, %v5555_v28  ;;  %v6098_v50 = vld [vmem:[#allocation2_spill] sm:$0xff] }
 0x4b9   :  { %v2679_v25 = vpop.f32.mrf.mxu0 }
 0x4ba   :  { %v2752_v61 = vpop.f32.mrf.mxu1  ;;  %v5569_v37 = vadd.f32 %v2679_v25, %v5555_v28 }
 0x4bb   :  { %v2683_v16 = vpop.f32.mrf.mxu0  ;;  %v5572_v2 = vadd.f32 %v2752_v61, %v5555_v28 }
 0x4bc   :  { %v5551_v23 = vpop.f32.mrf.mxu1  ;;  %v5575_v60 = vadd.f32 %v2683_v16, %v5553_v43  ;;  %v6099_v16 = vld [vmem:[#allocation3_spill] sm:$0xff] }
 0x4bd   :  { %v2685_v22 = vpop.f32.mrf.mxu0 }
 0x4be   :  { %v2758_v39 = vpop.f32.mrf.mxu1  ;;  %v2686_v3 = vadd.f32 %v2685_v22, %v5553_v43 }
 0x4bf   :  { %v2687_v14 = vpop.f32.mrf.mxu0  ;;  %v2759_v10 = vadd.f32 %v2758_v39, %v5553_v43  ;;  %v6100_v39 = vld [vmem:[#allocation4_spill] sm:$0xff] }
 0x4c0   :  { %v2760_v27 = vpop.f32.mrf.mxu1  ;;  %v2688_v9 = vadd.f32 %v2687_v14, %v2577_v38 }
 0x4c1   :  { %v2689_v40 = vpop.f32.mrf.mxu0  ;;  %v2761_v18 = vadd.f32 %v2760_v27, %v2577_v38  ;;  %v6101_v27 = vld [vmem:[#allocation5_spill] sm:$0xff] }
 0x4c2   :  { %v2762_v30 = vpop.f32.mrf.mxu1  ;;  %v2690_v32 = vadd.f32 %v2689_v40, %v2577_v38 }
 0x4c3   :  { %v2693_v0 = vpop.f32.mrf.mxu0  ;;  %v2763_v19 = vadd.f32 %v2762_v30, %v2577_v38  ;;  %v6102_v30 = vld [vmem:[#allocation6_spill] sm:$0xff]  ;;  %v6103_v38 = vld [vmem:[#allocation7_spill] sm:$0xff] }
 0x4c4   :  { %v2766_v54 = vpop.f32.mrf.mxu1  ;;  %v2694_v29 = vadd.f32 %v2693_v0, %v2582_v15 }
 0x4c5   :  { %v2695_v42 = vpop.f32.mrf.mxu0 }
 0x4c6   :  { %v2768_v35 = vpop.f32.mrf.mxu1  ;;  %v2696_v41 = vadd.f32 %v2695_v42, %v2582_v15  ;;  %v6104_v42 = vld [vmem:[#allocation8_spill] sm:$0xff] }
 0x4c7   :  { %v2697_v45 = vpop.f32.mrf.mxu0  ;;  %v2769_v4 = vadd.f32 %v2768_v35, %v2582_v15 }
 0x4c8   :  { %v2770_v17 = vpop.f32.mrf.mxu1  ;;  %v2698_v48 = vadd.f32 %v2697_v45, %v2587_v57 }
 0x4c9   :  { %v2699_v62 = vpop.f32.mrf.mxu0  ;;  %v2771_v47 = vadd.f32 %v2770_v17, %v2587_v57  ;;  %v6107_v17 = vld [vmem:[#allocation11_spill] sm:$0xff] }
 0x4ca   :  { %v2772_v26 = vpop.f32.mrf.mxu1  ;;  %v2700_v53 = vadd.f32 %v2699_v62, %v2587_v57 }
 0x4cb   :  { %v2703_v51 = vpop.f32.mrf.mxu0  ;;  %v2773_v49 = vadd.f32 %v2772_v26, %v2587_v57  ;;  %v2767_v57 = vadd.f32 %v2766_v54, %v2582_v15  ;;  %v6114_v54 = vld [vmem:[#allocation18_spill] sm:$0xff] }
 0x4cc   :  { %v2776_v5 = vpop.f32.mrf.mxu1  ;;  %v2704_v55 = vadd.f32 %v2703_v51, %v2592_v44  ;;  %v2806_v22 = vadd.f32 %v2700_v53, %v6099_v16  ;;  %v6106_v51 = vld [vmem:[#allocation10_spill] sm:$0xff] }
 0x4cd   :  { %v2705_v52 = vpop.f32.mrf.mxu0  ;;  %v2777_v36 = vadd.f32 %v2776_v5, %v2592_v44  ;;  %v2808_v62 = vadd.f32 %v2773_v49, %v6103_v38  ;;  %v2802_v5 = vadd.f32 %v2696_v41, %v6107_v17  ;;  %v2801_v41 = vadd.f32 %v2694_v29, %v6114_v54  ;;  %v6129_v17 = vld [vmem:[#allocation33_spill] sm:$0xff] }
 0x4ce   :  { %v2778_v34 = vpop.f32.mrf.mxu1  ;;  %v2706_v46 = vadd.f32 %v2705_v52, %v2592_v44  ;;  %v2809_v35 = vadd.f32 %v2704_v55, %v6104_v42 }
 0x4cf   :  { %v2707_v31 = vpop.f32.mrf.mxu0  ;;  %v2779_v21 = vadd.f32 %v2778_v34, %v2592_v44  ;;  %v6105_v44 = vld [vmem:[#allocation9_spill] sm:$0xff] }
 0x4d0   :  { %v2708_v59 = vadd.f32 %v2707_v31, %v2597_v7  ;;  %v2780_v33 = vpop.f32.mrf.mxu1  ;;  %v2810_v14 = vadd.f32 %v2706_v46, %v6100_v39  ;;  %v6109_v31 = vld [vmem:[#allocation13_spill] sm:$0xff]  ;;  %v6110_v46 = vld [vmem:[#allocation14_spill] sm:$0xff] }
 0x4d1   :  { %v2781_v11 = vadd.f32 %v2780_v33, %v2597_v7  ;;  %v2709_v63 = vpop.f32.mrf.mxu0  ;;  %v2812_v26 = vadd.f32 %v2779_v21, %v6105_v44  ;;  %v2804_v53 = vadd.f32 %v2769_v4, %v6109_v31  ;;  %v2827_v21 = vpack.c.bf16 %v2806_v22, %v2802_v5  ;;  %v6126_v44 = vld [vmem:[#allocation30_spill] sm:$0xff]  ;;  %v2838_v31 = vpop.permute.xlu1 %2837 }
 0x4d2   :  { %v2710_v12 = vadd.f32 %v2709_v63, %v2597_v7  ;;  %v2782_v24 = vpop.f32.mrf.mxu1  ;;  %v2813_v25 = vadd.f32 %v2708_v59, %v6098_v50  ;;  %v2805_v59 = vadd.f32 %v2698_v48, %v6110_v46  ;;  %v6111_v63 = vld [vmem:[#allocation15_spill] sm:$0xff]  ;;  %v6113_v50 = vld [vmem:[#allocation17_spill] sm:$0xff]  ;;  %v2757_v4 = vadd.f32 %v5551_v23, %v5553_v43 }
 0x4d3   :  { %v2783_v61 = vadd.f32 %v2782_v24, %v2597_v7  ;;  %v2815_v40 = vadd.f32 %v2781_v11, %v6101_v27  ;;  %v6108_v7 = vld [vmem:[#allocation12_spill] sm:$0xff]  ;;  %v2798_v49 = vadd.f32 %v2690_v32, %v6111_v63  ;;  %v2800_v15 = vadd.f32 %v2763_v19, %v6113_v50  ;;  %v6115_v48 = vld [vmem:[#allocation19_spill] sm:$0xff]  ;;  %v6118_v19 = vld [vmem:[#allocation22_spill] sm:$0xff] }
 0x4d4   :  { %v2814_v0 = vadd.f32 %v2710_v12, %v6102_v30  ;;  %v2811_v52 = vadd.f32 %v2777_v36, %v6108_v7  ;;  %v2830_v33 = vpack.c.bf16 %v2813_v25, %v2809_v35  ;;  %v6112_v12 = vld [vmem:[#allocation16_spill] sm:$0xff]  ;;  %v2829_v36 = vpack.c.bf16 %v2808_v62, %v2804_v53  ;;  %v6123_v62 = vld [vmem:[#allocation27_spill] sm:$0xff]  ;;  %v6125_v35 = vld [vmem:[#allocation29_spill] sm:$0xff] }
 0x4d5   :  { %v2816_v45 = vadd.f32 %v2783_v61, %v6106_v51  ;;  %v2807_v55 = vadd.f32 %v2771_v47, %v6112_v12  ;;  %v2794_v25 = vadd.f32 %v2686_v3, %v6115_v48  ;;  %v6116_v61 = vld [vmem:[#allocation20_spill] sm:$0xff]  ;;  %v2751_v32 = vadd.f32 %v5549_v20, %v5555_v28  ;;  %v6117_v47 = vld [vmem:[#allocation21_spill] sm:$0xff]  ;;  %v6122_v20 = vld [vmem:[#allocation26_spill] sm:$0xff] }
 0x4d6   :  { %v2831_v34 = vpack.c.bf16 %v2814_v0, %v2810_v14  ;;  %v2832_v24 = vpack.c.bf16 %v2815_v40, %v2811_v52  ;;  %v2803_v16 = vadd.f32 %v2767_v57, %v6116_v61  ;;  %v2796_v22 = vadd.f32 %v2759_v10, %v6117_v47  ;;  %v6119_v14 = vld [vmem:[#allocation23_spill] sm:$0xff]  ;;  %v6120_v40 = vld [vmem:[#allocation24_spill] sm:$0xff]  ;;  %v6121_v0 = vld [vmem:[#allocation25_spill] sm:$0xff] }
 0x4d7   :  { %v2833_v11 = vpack.c.bf16 %v2816_v45, %v2812_v26  ;;  %v2797_v39 = vadd.f32 %v2688_v9, %v6118_v19  ;;  %v2826_v29 = vpack.c.bf16 %v2805_v59, %v2801_v41  ;;  %v2790_v27 = vadd.f32 %v5569_v37, %v6119_v14 }
 0x4d8   :  { %2851 = vmatprep.subr.bf16.mxu0 %v2831_v34  ;;  %v2799_v23 = vadd.f32 %v2761_v18, %v6120_v40  ;;  %v2828_v43 = vpack.c.bf16 %v2807_v55, %v2803_v16  ;;  %v2823_v3 = vpack.c.bf16 %v2798_v49, %v2794_v25  ;;  %v2674_v30 = vadd.f32 %v5545_v13, %v5557_v8  ;;  %v6124_v18 = vld [vmem:[#allocation28_spill] sm:$0xff] }
 0x4d9   :  { %2892 = vmatprep.subr.bf16.mxu1 %v2833_v11  ;;  %2852 = vmatpush1.bf16.msra.mxu0 %v2830_v33  ;;  %v2792_v38 = vadd.f32 %v5572_v2, %v6121_v0  ;;  %v2793_v28 = vadd.f32 %v5575_v60, %v6122_v20  ;;  %v2825_v10 = vpack.c.bf16 %v2800_v15, %v2796_v22  ;;  %v6127_v60 = vld [vmem:[#allocation31_spill] sm:$0xff] }
 0x4da   :  { %2893 = vmatpush1.bf16.msra.mxu1 %v2832_v24  ;;  %2853 = vmatprep.subr.bf16.mxu0 %v2827_v21  ;;  %v2747_v9 = vadd.f32 %v5547_v1, %v5557_v8  ;;  %v2786_v37 = vadd.f32 %v5560_v56, %v6123_v62  ;;  %v2795_v42 = vadd.f32 %v2757_v4, %v6124_v18  ;;  %v6128_v1 = vld [vmem:[#allocation32_spill] sm:$0xff] }
 0x4db   :  { %2894 = vmatprep.subr.bf16.mxu1 %v2829_v36  ;;  %v2788_v13 = vadd.f32 %v5563_v6, %v6125_v35  ;;  %v2789_v2 = vadd.f32 %v5566_v58, %v6126_v44  ;;  %v2822_v26 = vpack.c.bf16 %v2797_v39, %v2793_v28  ;;  %v2791_v51 = vadd.f32 %v2751_v32, %v6127_v60  ;;  %v2817_v58 = vld [vmem:[%s5652_s13] sm:$0x3] }
 0x4dc   :  { %v2824_v45 = vpack.c.bf16 %v2799_v23, %v2795_v42  ;;  %v2819_v57 = vpack.c.bf16 %v2790_v27, %v2786_v37  ;;  %v2785_v8 = vadd.f32 %v2674_v30, %v6128_v1  ;;  %v2787_v5 = vadd.f32 %v2747_v9, %v6129_v17 }
 0x4dd   :  { %2854 = vmatpush1.bf16.msra.mxu0 %v2826_v29  ;;  %v2821_v56 = vpack.c.bf16 %v2792_v38, %v2788_v13 }
 0x4de   :  { %2895 = vmatpush1.bf16.msra.mxu1 %v2828_v43  ;;  %2855 = vmatprep.subr.bf16.mxu0 %v2823_v3  ;;  %v2818_v7 = vpack.c.bf16 %v2789_v2, %v2785_v8  ;;  %v2820_v6 = vpack.c.bf16 %v2791_v51, %v2787_v5 }
 0x4df   :  { %2896 = vmatprep.subr.bf16.mxu1 %v2825_v10 }
 0x4e1   :  { %2856 = vmatpush1.bf16.msra.mxu0 %v2822_v26 }
 0x4e2   :  { %2897 = vmatpush1.bf16.msra.mxu1 %v2824_v45  ;;  %2857 = vmatprep.subr.bf16.mxu0 %v2819_v57 }
 0x4e3   :  { %2898 = vmatprep.subr.bf16.mxu1 %v2821_v56 }
 0x4e5   :  { %2858 = vmatpush1.bf16.msra.mxu0 %v2818_v7 }
 0x4e6   :  { %2899 = vmatpush1.bf16.msra.mxu1 %v2820_v6 }
 0x4e8   :  { %3021 = vmatmul.mubr.msk.bf16.vlgmr.msra.gmra.mxu0 %vm892_vm4, %v2817_v58 }
 0x4e9   :  { %3022 = vmatmul.mubr.msk.bf16.vlgmr.msra.gmra.mxu1 %vm892_vm4, %v2817_v58 }
 0x5a8   :  { %v2877_v52 = vpop.f32.mrf.mxu0 }
 0x5a9   :  { %v2918_v34 = vpop.f32.mrf.mxu1  ;;  %v2878_v46 = vadd.f32 %v2877_v52, %v2838_v31 }
 0x5aa   :  { %v2879_v53 = vpop.f32.mrf.mxu0  ;;  %v2919_v11 = vadd.f32 %v2918_v34, %v2838_v31 }
 0x5ab   :  { %v2880_v59 = vadd.f32 %v2879_v53, %v2838_v31  ;;  %v2920_v33 = vpop.f32.mrf.mxu1 }
 0x5ac   :  { %v2921_v63 = vadd.f32 %v2920_v33, %v2838_v31  ;;  %v2881_v49 = vpop.f32.mrf.mxu0 }
 0x5ad   :  { %v2929_v12 = vcombine.low %v2878_v46, %v2880_v59  ;;  %v2922_v55 = vpop.f32.mrf.mxu1 }
 0x5ae   :  { %v2930_v24 = vcombine.low %v2919_v11, %v2921_v63  ;;  %v2882_v21 = vpop.f32.mrf.mxu0 }
 0x5af   :  { %2933 = vst [vmem:[%s5653_s17] sm:$0xff] %v2929_v12  ;;  %v2923_v50 = vpop.f32.mrf.mxu1 }
 0x5b0   :  { %2934 = vst [vmem:[%s5653_s17 + $0x8] sm:$0xff] %v2930_v24 }

</bundles_post_ra>
